<compile_context>
chip_gen: v5e
topology: v5e:2x2
jax: 0.10.0
libtpu: 0.0.40
codegen_flags: <defaults>
</compile_context>

<pallas_src>
import math
import numpy as np
import jax
import jax.numpy as jnp
from jax.experimental import pallas as pl
from jax.experimental.pallas import tpu as pltpu

# ---- model hyperparameters (CVRP variant, vehicle_count=1) ----
B = 200          # batch (not a multiple of BT on purpose -> exercises the padded tail tile)
GRAPH = 8        # graph size incl. depot
E = 128          # embedding_dim
H = 8            # n_heads
KEY = E // H     # per-head dim
V = 1            # vehicle_count
VG = V * GRAPH   # multi-vehicle node count
CSC = (E + 1) * V
TANH_CLIP = 10.0
TEMP = 1.0       # NOTE: kernel bakes TANH_CLIP/TEMP into the logits before masking; identical to
                 # the reference for TEMP==1 (masked entries are -inf/NEG either way).
CAPACITY = 1.0

BT = 128                         # batch tile (>=128; use 256 on v6e if VMEM allows)
NBT = pl.cdiv(B, BT)             # number of batch tiles (tail padded)
B_PAD = NBT * BT
NSTEPS = 3                       # decode steps fused into one pallas_call (trailing grid axis)
NPAD = pl.cdiv(VG, 128) * 128    # lane-padded node axis for the log-prob output

NEG = -1e9                       # finite "masked" sentinel (NaN-proof; reference uses -inf)
INV_SQRT_KEY = 1.0 / math.sqrt(KEY)
INV_SQRT_E = 1.0 / math.sqrt(E)
VMEM_LIMIT = 32 * 1024 * 1024    # explicit scoped-VMEM budget (footprint ~4 MiB, safe on v5e..v7x)


# ---------------- Pallas kernels ----------------

def precompute_kernel(emb_ref, wfcT_ref, wkT_ref, wvT_ref, wlT_ref,
                      fc_ref, k_ref, v_ref, lk_ref):
    f32 = jnp.float32
    bf16 = jnp.bfloat16
    emb = emb_ref[...]                                      # (BT, VG, E) bf16
    emb2d = emb.reshape(BT * VG, E)                         # free reshape (leading-dim merge)

    graph_embed = jnp.mean(emb.astype(f32), axis=1)         # (BT, E) f32
    # fixed_context = graph_embed @ Wfc^T   (pre-transposed weight, bf16 MXU, f32 acc)
    fc_ref[...] = jax.lax.dot_general(
        graph_embed.astype(bf16), wfcT_ref[...],
        (((1,), (0,)), ((), ())), preferred_element_type=f32)

    # project_node_embeddings, emitted directly in the layout the decoder consumes (bf16)
    def proj(wT_ref):
        return jax.lax.dot_general(
            emb2d, wT_ref[...], (((1,), (0,)), ((), ())),
            preferred_element_type=f32).reshape(BT, VG, E)

    k_ref[...] = proj(wkT_ref).astype(k_ref.dtype)          # glimpse key
    v_ref[...] = proj(wvT_ref).astype(v_ref.dtype)          # glimpse value
    lk_ref[...] = proj(wlT_ref).astype(lk_ref.dtype)        # logit key


def decoder_steps_kernel(cur_ref, rem_ref, mask_ref, fc_ref, wscT_ref, wcap_ref,
                         k_ref, v_ref, lk_ref, woutT_ref, logp_ref):
    f32 = jnp.float32
    bf16 = jnp.bfloat16
    mask = mask_ref[...]                                    # (BT, VG)  1.0 = masked

    # head one-hots built in-kernel (no input DMA): lane block h*KEY..(h+1)*KEY-1 <-> head h
    oh_eh = (jax.lax.broadcasted_iota(jnp.int32, (E, H), 0) // KEY
             == jax.lax.broadcasted_iota(jnp.int32, (E, H), 1)).astype(bf16)   # (E, H)
    oh_he = (jax.lax.broadcasted_iota(jnp.int32, (H, E), 1) // KEY
             == jax.lax.broadcasted_iota(jnp.int32, (H, E), 0)).astype(bf16)   # (H, E)

    # ---- query = fixed_context + project_step_context([cur_emb, remaining])  (MXU) ----
    q = fc_ref[...] + jax.lax.dot_general(
        cur_ref[...], wscT_ref[...], (((1,), (0,)), ((), ())),
        preferred_element_type=f32)                         # (BT, E) f32
    q = q + rem_ref[...] * wcap_ref[...]                    # capacity column, rank-1 (VPU)
    q = q * INV_SQRT_KEY                                    # fold 1/sqrt(key) into the query

    # ---- per-head compatibility: VPU q*K, then ONE MXU stream (M=BT*VG) vs head one-hot ----
    qk = (q[:, None, :] * k_ref[...].astype(f32)).reshape(BT * VG, E).astype(bf16)
    compat = jax.lax.dot_general(
        qk, oh_eh, (((1,), (0,)), ((), ())),
        preferred_element_type=f32).reshape(BT, VG, H)      # (BT, VG, H)
    compat = jnp.where(mask[:, :, None] > 0.5, NEG, compat)  # mask_inner (finite sentinel)

    # ---- softmax over nodes (axis=1): EUP exp + approx reciprocal ----
    m = jnp.max(compat, axis=1, keepdims=True)
    e = jnp.exp(compat - m)
    s = jnp.sum(e, axis=1, keepdims=True)
    p = e * pl.reciprocal(s, approx=True)                   # (BT, VG, H)

    # ---- heads: expand head probs to per-lane weights, VPU multiply + sublane reduce ----
    w = jax.lax.dot_general(
        p.reshape(BT * VG, H).astype(bf16), oh_he, (((1,), (0,)), ((), ())),
        preferred_element_type=f32).reshape(BT, VG, E)      # per-lane softmax weights
    heads = jnp.sum(w * v_ref[...].astype(f32), axis=1)     # (BT, E)

    # ---- project_out (MXU, pre-transposed weight) ----
    glimpse = jax.lax.dot_general(
        heads.astype(bf16), woutT_ref[...], (((1,), (0,)), ((), ())),
        preferred_element_type=f32)                         # (BT, E)

    # ---- logits over nodes: VPU multiply + cross-lane reduce (no M=1 matmuls) ----
    logits = jnp.sum(glimpse[:, None, :] * lk_ref[...].astype(f32), axis=-1)   # (BT, VG)
    logits = jnp.tanh(logits * INV_SQRT_E) * (TANH_CLIP / TEMP)
    logits = jnp.where(mask > 0.5, NEG, logits)              # mask_logits

    # ---- log_softmax on the narrow logits; lane-dense padded store (general for any VG) ----
    mx = jnp.max(logits, axis=-1, keepdims=True)
    lse = jnp.log(jnp.sum(jnp.exp(logits - mx), axis=-1, keepdims=True)) + mx
    logp_ref[...] = jnp.full((BT, NPAD), NEG, f32)           # full-width (lane-dense) write
    logp_ref[:, 0:VG] = logits - lse                         # masked narrow write into VMEM block


# ---------------- wrappers ----------------

def _pad_batch(x, axis):
    pad = B_PAD - x.shape[axis]
    if pad == 0:
        return x
    widths = [(0, 0)] * x.ndim
    widths[axis] = (0, pad)
    return jnp.pad(x, widths)


def precompute(emb_bf, wfcT, wkT, wvT, wlT):
    emb_p = _pad_batch(emb_bf, 0)
    return pl.pallas_call(
        precompute_kernel,
        out_shape=(jax.ShapeDtypeStruct((B_PAD, E), jnp.float32),
                   jax.ShapeDtypeStruct((B_PAD, VG, E), jnp.bfloat16),
                   jax.ShapeDtypeStruct((B_PAD, VG, E), jnp.bfloat16),
                   jax.ShapeDtypeStruct((B_PAD, VG, E), jnp.bfloat16)),
        grid_spec=pltpu.PrefetchScalarGridSpec(
            num_scalar_prefetch=0, grid=(NBT,),
            in_specs=[pl.BlockSpec((BT, VG, E), lambda b: (b, 0, 0)),
                      pl.BlockSpec((E, E), lambda b: (0, 0)),
                      pl.BlockSpec((E, E), lambda b: (0, 0)),
                      pl.BlockSpec((E, E), lambda b: (0, 0)),
                      pl.BlockSpec((E, E), lambda b: (0, 0))],
            out_specs=[pl.BlockSpec((BT, E), lambda b: (b, 0)),
                       pl.BlockSpec((BT, VG, E), lambda b: (b, 0, 0)),
                       pl.BlockSpec((BT, VG, E), lambda b: (b, 0, 0)),
                       pl.BlockSpec((BT, VG, E), lambda b: (b, 0, 0))]),
        compiler_params=pltpu.CompilerParams(
            dimension_semantics=("parallel",), vmem_limit_bytes=VMEM_LIMIT),
    )(emb_p, wfcT, wkT, wvT, wlT)


def decoder_steps(cur_steps, rem_steps, mask_steps, fixed_ctx, wscT, wcap, k, v, lk, woutT):
    cur_p = _pad_batch(cur_steps, 1)
    rem_p = _pad_batch(rem_steps, 1)
    mask_p = _pad_batch(mask_steps, 1)
    logp = pl.pallas_call(
        decoder_steps_kernel,
        out_shape=jax.ShapeDtypeStruct((NSTEPS, B_PAD, NPAD), jnp.float32),
        grid_spec=pltpu.PrefetchScalarGridSpec(
            num_scalar_prefetch=0, grid=(NBT, NSTEPS),
            in_specs=[pl.BlockSpec((None, BT, E), lambda b, s: (s, b, 0)),    # current node emb
                      pl.BlockSpec((None, BT, 1), lambda b, s: (s, b, 0)),    # remaining capacity
                      pl.BlockSpec((None, BT, VG), lambda b, s: (s, b, 0)),   # mask (1.0 = masked)
                      pl.BlockSpec((BT, E), lambda b, s: (b, 0)),             # fixed context
                      pl.BlockSpec((E, E), lambda b, s: (0, 0)),              # Wsc[:, :E]^T
                      pl.BlockSpec((1, E), lambda b, s: (0, 0)),              # Wsc capacity column
                      pl.BlockSpec((BT, VG, E), lambda b, s: (b, 0, 0)),      # K (step-resident)
                      pl.BlockSpec((BT, VG, E), lambda b, s: (b, 0, 0)),      # V (step-resident)
                      pl.BlockSpec((BT, VG, E), lambda b, s: (b, 0, 0)),      # logit K (resident)
                      pl.BlockSpec((E, E), lambda b, s: (0, 0))],             # Wout^T
            out_specs=pl.BlockSpec((None, BT, NPAD), lambda b, s: (s, b, 0))),
        compiler_params=pltpu.CompilerParams(
            dimension_semantics=("parallel", "arbitrary"), vmem_limit_bytes=VMEM_LIMIT),
    )(cur_p, rem_p, mask_p, fixed_ctx, wscT, wcap, k, v, lk, woutT)
    return logp[:, :B, :]


if __name__ == "__main__":
    key = jax.random.PRNGKey(0)
    ks = jax.random.split(key, 10)
    f32, bf16 = jnp.float32, jnp.bfloat16

    # synthetic CVRP instance (input dict: depot, loc, demand)
    depot = jax.random.uniform(ks[0], (B, 2), f32)
    loc = jax.random.uniform(ks[1], (B, GRAPH - 1, 2), f32)
    demand = jax.random.uniform(ks[2], (B, GRAPH - 1), f32) * 0.2

    def init_linear(k, out_d, in_d, bias=True):
        k1, k2 = jax.random.split(k)
        lim = 1.0 / math.sqrt(in_d)
        w = jax.random.uniform(k1, (out_d, in_d), f32, -lim, lim)
        b = jax.random.uniform(k2, (out_d,), f32, -lim, lim) if bias else None
        return w, b

    w_dep, b_dep = init_linear(ks[3], E, 2)                  # init_embed_depot
    w_ini, b_ini = init_linear(ks[4], E, 3)                  # init_embed (cvrp node_dim=3)
    w_node, _ = init_linear(ks[5], 3 * E, E, bias=False)     # project_node_embeddings
    w_fc, _ = init_linear(ks[6], E, E, bias=False)           # project_fixed_context
    w_sc, _ = init_linear(ks[7], E, CSC, bias=False)         # project_step_context
    w_out, _ = init_linear(ks[8], E, E, bias=False)          # project_out

    # ---- _init_embed (glue, plain JAX) ----
    emb_depot = depot @ w_dep.T + b_dep
    node_feats = jnp.concatenate([loc, demand[:, :, None]], axis=-1)
    emb_nodes = node_feats @ w_ini.T + b_ini
    embeddings = jnp.concatenate([emb_depot[:, None, :], emb_nodes], axis=1)  # (B, G, E)
    # TODO(synk): GraphAttentionEncoder (self.embedder) source not provided; embeddings pass through.

    # bf16 storage for the bandwidth-dominant tensors; weights pre-transposed (contract lhs1 x rhs0)
    emb_bf = embeddings.astype(bf16)
    wfcT = w_fc.T.astype(bf16)
    wkT = w_node[:E, :].T.astype(bf16)
    wvT = w_node[E:2 * E, :].T.astype(bf16)
    wlT = w_node[2 * E:, :].T.astype(bf16)
    wscT = w_sc[:, :E].T.astype(bf16)
    wcap = jnp.transpose(w_sc[:, E:]).astype(f32)            # (1, E) capacity column
    woutT = w_out.T.astype(bf16)

    # ---- _precompute (Pallas): fixed context + K/V/logit-K in decoder layout, bf16 ----
    fixed_ctx, Kf, Vf, LKf = precompute(emb_bf, wfcT, wkT, wvT, wlT)

    # ---- per-step decoder inputs (environment glue; state/update/_select_node are env code) ----
    # TODO(synk): problem.make_state/get_mask/update, _select_node sampling and
    # _calc_log_likelihood are environment code; deterministic per-step contexts are used instead.
    cur_steps = jnp.stack([emb_bf[:, s, :] for s in range(NSTEPS)], axis=0)   # (NSTEPS, B, E) bf16
    rem_steps = jnp.stack([jnp.full((B, 1), CAPACITY - 0.1 * s, f32) for s in range(NSTEPS)], 0)
    mask_bool_steps = jnp.broadcast_to(
        (jnp.arange(VG)[None, None, :] <= jnp.arange(NSTEPS)[:, None, None]), (NSTEPS, B, VG))
    mask_steps = mask_bool_steps.astype(f32)

    logp = decoder_steps(cur_steps, rem_steps, mask_steps, fixed_ctx, wscT, wcap,
                         Kf, Vf, LKf, woutT)
    logp = jax.block_until_ready(logp)                        # (NSTEPS, B, NPAD)

    # ---- pure-JAX reference of the same forward path (mirrors bf16 storage rounding) ----
    embq = emb_bf.astype(f32)
    fc_r = embq.mean(1).astype(bf16).astype(f32) @ wfcT.astype(f32)
    Kr = (embq @ wkT.astype(f32)).astype(bf16).astype(f32)
    Vr = (embq @ wvT.astype(f32)).astype(bf16).astype(f32)
    LKr = (embq @ wlT.astype(f32)).astype(bf16).astype(f32)

    logp_r_steps = []
    for s in range(NSTEPS):
        cur = cur_steps[s].astype(f32)
        rem = rem_steps[s]
        mask_b = mask_bool_steps[s]
        query = fc_r + cur @ wscT.astype(f32) + rem * wcap
        Qh = query.reshape(B, H, KEY).transpose(1, 0, 2)
        Kh = Kr.reshape(B, VG, H, KEY).transpose(2, 0, 1, 3)
        Vh = Vr.reshape(B, VG, H, KEY).transpose(2, 0, 1, 3)
        compat_r = jnp.einsum('hbk,hbnk->hbn', Qh, Kh) / math.sqrt(KEY)
        compat_r = jnp.where(mask_b[None, :, :], -jnp.inf, compat_r)
        p_r = jax.nn.softmax(compat_r, axis=-1)
        heads_r = jnp.einsum('hbn,hbnk->hbk', p_r, Vh).transpose(1, 0, 2).reshape(B, E)
        glimpse_r = heads_r @ woutT.astype(f32)
        logits_r = jnp.einsum('be,bne->bn', glimpse_r, LKr) / math.sqrt(E)
        logits_r = jnp.tanh(logits_r) * TANH_CLIP
        logits_r = jnp.where(mask_b, -jnp.inf, logits_r)
        logp_r_steps.append(jax.nn.log_softmax(logits_r / TEMP, axis=-1))
    logp_r = jnp.stack(logp_r_steps, axis=0)                  # (NSTEPS, B, VG)

    logp_np = np.asarray(logp[:, :, :VG])
    logp_r_np = np.asarray(logp_r)
    m_np = np.asarray(mask_bool_steps)
    assert not np.isnan(np.asarray(logp)).any()
    assert np.allclose(np.asarray(fixed_ctx[:B]), np.asarray(fc_r), atol=1e-2), "fixed ctx mismatch"
    assert np.allclose(np.asarray(Kf[:B], dtype=np.float32), np.asarray(Kr), atol=1e-2), "K mismatch"
    assert np.allclose(np.asarray(Vf[:B], dtype=np.float32), np.asarray(Vr), atol=1e-2), "V mismatch"
    assert np.allclose(np.asarray(LKf[:B], dtype=np.float32), np.asarray(LKr), atol=1e-2), "LK mismatch"
    assert np.allclose(np.where(m_np, 0.0, logp_np),
                       np.where(m_np, 0.0, logp_r_np), atol=3e-2), "log_p mismatch"
    assert (logp_np[m_np] < -1e6).all(), "masked entries not suppressed"
    print("KERNEL_OK")
</pallas_src>

<mosaic_0001>
module attributes {stable_mosaic.version = 11 : i64} {
  func.func @precompute_kernel(%arg0: i32, %arg1: memref<128x8x128xbf16, #tpu.memory_space<vmem>>, %arg2: memref<128x128xbf16, #tpu.memory_space<vmem>>, %arg3: memref<128x128xbf16, #tpu.memory_space<vmem>>, %arg4: memref<128x128xbf16, #tpu.memory_space<vmem>>, %arg5: memref<128x128xbf16, #tpu.memory_space<vmem>>, %arg6: memref<128x128xf32, #tpu.memory_space<vmem>>, %arg7: memref<128x8x128xbf16, #tpu.memory_space<vmem>>, %arg8: memref<128x8x128xbf16, #tpu.memory_space<vmem>>, %arg9: memref<128x8x128xbf16, #tpu.memory_space<vmem>>) attributes {dimension_semantics = [#tpu.dimension_semantics<parallel>], iteration_bounds = array<i64: 2>, scalar_prefetch = 0 : i64, scratch_operands = 0 : i64, tpu.core_type = #tpu.core_type<tc>, window_params = [{transform_indices = @transform_0, window_bounds = array<i64: 128, 8, 128>}, {pipeline_mode = #tpu.pipeline_mode<synchronous>, transform_indices = @transform_1, window_bounds = array<i64: 128, 128>}, {pipeline_mode = #tpu.pipeline_mode<synchronous>, transform_indices = @transform_2, window_bounds = array<i64: 128, 128>}, {pipeline_mode = #tpu.pipeline_mode<synchronous>, transform_indices = @transform_3, window_bounds = array<i64: 128, 128>}, {pipeline_mode = #tpu.pipeline_mode<synchronous>, transform_indices = @transform_4, window_bounds = array<i64: 128, 128>}, {transform_indices = @transform_5, window_bounds = array<i64: 128, 128>}, {transform_indices = @transform_6, window_bounds = array<i64: 128, 8, 128>}, {transform_indices = @transform_7, window_bounds = array<i64: 128, 8, 128>}, {transform_indices = @transform_8, window_bounds = array<i64: 128, 8, 128>}]} {
    %c0 = arith.constant 0 : index
    %c0_0 = arith.constant 0 : index
    %c0_1 = arith.constant 0 : index
    %0 = vector.load %arg1[%c0, %c0_0, %c0_1] : memref<128x8x128xbf16, #tpu.memory_space<vmem>>, vector<128x8x128xbf16>
    %1 = vector.shape_cast %0 : vector<128x8x128xbf16> to vector<1024x128xbf16>
    %2 = arith.extf %0 : vector<128x8x128xbf16> to vector<128x8x128xf32>
    %cst = arith.constant dense<0.000000e+00> : vector<128x128xf32>
    %3 = vector.multi_reduction <add>, %2, %cst [1] : vector<128x8x128xf32> to vector<128x128xf32>
    %cst_2 = arith.constant 8.000000e+00 : f32
    %4 = vector.broadcast %cst_2 : f32 to vector<128x128xf32>
    %5 = arith.divf %3, %4 : vector<128x128xf32>
    %6 = arith.truncf %5 : vector<128x128xf32> to vector<128x128xbf16>
    %c0_3 = arith.constant 0 : index
    %c0_4 = arith.constant 0 : index
    %7 = vector.load %arg2[%c0_3, %c0_4] : memref<128x128xbf16, #tpu.memory_space<vmem>>, vector<128x128xbf16>
    %cst_5 = arith.constant dense<0.000000e+00> : vector<128x128xf32>
    %8 = tpu.matmul %6, %7, %cst_5 {dimension_numbers = #tpu.dot_dimension_numbers<[1], [0], [0], [1], [0, 0, 1, 1], [], []>} : vector<128x128xbf16>, vector<128x128xbf16>, vector<128x128xf32> -> vector<128x128xf32>
    %c0_6 = arith.constant 0 : index
    %c0_7 = arith.constant 0 : index
    %9 = vector.load %arg6[%c0_6, %c0_7] : memref<128x128xf32, #tpu.memory_space<vmem>>, vector<128x128xf32>
    tpu.vector_store %arg6[%c0_6, %c0_7], %8 {strides = array<i32>} : memref<128x128xf32, #tpu.memory_space<vmem>>, vector<128x128xf32>,
    %c0_8 = arith.constant 0 : index
    %c0_9 = arith.constant 0 : index
    %10 = vector.load %arg3[%c0_8, %c0_9] : memref<128x128xbf16, #tpu.memory_space<vmem>>, vector<128x128xbf16>
    %cst_10 = arith.constant dense<0.000000e+00> : vector<1024x128xf32>
    %11 = tpu.matmul %1, %10, %cst_10 {dimension_numbers = #tpu.dot_dimension_numbers<[1], [0], [0], [1], [0, 0, 1, 1], [], []>} : vector<1024x128xbf16>, vector<128x128xbf16>, vector<1024x128xf32> -> vector<1024x128xf32>
    %12 = vector.shape_cast %11 : vector<1024x128xf32> to vector<128x8x128xf32>
    %13 = arith.truncf %12 : vector<128x8x128xf32> to vector<128x8x128xbf16>
    %c0_11 = arith.constant 0 : index
    %c0_12 = arith.constant 0 : index
    %c0_13 = arith.constant 0 : index
    %14 = vector.load %arg7[%c0_11, %c0_12, %c0_13] : memref<128x8x128xbf16, #tpu.memory_space<vmem>>, vector<128x8x128xbf16>
    tpu.vector_store %arg7[%c0_11, %c0_12, %c0_13], %13 {strides = array<i32>} : memref<128x8x128xbf16, #tpu.memory_space<vmem>>, vector<128x8x128xbf16>,
    %c0_14 = arith.constant 0 : index
    %c0_15 = arith.constant 0 : index
    %15 = vector.load %arg4[%c0_14, %c0_15] : memref<128x128xbf16, #tpu.memory_space<vmem>>, vector<128x128xbf16>
    %cst_16 = arith.constant dense<0.000000e+00> : vector<1024x128xf32>
    %16 = tpu.matmul %1, %15, %cst_16 {dimension_numbers = #tpu.dot_dimension_numbers<[1], [0], [0], [1], [0, 0, 1, 1], [], []>} : vector<1024x128xbf16>, vector<128x128xbf16>, vector<1024x128xf32> -> vector<1024x128xf32>
    %17 = vector.shape_cast %16 : vector<1024x128xf32> to vector<128x8x128xf32>
    %18 = arith.truncf %17 : vector<128x8x128xf32> to vector<128x8x128xbf16>
    %c0_17 = arith.constant 0 : index
    %c0_18 = arith.constant 0 : index
    %c0_19 = arith.constant 0 : index
    %19 = vector.load %arg8[%c0_17, %c0_18, %c0_19] : memref<128x8x128xbf16, #tpu.memory_space<vmem>>, vector<128x8x128xbf16>
    tpu.vector_store %arg8[%c0_17, %c0_18, %c0_19], %18 {strides = array<i32>} : memref<128x8x128xbf16, #tpu.memory_space<vmem>>, vector<128x8x128xbf16>,
    %c0_20 = arith.constant 0 : index
    %c0_21 = arith.constant 0 : index
    %20 = vector.load %arg5[%c0_20, %c0_21] : memref<128x128xbf16, #tpu.memory_space<vmem>>, vector<128x128xbf16>
    %cst_22 = arith.constant dense<0.000000e+00> : vector<1024x128xf32>
    %21 = tpu.matmul %1, %20, %cst_22 {dimension_numbers = #tpu.dot_dimension_numbers<[1], [0], [0], [1], [0, 0, 1, 1], [], []>} : vector<1024x128xbf16>, vector<128x128xbf16>, vector<1024x128xf32> -> vector<1024x128xf32>
    %22 = vector.shape_cast %21 : vector<1024x128xf32> to vector<128x8x128xf32>
    %23 = arith.truncf %22 : vector<128x8x128xf32> to vector<128x8x128xbf16>
    %c0_23 = arith.constant 0 : index
    %c0_24 = arith.constant 0 : index
    %c0_25 = arith.constant 0 : index
    %24 = vector.load %arg9[%c0_23, %c0_24, %c0_25] : memref<128x8x128xbf16, #tpu.memory_space<vmem>>, vector<128x8x128xbf16>
    tpu.vector_store %arg9[%c0_23, %c0_24, %c0_25], %23 {strides = array<i32>} : memref<128x8x128xbf16, #tpu.memory_space<vmem>>, vector<128x8x128xbf16>,
    return
  }
  func.func @transform_0(%arg0: i32) -> (i32, i32, i32) {
    %c0_i32 = arith.constant 0 : i32
    %c0_i32_0 = arith.constant 0 : i32
    %c0_i32_1 = arith.constant 0 : i32
    return %arg0, %c0_i32, %c0_i32_0 : i32, i32, i32
  }
  func.func @transform_1(%arg0: i32) -> (i32, i32) {
    %c0_i32 = arith.constant 0 : i32
    %c0_i32_0 = arith.constant 0 : i32
    %c0_i32_1 = arith.constant 0 : i32
    return %c0_i32, %c0_i32_0 : i32, i32
  }
  func.func @transform_2(%arg0: i32) -> (i32, i32) {
    %c0_i32 = arith.constant 0 : i32
    %c0_i32_0 = arith.constant 0 : i32
    %c0_i32_1 = arith.constant 0 : i32
    return %c0_i32, %c0_i32_0 : i32, i32
  }
  func.func @transform_3(%arg0: i32) -> (i32, i32) {
    %c0_i32 = arith.constant 0 : i32
    %c0_i32_0 = arith.constant 0 : i32
    %c0_i32_1 = arith.constant 0 : i32
    return %c0_i32, %c0_i32_0 : i32, i32
  }
  func.func @transform_4(%arg0: i32) -> (i32, i32) {
    %c0_i32 = arith.constant 0 : i32
    %c0_i32_0 = arith.constant 0 : i32
    %c0_i32_1 = arith.constant 0 : i32
    return %c0_i32, %c0_i32_0 : i32, i32
  }
  func.func @transform_5(%arg0: i32) -> (i32, i32) {
    %c0_i32 = arith.constant 0 : i32
    %c0_i32_0 = arith.constant 0 : i32
    return %arg0, %c0_i32 : i32, i32
  }
  func.func @transform_6(%arg0: i32) -> (i32, i32, i32) {
    %c0_i32 = arith.constant 0 : i32
    %c0_i32_0 = arith.constant 0 : i32
    %c0_i32_1 = arith.constant 0 : i32
    return %arg0, %c0_i32, %c0_i32_0 : i32, i32, i32
  }
  func.func @transform_7(%arg0: i32) -> (i32, i32, i32) {
    %c0_i32 = arith.constant 0 : i32
    %c0_i32_0 = arith.constant 0 : i32
    %c0_i32_1 = arith.constant 0 : i32
    return %arg0, %c0_i32, %c0_i32_0 : i32, i32, i32
  }
  func.func @transform_8(%arg0: i32) -> (i32, i32, i32) {
    %c0_i32 = arith.constant 0 : i32
    %c0_i32_0 = arith.constant 0 : i32
    %c0_i32_1 = arith.constant 0 : i32
    return %arg0, %c0_i32, %c0_i32_0 : i32, i32, i32
  }
}

</mosaic_0001>

<bundles_post_ra>
// kernel: tpu_custom_call.1
= control target key start
LH: loop header
LB: loop body
LE: loop exit
PB: predicated region body
PF: predicated region fallthrough
CT: control target
= control target key end

     0   :  { %s8460_s0 = inlined_call_operand.hbm [shape: bf16[256,8,128], index: 0, kind: input, shape index: {}]   ;;  %s8461_s1 = inlined_call_operand.hbm [shape: bf16[128,128], index: 1, kind: input, shape index: {}]   ;;  %s8462_s2 = inlined_call_operand.hbm [shape: bf16[128,128], index: 2, kind: input, shape index: {}]   ;;  %s8463_s3 = inlined_call_operand.hbm [shape: bf16[128,128], index: 3, kind: input, shape index: {}]   ;;  %s8464_s4 = inlined_call_operand.hbm [shape: bf16[128,128], index: 4, kind: input, shape index: {}]   ;;  %s8465_s5 = inlined_call_operand.hbm [shape: f32[256,128], index: 5, kind: output, shape index: {0}]   ;;  %s8466_s6 = inlined_call_operand.hbm [shape: bf16[256,8,128], index: 6, kind: output, shape index: {1}]   ;;  %s8467_s7 = inlined_call_operand.hbm [shape: bf16[256,8,128], index: 7, kind: output, shape index: {2}]   ;;  %s8468_s8 = inlined_call_operand.hbm [shape: bf16[256,8,128], index: 8, kind: output, shape index: {3}]  }
   0x1   :  { %8472 = sst [smem:[#allocation23_spill]] %s8460_s0 }
   0x2   :  { %8473 = sst [smem:[#allocation24_spill]] %s8461_s1 }
   0x3   :  { %8474 = sst [smem:[#allocation25_spill]] %s8462_s2 }
   0x4   :  { %8475 = sst [smem:[#allocation26_spill]] %s8463_s3 }
   0x5   :  { %8476 = sst [smem:[#allocation27_spill]] %s8464_s4 }
   0x6   :  { %14 = vsyncpa [#allocation3], 0 }
   0x7   :  { %16 = vsyncpa [#allocation3 + $0x1], 0 }
   0x8   :  { %17 = vsyncpa [#allocation6], 0 }
   0x9   :  { %18 = vsyncpa [#allocation9], 0 }
   0xa   :  { %19 = vsyncpa [#allocation4], 0 }
   0xb   :  { %21 = vsyncpa [#allocation4 + $0x1], 0 }
   0xc   :  { %22 = vsyncpa [#allocation13], 0 }
   0xd   :  { %24 = vsyncpa [#allocation13 + $0x1], 0 }
   0xe   :  { %25 = vsyncpa [#allocation16], 0 }
   0xf   :  { %27 = vsyncpa [#allocation16 + $0x1], 0  ;;  %s7051_s27 = smov 0   ;;  %s7053_s28 = smov 0  }
  0x10   :  { %s7055_s29 = smov 0   ;;  %s7057_s30 = smov 0  }
  0x11 LB: > { %s7072_s9 = sadd.s32 4294967295, %s6993_s30   ;;  %s8469_s10 = sadd.s32 4294967294, %s6993_s30   ;;  %s6993_s30 = sphi %s7057_s30, %s8495_s30   ;;  %s6989_s29 = sphi %s7055_s29, %s8494_s29   ;;  %s6985_s28 = sphi %s7053_s28, %s8493_s28   ;;  %s6981_s27 = sphi %s7051_s27, %s8492_s27  }
  0x12   : > { %p53_p0 = scmp.ne.s32.totalorder %s6985_s28, %s6981_s27  ;;  %p54_p1 = scmp.eq.s32.totalorder %s7072_s9, 0 }
  0x13   : > { %p161_p2 = scmp.eq.s32.totalorder %s7072_s9, 1  ;;  %p167_p3 = scmp.eq.s32.totalorder %s8469_s10, 1 }
  0x14   : > { %p7083_p4 = por %p54_p1, %p53_p0  ;;  %p4853_p5 = scmp.ge.s32.totalorder %s6993_s30, 1 }
  0x15   : > { %p7088_p6 = por %p167_p3, %p53_p0  ;;  %p252_p7 = scmp.lt.s32.totalorder %s6993_s30, 3 }
  0x16   : > { %s8479_s1 = sld [smem:[#allocation24_spill]]  ;;  %s6995_s17 = smov [#allocation5]  }
  0x17   : > { %p7096_p8 = pnand %p4853_p5, %p252_p7  ;;  %s265_s18 = sshll.u32 %s6995_s17, 4  ;;  %s266_s18 = int_to_ptr.vmem [resolvable:$true] %s265_s18 }
  0x18   : > { %s8482_s3 = sld [smem:[#allocation26_spill]]  ;;  %s8470_s23 = smov 64  }
  0x19   : > { %p6570_p9 = pneg %p7096_p8  ;;  %s8471_s24 = smov 4  }
  0x1a   : > { %s6998_s25 = smov [#allocation8]   ;;  %s8483_s2 = sld [smem:[#allocation25_spill]] }
  0x1b   : > { %p7104_p10 = pnand %p6570_p9, %p54_p1  ;;  %s293_s26 = sshll.u32 %s6998_s25, 4  ;;  %s294_s26 = int_to_ptr.vmem [resolvable:$true] %s293_s26 }
  0x1c   : > { %s263_s15 = sshll.u32 %s8479_s1, 4  ;;  %s8484_s4 = sld [smem:[#allocation27_spill]]  ;;  %s264_s15 = int_to_ptr.hbm [resolvable:$true] %s263_s15 }
  0x1d   : > { %6573 = dma.hbm_to_vmem [thread:$0]  (!%p7104_p10), %s264_s15, 1024, %s266_s18, [#allocation6], %s8470_s23, %s8470_s23, %s8471_s24  }
  0x1e   : > { %s291_s22 = sshll.u32 %s8482_s3, 4  ;;  %s6999_s21 = smov [#allocation7]   ;;  %s292_s22 = int_to_ptr.hbm [resolvable:$true] %s291_s22 }
  0x1f   : > { %6579 = dma.hbm_to_vmem [thread:$0]  (!%p7104_p10), %s292_s22, 1024, %s294_s26, [#allocation9], %s8470_s23, %s8470_s23, %s8471_s24  }
  0x20   : > { %s277_s17 = sshll.u32 %s8483_s2, 4  ;;  %s279_s25 = sshll.u32 %s6999_s21, 4  ;;  %s278_s17 = int_to_ptr.hbm [resolvable:$true] %s277_s17  ;;  %s280_s25 = int_to_ptr.vmem [resolvable:$true] %s279_s25 }
  0x21   : > { %6576 = dma.hbm_to_vmem [thread:$0]  (!%p7104_p10), %s278_s17, 1024, %s280_s25, [#allocation6], %s8470_s23, %s8470_s23, %s8471_s24  }
  0x22   : > { %s305_s20 = sshll.u32 %s8484_s4, 4  ;;  %s7000_s13 = smov [#allocation10]   ;;  %s306_s20 = int_to_ptr.hbm [resolvable:$true] %s305_s20 }
  0x23   : > { %s307_s22 = sshll.u32 %s7000_s13, 4  ;;  %s7139_s26 = sadd.s32 1, %s6993_s30   ;;  %s308_s22 = int_to_ptr.vmem [resolvable:$true] %s307_s22 }
  0x24   : > { %6582 = dma.hbm_to_vmem [thread:$0]  (!%p7104_p10), %s306_s20, 1024, %s308_s22, [#allocation9], %s8470_s23, %s8470_s23, %s8471_s24  }
  0x25   : > { %s40_s14 = sadd.s32 1, %s6989_s29  ;;  %s37_s15 = ssub.s32 %s6993_s30, %s7139_s26 }
  0x26   : > { %p47_p12 = scmp.ne.s32.totalorder %s6989_s29, %s6985_s28  ;;  %p38_p13 = scmp.eq.s32.totalorder %s37_s15, 0 }
  0x27   : > { %p48_p0 = scmp.eq.s32.totalorder %s6993_s30, 0  ;;  %p6604_p5 = scmp.lt.s32.totalorder %s6993_s30, 2 }
  0x28   : > { %p7149_p3 = por %p161_p2, %p47_p12  ;;  %s321_s19 = sand.u32 1, %s6989_s29  }
  0x29   : > { %s7155_s18 = scalar_select %p38_p13, %s6989_s29, %s40_s14  }
  0x2a   : > { %p49_p7 = por %p48_p0, %p47_p12  ;;  %s4859_s21 = sshll.u32 %s321_s19, 9 }
  0x2b   : > { %s5270_s20 = sshll.u32 %s6993_s30, 9  ;;  %s8486_s0 = sld [smem:[#allocation23_spill]] }
  0x2c   : > { %s325_s10 = scalar_lea.vmem [#allocation2], %s4859_s21  ;;  %p7162_p2 = pnand %p6604_p5, %p49_p7 }
  0x2d   : > { %s333_s23 = sshll.u32 %s325_s10, 4  ;;  %s322_s14 = scalar_lea.sflag [#allocation3], %s321_s19  ;;  %s334_s23 = int_to_ptr.vmem [resolvable:$true] %s333_s23 }
  0x2e   : > { %p6801_p10 = pneg %p7162_p2 }
  0x31   : > { %s330_s22 = scalar_lea.hbm %s8486_s0, %s5270_s20  ;;  %s6804_s10 = scalar_lea.hbm %s8486_s0, 1024 }
  0x32   : > { %s331_s15 = sshll.u32 %s330_s22, 4  ;;  %s332_s15 = int_to_ptr.hbm [resolvable:$true] %s331_s15 }
  0x33   : > { %s6797_s1 = sshra.s32 %s332_s15, 4  ;;  %s6798_s1 = int_to_ptr.hbm [resolvable:$true] %s6797_s1 }
  0x34   : > { %s6799_s2 = scalar_lea.hbm %s6798_s1, 512  ;;  %p6805_p0 = scmp.lt.s32.totalorder %s6798_s1, %s8486_s0 }
  0x35   : > { %p6800_p9 = scmp.ne.s32.totalorder %s6798_s1, %s6799_s2  ;;  %p6806_p5 = scmp.lt.s32.totalorder %s6804_s10, %s6799_s2 }
  0x37   : > { %p6802_p12 = pnand %p6801_p10, %p6800_p9  ;;  %p6807_p7 = por %p6806_p5, %p6805_p0 }
  0x39   : > { %p6803_p13 = pneg %p6802_p12 }
  0x3b   : > { %p6808_p11 = pnand %p6807_p7, %p6803_p13 }
  0x3d   : > { %6811 = shalt.err (!%p6808_p11)
}
  0x3e   : > { %s8488_s19 = smov 4   ;;  %s8489_s22 = smov 64  }
  0x3f   : > { %6586 = dma.hbm_to_vmem [thread:$0]  (!%p7162_p2), %s332_s15, 8192, %s334_s23, %s322_s14, %s8489_s22, %s8489_s22, %s8488_s19  }
  0x40   : > { %345 = sbr.rel (%p7096_p8) target bundleno = 1250 (0x4e2), region = 40  ;;  %s7182_s20 = sand.u32 (!%p7096_p8), 1, %s6985_s28  }
  0x41   : > { %s7185_s1 = sshll.u32 (!%p7096_p8), %s7182_s20, 9  ;;  %s348_s2 = scalar_lea.sflag (!%p7096_p8), [#allocation3], %s7182_s20 }
  0x42   : > { %s7189_s21 = scalar_lea.vmem (!%p7096_p8), [#allocation2], %s7185_s1 }
  0x45   : > { %6956 = dma.done.wait (%p7083_p4), %s348_s2, 8192  }
  0x46   : > { %6958 = vsyncadd (%p7083_p4), %s348_s2, 4294959104 }
  0x47   : > { %6960 = dma.done.wait (%p54_p1), [#allocation6], 2048  }
  0x48   : > { %6962 = vsyncadd (%p54_p1), [#allocation6], 4294965248 }
  0x49   : > { %6964 = dma.done.wait (%p54_p1), [#allocation9], 2048  }
  0x4a   : > { %6966 = vsyncadd (%p54_p1), [#allocation9], 4294965248  ;;  %v7001_v0 = vmov 8.0   ;;  %v5342_v2 = vld [vmem:[#allocation5 + $0x38] sm:$0xff]  ;;  %v5341_v7 = vld [vmem:[#allocation5 + $0x30] sm:$0xff]  ;;  %vm1984_vm1 = vcmask 1041409  }
  0x4b   : > { %6653 = vrcp.f32 %v7001_v0  ;;  %v7203_v3 = vld [vmem:[#allocation7 + $0x38] sm:$0xff]  ;;  %2167 = vmatpush.bf16.msra.mxu0 %v5342_v2  ;;  %v7208_v8 = vld [vmem:[#allocation7 + $0x30] sm:$0xff]  ;;  %v5340_v13 = vld [vmem:[#allocation5 + $0x28] sm:$0xff]  ;;  %vm1986_vm2 = vcmask 1042434   ;;  %vm1988_vm3 = vcmask 1043459   ;;  %vm1990_vm4 = vcmask 1044484  }
  0x4c   : > { %v7205_v4 = vld [vmem:[#allocation8 + $0x38] sm:$0xff]  ;;  %6520 = vmatpush.bf16.msra.mxu1 %v7203_v3  ;;  %v7211_v9 = vld [vmem:[#allocation8 + $0x30] sm:$0xff]  ;;  %v7214_v14 = vld [vmem:[#allocation7 + $0x28] sm:$0xff]  ;;  %vm1992_vm5 = vcmask 1045509   ;;  %vm1994_vm6 = vcmask 1046534   ;;  %vm1996_vm7 = vcmask 1047559  }
  0x4d   : > { %v5366_v5 = vld [vmem:[#allocation10 + $0x38] sm:$0xff]  ;;  %6528 = vmatpush.bf16.msra.mxu2 %v7205_v4  ;;  %v5365_v10 = vld [vmem:[#allocation10 + $0x30] sm:$0xff]  ;;  %v7217_v15 = vld [vmem:[#allocation8 + $0x28] sm:$0xff]  ;;  %s4868_s11 = sshll.u32 %s7182_s20, 7  ;;  %s8013_s23 = scalar_lea.vmem [#allocation12], %s7185_s1 }
  0x4e   : > { %6536 = vmatpush.bf16.msra.mxu3 %v5366_v5  ;;  %v5364_v16 = vld [vmem:[#allocation10 + $0x28] sm:$0xff]  ;;  %v5339_v17 = vld [vmem:[#allocation5 + $0x20] sm:$0xff]  ;;  %v429_v24 = vld [vmem:[%s7189_s21 + $0x10] sm:$0xff]   ;;  %s7962_s16 = scalar_lea.vmem [#allocation11], %s4868_s11  ;;  %s8019_s24 = scalar_lea.vmem [#allocation14], %s7185_s1 }
  0x4f   : > { %2168 = vmatpush.bf16.msra.mxu0 %v5341_v7  ;;  %v7219_v18 = vld [vmem:[#allocation7 + $0x20] sm:$0xff]  ;;  %v427_v23 = vld [vmem:[%s7189_s21 + $0x8] sm:$0xff]   ;;  %v431_v25 = vld [vmem:[%s7189_s21 + $0x18] sm:$0xff]   ;;  %v557_v33 = vunpack.c.l.bf16 %v429_v24  ;;  %v558_v34 = vunpack.c.h.bf16 %v429_v24  ;;  %s8025_s15 = scalar_lea.vmem [#allocation15], %s7185_s1  ;;  %s5367_s14 = sshll.u32 %s7072_s9, 7 }
  0x50   : > { %6521 = vmatpush.bf16.msra.mxu1 %v7208_v8  ;;  %v7222_v20 = vld [vmem:[#allocation8 + $0x20] sm:$0xff]  ;;  %v7233_v29 = vld [vmem:[%s7189_s21 + $0x28] sm:$0xff]   ;;  %v7236_v30 = vld [vmem:[%s7189_s21 + $0x30] sm:$0xff]   ;;  %v555_v31 = vunpack.c.l.bf16 %v427_v23  ;;  %v556_v32 = vunpack.c.h.bf16 %v427_v23  ;;  %v559_v36 = vunpack.c.l.bf16 %v431_v25  ;;  %v560_v37 = vunpack.c.h.bf16 %v431_v25  ;;  %s4590_s13 = scalar_lea.hbm %s8465_s5, %s5367_s14  ;;  %s4591_s19 = sshll.u32 %s7962_s16, 4  ;;  %s4592_s19 = int_to_ptr.vmem [resolvable:$true] %s4591_s19 }
  0x51   : > { %v6654_v1 = vpop.eup %6653  ;;  %6529 = vmatpush.bf16.msra.mxu2 %v7211_v9  ;;  %v5363_v21 = vld [vmem:[#allocation10 + $0x20] sm:$0xff]  ;;  %v7239_v35 = vld [vmem:[%s7189_s21 + $0x38] sm:$0xff]   ;;  %v563_v43 = vunpack.c.l.bf16 %v7233_v29  ;;  %v564_v44 = vunpack.c.h.bf16 %v7233_v29  ;;  %v565_v45 = vunpack.c.l.bf16 %v7236_v30  ;;  %v566_v48 = vunpack.c.h.bf16 %v7236_v30  ;;  %v5337_v60 = vld [vmem:[#allocation5 + $0x10] sm:$0xff]  ;;  %s4593_s22 = sshll.u32 %s4590_s13, 4  ;;  %s4564_s1 = scalar_lea.sflag [#allocation4], %s7182_s20  ;;  %s4594_s22 = int_to_ptr.hbm [resolvable:$true] %s4593_s22 }
  0x52   : > { %v1450_v6 = vmul.f32 8.0, %v6654_v1  ;;  %6537 = vmatpush.bf16.msra.mxu3 %v5365_v10  ;;  %v425_v22 = vld [vmem:[%s7189_s21] sm:$0xff]   ;;  %vm1454_vm0 = vweird.f32 %v6654_v1  ;;  %v5338_v40 = vld [vmem:[#allocation5 + $0x18] sm:$0xff]  ;;  %v567_v49 = vunpack.c.l.bf16 %v7239_v35  ;;  %v693_v52 = vrot.slane %v555_v31, 4  ;;  %v7258_v61 = vld [vmem:[#allocation7 + $0x10] sm:$0xff]  ;;  %s6841_s2 = sshra.s32 %s4594_s22, 4  ;;  %s6842_s2 = int_to_ptr.hbm [resolvable:$true] %s6841_s2 }
  0x53   : > { %2169 = vmatpush.bf16.msra.mxu0 %v5340_v13  ;;  %v553_v26 = vunpack.c.l.bf16 %v425_v22  ;;  %v554_v27 = vunpack.c.h.bf16 %v425_v22  ;;  %v7230_v28 = vld [vmem:[%s7189_s21 + $0x20] sm:$0xff]   ;;  %v7246_v41 = vld [vmem:[#allocation7 + $0x18] sm:$0xff]  ;;  %v699_v53 = vrot.slane %v556_v32, 4  ;;  %v705_v54 = vrot.slane %v557_v33, 4  ;;  %v7263_v2 = vld [vmem:[#allocation8 + $0x10] sm:$0xff]  ;;  %s6847_s3 = scalar_lea.hbm %s8465_s5, 256  ;;  %p6848_p11 = scmp.lt.s32.totalorder %s6842_s2, %s8465_s5 }
  0x54   : > { %v1451_v11 = vsub.f32 1.0, %v1450_v6  ;;  %6522 = vmatpush.bf16.msra.mxu1 %v7214_v14  ;;  %v561_v38 = vunpack.c.l.bf16 %v7230_v28  ;;  %v562_v42 = vunpack.c.h.bf16 %v7230_v28  ;;  %v7253_v46 = vld [vmem:[#allocation8 + $0x18] sm:$0xff]  ;;  %v711_v55 = vrot.slane %v558_v34, 4  ;;  %v5361_v5 = vld [vmem:[#allocation10 + $0x10] sm:$0xff]  ;;  %v5336_v24 = vld [vmem:[#allocation5 + $0x8] sm:$0xff] }
  0x55   : > { %6530 = vmatpush.bf16.msra.mxu2 %v7217_v15  ;;  %v5362_v47 = vld [vmem:[#allocation10 + $0x18] sm:$0xff]  ;;  %v681_v50 = vrot.slane %v553_v26, 4  ;;  %v687_v51 = vrot.slane %v554_v27, 4  ;;  %v717_v58 = vrot.slane %v559_v36, 4  ;;  %v723_v59 = vrot.slane %v560_v37, 4  ;;  %v7266_v25 = vld [vmem:[#allocation7 + $0x8] sm:$0xff] }
  0x56   : > { %v1452_v12 = vmul.f32 %v6654_v1, %v1451_v11  ;;  %6538 = vmatpush.bf16.msra.mxu3 %v5364_v16  ;;  %v694_v62 = vadd.f32 %v693_v52, %v555_v31  ;;  %v700_v63 = vadd.f32 %v699_v53, %v556_v32  ;;  %v706_v0 = vadd.f32 %v705_v54, %v557_v33  ;;  %v7269_v33 = vld [vmem:[#allocation8 + $0x8] sm:$0xff] }
  0x57   : > { %2170 = vmatpush.bf16.msra.mxu0 %v5339_v17  ;;  %v682_v56 = vadd.f32 %v681_v50, %v553_v26  ;;  %v688_v57 = vadd.f32 %v687_v51, %v554_v27  ;;  %v712_v10 = vadd.f32 %v711_v55, %v558_v34  ;;  %v718_v11 = vadd.f32 %v717_v58, %v559_v36  ;;  %v5360_v34 = vld [vmem:[#allocation10 + $0x8] sm:$0xff]  ;;  %v5335_v58 = vld [vmem:[#allocation5] sm:$0xff] }
  0x58   : > { %v1453_v19 = vadd.f32 %v6654_v1, %v1452_v12  ;;  %6523 = vmatpush.bf16.msra.mxu1 %v7219_v18  ;;  %v695_v12 = vrot.slane %v694_v62, 2  ;;  %v701_v13 = vrot.slane %v700_v63, 2  ;;  %v707_v16 = vrot.slane %v706_v0, 2 }
  0x59   : > { %6531 = vmatpush.bf16.msra.mxu2 %v7222_v20  ;;  %v683_v6 = vrot.slane %v682_v56, 2  ;;  %v689_v7 = vrot.slane %v688_v57, 2  ;;  %v724_v17 = vadd.f32 %v723_v59, %v560_v37  ;;  %v713_v22 = vrot.slane %v712_v10, 2  ;;  %v7276_v59 = vld [vmem:[#allocation7] sm:$0xff] }
  0x5a   : > { %v7243_v39 = vsel %vm1454_vm0, %v6654_v1, %v1453_v19  ;;  %6539 = vmatpush.bf16.msra.mxu3 %v5363_v21  ;;  %v729_v1 = vrot.slane %v561_v38, 4  ;;  %v719_v23 = vrot.slane %v718_v11, 2  ;;  %v696_v26 = vadd.f32 %v695_v12, %v694_v62 }
  0x5b   : > { %2171 = vmatpush.bf16.msra.mxu0 %v5338_v40  ;;  %v684_v19 = vadd.f32 %v683_v6, %v682_v56  ;;  %v690_v21 = vadd.f32 %v689_v7, %v688_v57  ;;  %v702_v27 = vadd.f32 %v701_v13, %v700_v63  ;;  %v708_v31 = vadd.f32 %v707_v16, %v706_v0  ;;  %v5359_v6 = vld [vmem:[#allocation10] sm:$0xff] }
  0x5c   : > { %6524 = vmatpush.bf16.msra.mxu1 %v7246_v41  ;;  %v725_v32 = vrot.slane %v724_v17, 2  ;;  %v714_v40 = vadd.f32 %v713_v22, %v712_v10  ;;  %v697_v50 = vrot.slane %v696_v26, 1  ;;  %v735_v12 = vrot.slane %v562_v42, 4 }
  0x5d   : > { %6532 = vmatpush.bf16.msra.mxu2 %v7253_v46  ;;  %v685_v36 = vrot.slane %v684_v19, 1  ;;  %v691_v37 = vrot.slane %v690_v21, 1  ;;  %v703_v51 = vrot.slane %v702_v27, 1  ;;  %v709_v52 = vrot.slane %v708_v31, 1 }
  0x5e   : > { %6540 = vmatpush.bf16.msra.mxu3 %v5362_v47  ;;  %v720_v47 = vadd.f32 %v719_v23, %v718_v11  ;;  %v726_v53 = vadd.f32 %v725_v32, %v724_v17  ;;  %v715_v56 = vrot.slane %v714_v40, 1  ;;  %v7279_v62 = vadd.f32 %v697_v50, %v696_v26  ;;  %v5285_v23 = vld [vmem:[%s7189_s21 + $0x70] sm:$0xff] }
  0x5f   : > { %2172 = vmatpush.bf16.msra.mxu0 %v5337_v60  ;;  %v7271_v54 = vadd.f32 %v685_v36, %v684_v19  ;;  %v7273_v55 = vadd.f32 %v691_v37, %v690_v21  ;;  %v568_v60 = vunpack.c.h.bf16 %v7239_v35  ;;  %v7281_v63 = vadd.f32 %v703_v51, %v702_v27 }
  0x60   : > { %6525 = vmatpush.bf16.msra.mxu1 %v7258_v61  ;;  %v721_v57 = vrot.slane %v720_v47, 1  ;;  %v7283_v0 = vadd.f32 %v709_v52, %v708_v31  ;;  %v7288_v7 = vadd.f32 %v715_v56, %v714_v40  ;;  %v727_v10 = vrot.slane %v726_v53, 1 }
  0x61   : > { %6533 = vmatpush.bf16.msra.mxu2 %v7263_v2  ;;  %v730_v11 = vadd.f32 %v729_v1, %v561_v38  ;;  %v741_v16 = vrot.slane %v563_v43, 4  ;;  %v747_v17 = vrot.slane %v564_v44, 4  ;;  %v753_v19 = vrot.slane %v565_v45, 4 }
  0x62   : > { %6541 = vmatpush.bf16.msra.mxu3 %v5361_v5  ;;  %v7286_v5 = vld [vmem:[#allocation8] sm:$0xff]  ;;  %v7294_v13 = vadd.f32 %v721_v57, %v720_v47  ;;  %v736_v22 = vadd.f32 %v735_v12, %v562_v42  ;;  %v759_v38 = vrot.slane %v566_v48, 4  ;;  %v765_v1 = vrot.slane %v567_v49, 4 }
  0x63   : > { %2173 = vmatpush.bf16.msra.mxu0 %v5336_v24  ;;  %v731_v21 = vrot.slane %v730_v11, 2  ;;  %v742_v24 = vadd.f32 %v741_v16, %v563_v43  ;;  %v748_v26 = vadd.f32 %v747_v17, %v564_v44  ;;  %v754_v28 = vadd.f32 %v753_v19, %v565_v45 }
  0x64   : > { %6526 = vmatpush.bf16.msra.mxu1 %v7266_v25  ;;  %v771_v42 = vrot.slane %v568_v60, 4  ;;  %v737_v31 = vrot.slane %v736_v22, 2  ;;  %v760_v32 = vadd.f32 %v759_v38, %v566_v48  ;;  %v728_v30 = vadd.f32 %v727_v10, %v726_v53 }
  0x65   : > { %6534 = vmatpush.bf16.msra.mxu2 %v7269_v33  ;;  %v732_v27 = vadd.f32 %v731_v21, %v730_v11  ;;  %v743_v36 = vrot.slane %v742_v24, 2  ;;  %v749_v43 = vrot.slane %v748_v26, 2  ;;  %v755_v37 = vrot.slane %v754_v28, 2 }
  0x66   : > { %6542 = vmatpush.bf16.msra.mxu3 %v5360_v34  ;;  %v766_v34 = vadd.f32 %v765_v1, %v567_v49  ;;  %v772_v29 = vadd.f32 %v771_v42, %v568_v60  ;;  %v738_v45 = vadd.f32 %v737_v31, %v736_v22  ;;  %v761_v40 = vrot.slane %v760_v32, 2 }
  0x67   : > { %2174 = vmatpush.bf16.msra.mxu0 %v5335_v58  ;;  %v733_v44 = vrot.slane %v732_v27, 1  ;;  %v744_v50 = vadd.f32 %v743_v36, %v742_v24  ;;  %v750_v51 = vadd.f32 %v749_v43, %v748_v26  ;;  %v756_v52 = vadd.f32 %v755_v37, %v754_v28 }
  0x68   : > { %6527 = vmatpush.bf16.msra.mxu1 %v7276_v59  ;;  %v767_v47 = vrot.slane %v766_v34, 2  ;;  %v773_v56 = vrot.slane %v772_v29, 2  ;;  %v739_v35 = vrot.slane %v738_v45, 1  ;;  %v762_v48 = vadd.f32 %v761_v40, %v760_v32 }
  0x69   : > { %6535 = vmatpush.bf16.msra.mxu2 %v7286_v5  ;;  %v745_v57 = vrot.slane %v744_v50, 1  ;;  %v751_v58 = vrot.slane %v750_v51, 1  ;;  %v757_v60 = vrot.slane %v756_v52, 1  ;;  %v1456_v53 = vmul.f32 %v7243_v39, %v7271_v54 }
  0x6a   : > { %6543 = vmatpush.bf16.msra.mxu3 %v5359_v6  ;;  %v768_v49 = vadd.f32 %v767_v47, %v766_v34  ;;  %v774_v6 = vadd.f32 %v773_v56, %v772_v29  ;;  %v740_v11 = vadd.f32 %v739_v35, %v738_v45  ;;  %v763_v12 = vrot.slane %v762_v48, 1 }
  0x6b   : > { %2680 = vmatpush.bf16.msrb.mxu0 %v7203_v3  ;;  %2758 = vmatmul.bf16.vlgmr.msra.gmra.mxu1 %v5285_v23  ;;  %v734_v3 = vadd.f32 %v733_v44, %v732_v27  ;;  %v746_v17 = vadd.f32 %v745_v57, %v744_v50  ;;  %v752_v19 = vadd.f32 %v751_v58, %v750_v51 }
  0x6c   : > { %3407 = vmatmul.bf16.vlgmr.msra.gmra.mxu2 %v5285_v23  ;;  %v769_v16 = vrot.slane %v768_v49, 1  ;;  %v758_v21 = vadd.f32 %v757_v60, %v756_v52  ;;  %v775_v22 = vrot.slane %v774_v6, 1  ;;  %v764_v38 = vadd.f32 %v763_v12, %v762_v48 }
  0x6d   : > { %4056 = vmatmul.bf16.vlgmr.msra.gmra.mxu3 %v5285_v23  ;;  %v1457_v10 = vmul.f32 %v7243_v39, %v7273_v55  ;;  %v1459_v24 = vmul.f32 %v7243_v39, %v7281_v63  ;;  %v1460_v26 = vmul.f32 %v7243_v39, %v7283_v0  ;;  %v1461_v28 = vmul.f32 %v7243_v39, %v7288_v7 }
  0x6e   : > { %v770_v1 = vadd.f32 %v769_v16, %v768_v49  ;;  %v776_v23 = vadd.f32 %v775_v22, %v774_v6  ;;  %v1462_v54 = vmul.f32 %v7243_v39, %v7294_v13  ;;  %v1464_v55 = vmul.f32 %v7243_v39, %v734_v3  ;;  %v441_v22 = vld [vmem:[%s7189_s21 + $0x40] sm:$0xff]  }
  0x6f   : > { %2681 = vmatpush.bf16.msrb.mxu0 %v7208_v8  ;;  %v1458_v8 = vmul.f32 %v7243_v39, %v7279_v62  ;;  %v1465_v42 = vmul.f32 %v7243_v39, %v740_v11  ;;  %v1463_v62 = vmul.f32 %v7243_v39, %v728_v30  ;;  %v1466_v27 = vmul.f32 %v7243_v39, %v746_v17 }
  0x70   : > { %v1467_v63 = vmul.f32 %v7243_v39, %v752_v19  ;;  %v1468_v0 = vmul.f32 %v7243_v39, %v758_v21  ;;  %v1470_v31 = vmul.f32 %v7243_v39, %v770_v1  ;;  %v1471_v7 = vmul.f32 %v7243_v39, %v776_v23  ;;  %v445_v23 = vld [vmem:[%s7189_s21 + $0x50] sm:$0xff]  }
  0x71   : > { %v1584_v32 = vpack.c.bf16 %v1456_v53, %v1456_v53  ;;  %v1585_v13 = vpack.c.bf16 %v1457_v10, %v1457_v10  ;;  %v1586_v34 = vpack.c.bf16 %v1458_v8, %v1458_v8  ;;  %v1587_v36 = vpack.c.bf16 %v1459_v24, %v1459_v24 }
  0x72   : > { %v1588_v43 = vpack.c.bf16 %v1460_v26, %v1460_v26  ;;  %v1589_v37 = vpack.c.bf16 %v1461_v28, %v1461_v28  ;;  %v1590_v29 = vpack.c.bf16 %v1462_v54, %v1462_v54  ;;  %v1592_v44 = vpack.c.bf16 %v1464_v55, %v1464_v55  ;;  %v447_v26 = vld [vmem:[%s7189_s21 + $0x58] sm:$0xff]   ;;  %v7362_v55 = vld [vmem:[%s7189_s21 + $0x60] sm:$0xff]  }
  0x73   : > { %2682 = vmatpush.bf16.msrb.mxu0 %v7214_v14  ;;  %v1469_v14 = vmul.f32 %v7243_v39, %v764_v38  ;;  %v1593_v45 = vpack.c.bf16 %v1465_v42, %v1465_v42  ;;  %v1591_v40 = vpack.c.bf16 %v1463_v62, %v1463_v62  ;;  %v1594_v47 = vpack.c.bf16 %v1466_v27, %v1466_v27 }
  0x74   : > { %v1595_v50 = vpack.c.bf16 %v1467_v63, %v1467_v63  ;;  %v1596_v51 = vpack.c.bf16 %v1468_v0, %v1468_v0  ;;  %v1598_v56 = vpack.c.bf16 %v1470_v31, %v1470_v31  ;;  %v1599_v30 = vpack.c.bf16 %v1471_v7, %v1471_v7  ;;  %v7367_v0 = vld [vmem:[%s7189_s21 + $0x68] sm:$0xff]  }
  0x75   : > { %v1597_v52 = vpack.c.bf16 %v1469_v14, %v1469_v14  ;;  %v1856_v35 = vunpack.c.l.b16 %v1584_v32  ;;  %v1857_v48 = vunpack.c.l.b16 %v1585_v13  ;;  %v1858_v49 = vunpack.c.l.b16 %v1586_v34  ;;  %v7373_v13 = vld [vmem:[%s7189_s21 + $0x70] sm:$0xff]   ;;  %v7376_v34 = vld [vmem:[%s7189_s21 + $0x78] sm:$0xff]  }
  0x76   : > { %v1859_v57 = vunpack.c.l.b16 %v1587_v36  ;;  %v1860_v58 = vunpack.c.l.b16 %v1588_v43  ;;  %v1862_v60 = vunpack.c.l.b16 %v1590_v29  ;;  %v1864_v6 = vunpack.c.l.b16 %v1592_v44 }
  0x77   : > { %2683 = vmatpush.bf16.msrb.mxu0 %v7219_v18  ;;  %v1861_v18 = vunpack.c.l.b16 %v1589_v37  ;;  %v1865_v3 = vunpack.c.l.b16 %v1593_v45  ;;  %v1863_v11 = vunpack.c.l.b16 %v1591_v40  ;;  %v1866_v12 = vunpack.c.l.b16 %v1594_v47 }
  0x78   : > { %v1867_v16 = vunpack.c.l.b16 %v1595_v50  ;;  %v1868_v17 = vunpack.c.l.b16 %v1596_v51  ;;  %v1869_v19 = vunpack.c.l.b16 %v1597_v52  ;;  %v1870_v21 = vunpack.c.l.b16 %v1598_v56 }
  0x79   : > { %v1871_v38 = vunpack.c.l.b16 %v1599_v30  ;;  %v1985_v1 = vsel %vm1984_vm1, %v1857_v48, %v1856_v35  ;;  %v1998_v10 = vsel %vm1984_vm1, %v1865_v3, %v1864_v6  ;;  %v569_v28 = vunpack.c.l.bf16 %v441_v22 }
  0x7a   : > { %v1987_v53 = vsel %vm1986_vm2, %v1858_v49, %v1985_v1  ;;  %v1999_v24 = vsel %vm1986_vm2, %v1866_v12, %v1998_v10  ;;  %v570_v42 = vunpack.c.h.bf16 %v441_v22  ;;  %v573_v31 = vunpack.c.l.bf16 %v445_v23 }
  0x7b   : > { %2684 = vmatpush.bf16.msrb.mxu0 %v7246_v41  ;;  %v443_v41 = vld [vmem:[%s7189_s21 + $0x48] sm:$0xff]   ;;  %v1989_v8 = vsel %vm1988_vm3, %v1859_v57, %v1987_v53  ;;  %v574_v36 = vunpack.c.h.bf16 %v445_v23  ;;  %v575_v43 = vunpack.c.l.bf16 %v447_v26  ;;  %v576_v44 = vunpack.c.h.bf16 %v447_v26 }
  0x7c   : > { %v1991_v54 = vsel %vm1990_vm4, %v1860_v58, %v1989_v8  ;;  %v571_v62 = vunpack.c.l.bf16 %v443_v41  ;;  %v572_v14 = vunpack.c.h.bf16 %v443_v41  ;;  %v577_v45 = vunpack.c.l.bf16 %v7362_v55 }
  0x7d   : > { %v1993_v27 = vsel %vm1992_vm5, %v1861_v18, %v1991_v54  ;;  %v579_v47 = vunpack.c.l.bf16 %v7367_v0  ;;  %v580_v50 = vunpack.c.h.bf16 %v7367_v0  ;;  %v581_v52 = vunpack.c.l.bf16 %v7373_v13 }
  0x7e   : > { %v1995_v7 = vsel %vm1994_vm6, %v1862_v60, %v1993_v27  ;;  %v582_v56 = vunpack.c.h.bf16 %v7373_v13  ;;  %v583_v30 = vunpack.c.l.bf16 %v7376_v34  ;;  %v777_v35 = vrot.slane %v569_v28, 4 }
  0x7f   : > { %2685 = vmatpush.bf16.msrb.mxu0 %v7258_v61  ;;  %v2000_v61 = vsel %vm1988_vm3, %v1867_v16, %v1999_v24  ;;  %v1997_v37 = vsel %vm1996_vm7, %v1863_v11, %v1995_v7  ;;  %v783_v48 = vrot.slane %v570_v42, 4  ;;  %v789_v49 = vrot.slane %v571_v62, 4 }
  0x80   : > { %v2001_v63 = vsel %vm1990_vm4, %v1868_v17, %v2000_v61  ;;  %v795_v57 = vrot.slane %v572_v14, 4  ;;  %v801_v58 = vrot.slane %v573_v31, 4  ;;  %v807_v18 = vrot.slane %v574_v36, 4 }
  0x81   : > { %v2002_v32 = vsel %vm1992_vm5, %v1869_v19, %v2001_v63  ;;  %v813_v60 = vrot.slane %v575_v43, 4  ;;  %v819_v6 = vrot.slane %v576_v44, 4  ;;  %v778_v3 = vadd.f32 %v777_v35, %v569_v28 }
  0x82   : > { %v2003_v29 = vsel %vm1994_vm6, %v1870_v21, %v2002_v32  ;;  %v784_v11 = vadd.f32 %v783_v48, %v570_v42  ;;  %v790_v12 = vadd.f32 %v789_v49, %v571_v62  ;;  %v796_v16 = vadd.f32 %v795_v57, %v572_v14  ;;  %v5286_v49 = vld [vmem:[%s7189_s21 + $0x78] sm:$0xff] }
  0x83   : > { %2686 = vmatpush.bf16.msrb.mxu0 %v7266_v25  ;;  %v2004_v40 = vsel %vm1996_vm7, %v1871_v38, %v2003_v29  ;;  %v578_v25 = vunpack.c.h.bf16 %v7362_v55  ;;  %v802_v17 = vadd.f32 %v801_v58, %v573_v31  ;;  %v808_v19 = vadd.f32 %v807_v18, %v574_v36  ;;  %2763 = vmatmul.bf16.gmra.mxu1 %v5286_v49 }
  0x84   : > { %v2103_v51 = vpack.c.b16 %v2004_v40, %v1997_v37  ;;  %v814_v21 = vadd.f32 %v813_v60, %v575_v43  ;;  %v820_v22 = vadd.f32 %v819_v6, %v576_v44  ;;  %v785_v38 = vrot.slane %v784_v11, 2  ;;  %3412 = vmatmul.bf16.gmra.mxu2 %v5286_v49  ;;  %4061 = vmatmul.bf16.gmra.mxu3 %v5286_v49 }
  0x85   : > { %v791_v1 = vrot.slane %v790_v12, 2  ;;  %v797_v41 = vrot.slane %v796_v16, 2  ;;  %v803_v53 = vrot.slane %v802_v17, 2  ;;  %v809_v10 = vrot.slane %v808_v19, 2 }
  0x86   : > { %2175 = vmatmul.bf16.vlgmr.msra.gmra.mxu0 %v2103_v51  ;;  %v815_v23 = vrot.slane %v814_v21, 2  ;;  %v821_v8 = vrot.slane %v820_v22, 2  ;;  %v786_v26 = vadd.f32 %v785_v38, %v784_v11  ;;  %v584_v7 = vunpack.c.h.bf16 %v7376_v34 }
  0x87   : > { %2687 = vmatpush.bf16.msrb.mxu0 %v7276_v59  ;;  %v779_v59 = vrot.slane %v778_v3, 2  ;;  %v792_v28 = vadd.f32 %v791_v1, %v790_v12  ;;  %v798_v54 = vadd.f32 %v797_v41, %v796_v16  ;;  %v804_v61 = vadd.f32 %v803_v53, %v802_v17 }
  0x88   : > { %v816_v42 = vadd.f32 %v815_v23, %v814_v21  ;;  %v7391_v62 = vadd.f32 %v821_v8, %v820_v22  ;;  %v787_v63 = vrot.slane %v786_v26, 1  ;;  %v825_v57 = vrot.slane %v577_v45, 4 }
  0x89   : > { %v780_v24 = vadd.f32 %v779_v59, %v778_v3  ;;  %v793_v14 = vrot.slane %v792_v28, 1  ;;  %v799_v31 = vrot.slane %v798_v54, 1  ;;  %v805_v32 = vrot.slane %v804_v61, 1 }
  0x8a   : > { %v817_v43 = vrot.slane %v816_v42, 1  ;;  %v7396_v29 = vadd.f32 %v787_v63, %v786_v26  ;;  %v823_v44 = vrot.slane %v7391_v62, 1  ;;  %v831_v58 = vrot.slane %v578_v25, 4 }
  0x8b   : > { %3329 = vmatpush.bf16.msra.mxu0 %v7205_v4  ;;  %v810_v4 = vadd.f32 %v809_v10, %v808_v19  ;;  %v781_v27 = vrot.slane %v780_v24, 1  ;;  %v7402_v40 = vadd.f32 %v799_v31, %v798_v54  ;;  %v7404_v51 = vadd.f32 %v805_v32, %v804_v61 }
  0x8c   : > { %v7408_v48 = vadd.f32 %v817_v43, %v816_v42  ;;  %v837_v18 = vrot.slane %v579_v47, 4  ;;  %v849_v60 = vrot.slane %v581_v52, 4  ;;  %v855_v6 = vrot.slane %v582_v56, 4 }
  0x8d   : > { %v811_v36 = vrot.slane %v810_v4, 1  ;;  %v7394_v37 = vadd.f32 %v781_v27, %v780_v24  ;;  %v861_v3 = vrot.slane %v583_v30, 4  ;;  %v867_v11 = vrot.slane %v584_v7, 4 }
  0x8e   : > { %v826_v12 = vadd.f32 %v825_v57, %v577_v45  ;;  %v832_v16 = vadd.f32 %v831_v58, %v578_v25  ;;  %v838_v17 = vadd.f32 %v837_v18, %v579_v47  ;;  %v850_v21 = vadd.f32 %v849_v60, %v581_v52 }
  0x8f   : > { %3330 = vmatpush.bf16.msra.mxu0 %v7211_v9  ;;  %v7398_v9 = vadd.f32 %v793_v14, %v792_v28  ;;  %v7406_v35 = vadd.f32 %v811_v36, %v810_v4  ;;  %v856_v22 = vadd.f32 %v855_v6, %v582_v56  ;;  %v862_v59 = vadd.f32 %v861_v3, %v583_v30 }
  0x90   : > { %v868_v45 = vadd.f32 %v867_v11, %v584_v7  ;;  %v827_v55 = vrot.slane %v826_v12, 2  ;;  %v833_v25 = vrot.slane %v832_v16, 2  ;;  %v839_v38 = vrot.slane %v838_v17, 2 }
  0x91   : > { %v851_v1 = vrot.slane %v850_v21, 2  ;;  %v857_v0 = vrot.slane %v856_v22, 2  ;;  %v824_v31 = vadd.f32 %v823_v44, %v7391_v62  ;;  %v1472_v43 = vmul.f32 %v7243_v39, %v7394_v37 }
  0x92   : > { %v869_v41 = vrot.slane %v868_v45, 2  ;;  %v828_v53 = vadd.f32 %v827_v55, %v826_v12  ;;  %v834_v10 = vadd.f32 %v833_v25, %v832_v16  ;;  %v840_v52 = vadd.f32 %v839_v38, %v838_v17 }
  0x93   : > { %3331 = vmatpush.bf16.msra.mxu0 %v7217_v15  ;;  %v843_v15 = vrot.slane %v580_v50, 4  ;;  %v852_v13 = vadd.f32 %v851_v1, %v850_v21  ;;  %v858_v56 = vadd.f32 %v857_v0, %v856_v22  ;;  %v1473_v49 = vmul.f32 %v7243_v39, %v7396_v29 }
  0x94   : > { %v870_v34 = vadd.f32 %v869_v41, %v868_v45  ;;  %v829_v30 = vrot.slane %v828_v53, 1  ;;  %v841_v24 = vrot.slane %v840_v52, 1  ;;  %v1474_v57 = vmul.f32 %v7243_v39, %v7398_v9 }
  0x95   : > { %v844_v19 = vadd.f32 %v843_v15, %v580_v50  ;;  %v863_v50 = vrot.slane %v862_v59, 2  ;;  %v853_v28 = vrot.slane %v852_v13, 1  ;;  %v859_v54 = vrot.slane %v858_v56, 1 }
  0x96   : > { %v871_v4 = vrot.slane %v870_v34, 1  ;;  %v830_v42 = vadd.f32 %v829_v30, %v828_v53  ;;  %v842_v63 = vadd.f32 %v841_v24, %v840_v52  ;;  %v1475_v58 = vmul.f32 %v7243_v39, %v7402_v40  ;;  %v457_v52 = vld [vmem:[%s7189_s21 + $0x80] sm:$0xff]  }
  0x97   : > { %3332 = vmatpush.bf16.msra.mxu0 %v7222_v20  ;;  %v845_v47 = vrot.slane %v844_v19, 2  ;;  %v864_v8 = vadd.f32 %v863_v50, %v862_v59  ;;  %v835_v20 = vrot.slane %v834_v10, 1  ;;  %v854_v7 = vadd.f32 %v853_v28, %v852_v13 }
  0x98   : > { %v860_v32 = vadd.f32 %v859_v54, %v858_v56  ;;  %v1476_v62 = vmul.f32 %v7243_v39, %v7404_v51  ;;  %v1477_v44 = vmul.f32 %v7243_v39, %v7406_v35  ;;  %v1480_v37 = vmul.f32 %v7243_v39, %v830_v42 }
  0x99   : > { %v846_v23 = vadd.f32 %v845_v47, %v844_v19  ;;  %v865_v61 = vrot.slane %v864_v8, 1  ;;  %v836_v27 = vadd.f32 %v835_v20, %v834_v10  ;;  %v1482_v29 = vmul.f32 %v7243_v39, %v842_v63 }
  0x9a   : > { %v1479_v15 = vmul.f32 %v7243_v39, %v824_v31  ;;  %v1484_v40 = vmul.f32 %v7243_v39, %v854_v7  ;;  %v1485_v51 = vmul.f32 %v7243_v39, %v860_v32  ;;  %v1601_v6 = vpack.c.bf16 %v1473_v49, %v1473_v49 }
  0x9b   : > { %3333 = vmatpush.bf16.msra.mxu0 %v7253_v46  ;;  %v847_v26 = vrot.slane %v846_v23, 1  ;;  %v866_v36 = vadd.f32 %v865_v61, %v864_v8  ;;  %v872_v46 = vadd.f32 %v871_v4, %v870_v34  ;;  %v1481_v18 = vmul.f32 %v7243_v39, %v836_v27  ;;  %v459_v34 = vld [vmem:[%s7189_s21 + $0x88] sm:$0xff]   ;;  %v463_v4 = vld [vmem:[%s7189_s21 + $0x98] sm:$0xff]  }
  0x9c   : > { %v1602_v3 = vpack.c.bf16 %v1474_v57, %v1474_v57  ;;  %v1603_v11 = vpack.c.bf16 %v1475_v58, %v1475_v58  ;;  %v1604_v12 = vpack.c.bf16 %v1476_v62, %v1476_v62  ;;  %v1605_v16 = vpack.c.bf16 %v1477_v44, %v1477_v44  ;;  %v7487_v62 = vld [vmem:[%s7189_s21 + $0xb0] sm:$0xff]  }
  0x9d   : > { %v848_v14 = vadd.f32 %v847_v26, %v846_v23  ;;  %v1486_v60 = vmul.f32 %v7243_v39, %v866_v36  ;;  %v1487_v35 = vmul.f32 %v7243_v39, %v872_v46  ;;  %v1608_v19 = vpack.c.bf16 %v1480_v37, %v1480_v37  ;;  %v461_v26 = vld [vmem:[%s7189_s21 + $0x90] sm:$0xff]   ;;  %v7482_v46 = vld [vmem:[%s7189_s21 + $0xa8] sm:$0xff]  }
  0x9e   : > { %v1609_v21 = vpack.c.bf16 %v1481_v18, %v1481_v18  ;;  %v1610_v22 = vpack.c.bf16 %v1482_v29, %v1482_v29  ;;  %v1607_v45 = vpack.c.bf16 %v1479_v15, %v1479_v15  ;;  %v1612_v55 = vpack.c.bf16 %v1484_v40, %v1484_v40  ;;  %v7492_v29 = vld [vmem:[%s7189_s21 + $0xb8] sm:$0xff]  }
  0x9f   : > { %3334 = vmatpush.bf16.msra.mxu0 %v7263_v2  ;;  %v1478_v2 = vmul.f32 %v7243_v39, %v7408_v48  ;;  %v1483_v9 = vmul.f32 %v7243_v39, %v848_v14  ;;  %v1600_v48 = vpack.c.bf16 %v1472_v43, %v1472_v43  ;;  %v1613_v25 = vpack.c.bf16 %v1485_v51, %v1485_v51  ;;  %v7477_v14 = vld [vmem:[%s7189_s21 + $0xa0] sm:$0xff]  }
  0xa0   : > { %v1614_v38 = vpack.c.bf16 %v1486_v60, %v1486_v60  ;;  %v1873_v1 = vunpack.c.l.b16 %v1601_v6  ;;  %v1874_v0 = vunpack.c.l.b16 %v1602_v3  ;;  %v1875_v50 = vunpack.c.l.b16 %v1603_v11 }
  0xa1   : > { %v1606_v17 = vpack.c.bf16 %v1478_v2, %v1478_v2  ;;  %v1611_v59 = vpack.c.bf16 %v1483_v9, %v1483_v9  ;;  %v1872_v47 = vunpack.c.l.b16 %v1600_v48  ;;  %v1876_v41 = vunpack.c.l.b16 %v1604_v12 }
  0xa2   : > { %v1877_v53 = vunpack.c.l.b16 %v1605_v16  ;;  %v1880_v23 = vunpack.c.l.b16 %v1608_v19  ;;  %v1881_v13 = vunpack.c.l.b16 %v1609_v21  ;;  %v1882_v56 = vunpack.c.l.b16 %v1610_v22 }
  0xa3   : > { %3335 = vmatpush.bf16.msra.mxu0 %v7269_v33  ;;  %v1615_v33 = vpack.c.bf16 %v1487_v35, %v1487_v35  ;;  %v1878_v10 = vunpack.c.l.b16 %v1606_v17  ;;  %v1883_v8 = vunpack.c.l.b16 %v1611_v59  ;;  %v1879_v30 = vunpack.c.l.b16 %v1607_v45 }
  0xa4   : > { %v1884_v20 = vunpack.c.l.b16 %v1612_v55  ;;  %v1886_v24 = vunpack.c.l.b16 %v1614_v38  ;;  %v2005_v54 = vsel %vm1984_vm1, %v1873_v1, %v1872_v47  ;;  %v2012_v61 = vsel %vm1984_vm1, %v1881_v13, %v1880_v23 }
  0xa5   : > { %v1887_v28 = vunpack.c.l.b16 %v1615_v33  ;;  %v585_v42 = vunpack.c.l.bf16 %v457_v52  ;;  %v2006_v27 = vsel %vm1986_vm2, %v1874_v0, %v2005_v54  ;;  %v2013_v63 = vsel %vm1986_vm2, %v1882_v56, %v2012_v61 }
  0xa6   : > { %v586_v31 = vunpack.c.h.bf16 %v457_v52  ;;  %v587_v7 = vunpack.c.l.bf16 %v459_v34  ;;  %v2007_v32 = vsel %vm1988_vm3, %v1875_v50, %v2006_v27  ;;  %v2014_v36 = vsel %vm1988_vm3, %v1883_v8, %v2013_v63 }
  0xa7   : > { %3336 = vmatpush.bf16.msra.mxu0 %v7286_v5  ;;  %v1885_v5 = vunpack.c.l.b16 %v1613_v25  ;;  %v588_v43 = vunpack.c.h.bf16 %v459_v34  ;;  %v589_v49 = vunpack.c.l.bf16 %v461_v26  ;;  %v2008_v57 = vsel %vm1990_vm4, %v1876_v41, %v2007_v32 }
  0xa8   : > { %v2015_v58 = vsel %vm1990_vm4, %v1884_v20, %v2014_v36  ;;  %v590_v44 = vunpack.c.h.bf16 %v461_v26  ;;  %v591_v2 = vunpack.c.l.bf16 %v463_v4  ;;  %v2009_v37 = vsel %vm1992_vm5, %v1877_v53, %v2008_v57 }
  0xa9   : > { %v2016_v18 = vsel %vm1992_vm5, %v1885_v5, %v2015_v58  ;;  %v592_v9 = vunpack.c.h.bf16 %v463_v4  ;;  %v593_v15 = vunpack.c.l.bf16 %v7477_v14  ;;  %v2010_v40 = vsel %vm1994_vm6, %v1878_v10, %v2009_v37 }
  0xaa   : > { %v2017_v51 = vsel %vm1994_vm6, %v1886_v24, %v2016_v18  ;;  %v594_v60 = vunpack.c.h.bf16 %v7477_v14  ;;  %v595_v35 = vunpack.c.l.bf16 %v7482_v46  ;;  %v2011_v48 = vsel %vm1996_vm7, %v1879_v30, %v2010_v40 }
  0xab   : > { %v2018_v6 = vsel %vm1996_vm7, %v1887_v28, %v2017_v51  ;;  %v596_v3 = vunpack.c.h.bf16 %v7482_v46  ;;  %v597_v11 = vunpack.c.l.bf16 %v7487_v62  ;;  %v598_v16 = vunpack.c.h.bf16 %v7487_v62 }
  0xac   : > { %v2104_v12 = vpack.c.b16 %v2018_v6, %v2011_v48  ;;  %v599_v17 = vunpack.c.l.bf16 %v7492_v29  ;;  %v873_v19 = vrot.slane %v585_v42, 4  ;;  %v879_v21 = vrot.slane %v586_v31, 4  ;;  %v5287_v48 = vld [vmem:[%s7189_s21 + $0x80] sm:$0xff] }
  0xad   : > { %v885_v22 = vrot.slane %v587_v7, 4  ;;  %v891_v59 = vrot.slane %v588_v43, 4  ;;  %v897_v45 = vrot.slane %v589_v49, 4  ;;  %v903_v25 = vrot.slane %v590_v44, 4  ;;  %2768 = vmatmul.bf16.gmra.mxu1 %v5287_v48  ;;  %3417 = vmatmul.bf16.gmra.mxu2 %v5287_v48 }
  0xae   : > { %2180 = vmatmul.bf16.gmra.mxu0 %v2104_v12  ;;  %v874_v55 = vadd.f32 %v873_v19, %v585_v42  ;;  %v909_v38 = vrot.slane %v591_v2, 4  ;;  %v915_v33 = vrot.slane %v592_v9, 4  ;;  %v880_v47 = vadd.f32 %v879_v21, %v586_v31  ;;  %4066 = vmatmul.bf16.gmra.mxu3 %v5287_v48 }
  0xaf   : > { %v886_v1 = vadd.f32 %v885_v22, %v587_v7  ;;  %v892_v0 = vadd.f32 %v891_v59, %v588_v43  ;;  %v898_v50 = vadd.f32 %v897_v45, %v589_v49  ;;  %v904_v53 = vadd.f32 %v903_v25, %v590_v44 }
  0xb0   : > { %v875_v41 = vrot.slane %v874_v55, 2  ;;  %v910_v10 = vadd.f32 %v909_v38, %v591_v2  ;;  %v916_v52 = vadd.f32 %v915_v33, %v592_v9  ;;  %v881_v23 = vrot.slane %v880_v47, 2 }
  0xb1   : > { %v887_v13 = vrot.slane %v886_v1, 2  ;;  %v893_v56 = vrot.slane %v892_v0, 2  ;;  %v899_v8 = vrot.slane %v898_v50, 2  ;;  %v905_v30 = vrot.slane %v904_v53, 2 }
  0xb2   : > { %v876_v34 = vadd.f32 %v875_v41, %v874_v55  ;;  %v911_v20 = vrot.slane %v910_v10, 2  ;;  %v917_v5 = vrot.slane %v916_v52, 2  ;;  %v882_v24 = vadd.f32 %v881_v23, %v880_v47 }
  0xb3   : > { %v888_v26 = vadd.f32 %v887_v13, %v886_v1  ;;  %v894_v28 = vadd.f32 %v893_v56, %v892_v0  ;;  %v900_v54 = vadd.f32 %v899_v8, %v898_v50  ;;  %v906_v4 = vadd.f32 %v905_v30, %v904_v53 }
  0xb4   : > { %v877_v61 = vrot.slane %v876_v34, 1  ;;  %v912_v42 = vadd.f32 %v911_v20, %v910_v10  ;;  %v918_v27 = vadd.f32 %v917_v5, %v916_v52  ;;  %v883_v63 = vrot.slane %v882_v24, 1 }
  0xb5   : > { %v889_v31 = vrot.slane %v888_v26, 1  ;;  %v895_v7 = vrot.slane %v894_v28, 1  ;;  %v901_v32 = vrot.slane %v900_v54, 1  ;;  %v600_v36 = vunpack.c.h.bf16 %v7492_v29 }
  0xb6   : > { %v878_v43 = vadd.f32 %v877_v61, %v876_v34  ;;  %v907_v49 = vrot.slane %v906_v4, 1  ;;  %v913_v57 = vrot.slane %v912_v42, 1  ;;  %v884_v58 = vadd.f32 %v883_v63, %v882_v24 }
  0xb7   : > { %v890_v44 = vadd.f32 %v889_v31, %v888_v26  ;;  %v896_v2 = vadd.f32 %v895_v7, %v894_v28  ;;  %v919_v37 = vrot.slane %v918_v27, 1  ;;  %v902_v18 = vadd.f32 %v901_v32, %v900_v54 }
  0xb8   : > { %v908_v9 = vadd.f32 %v907_v49, %v906_v4  ;;  %v914_v40 = vadd.f32 %v913_v57, %v912_v42  ;;  %v921_v51 = vrot.slane %v593_v15, 4  ;;  %v927_v6 = vrot.slane %v594_v60, 4 }
  0xb9   : > { %v933_v12 = vrot.slane %v595_v35, 4  ;;  %v939_v19 = vrot.slane %v596_v3, 4  ;;  %v945_v21 = vrot.slane %v597_v11, 4  ;;  %v951_v59 = vrot.slane %v598_v16, 4 }
  0xba   : > { %v922_v22 = vadd.f32 %v921_v51, %v593_v15  ;;  %v957_v45 = vrot.slane %v599_v17, 4  ;;  %v963_v55 = vrot.slane %v600_v36, 4  ;;  %v928_v25 = vadd.f32 %v927_v6, %v594_v60 }
  0xbb   : > { %v934_v38 = vadd.f32 %v933_v12, %v595_v35  ;;  %v940_v33 = vadd.f32 %v939_v19, %v596_v3  ;;  %v946_v15 = vadd.f32 %v945_v21, %v597_v11  ;;  %v952_v1 = vadd.f32 %v951_v59, %v598_v16 }
  0xbc   : > { %v923_v47 = vrot.slane %v922_v22, 2  ;;  %v958_v0 = vadd.f32 %v957_v45, %v599_v17  ;;  %v964_v50 = vadd.f32 %v963_v55, %v600_v36  ;;  %v929_v14 = vrot.slane %v928_v25, 2 }
  0xbd   : > { %v935_v60 = vrot.slane %v934_v38, 2  ;;  %v941_v41 = vrot.slane %v940_v33, 2  ;;  %v947_v53 = vrot.slane %v946_v15, 2  ;;  %v953_v10 = vrot.slane %v952_v1, 2 }
  0xbe   : > { %v924_v35 = vadd.f32 %v923_v47, %v922_v22  ;;  %v959_v46 = vrot.slane %v958_v0, 2  ;;  %v965_v3 = vrot.slane %v964_v50, 2  ;;  %v930_v52 = vadd.f32 %v929_v14, %v928_v25 }
  0xbf   : > { %v936_v23 = vadd.f32 %v935_v60, %v934_v38  ;;  %v942_v11 = vadd.f32 %v941_v41, %v940_v33  ;;  %v948_v13 = vadd.f32 %v947_v53, %v946_v15  ;;  %v954_v8 = vadd.f32 %v953_v10, %v952_v1 }
  0xc0   : > { %v925_v56 = vrot.slane %v924_v35, 1  ;;  %v960_v62 = vadd.f32 %v959_v46, %v958_v0  ;;  %v966_v16 = vadd.f32 %v965_v3, %v964_v50  ;;  %v931_v34 = vrot.slane %v930_v52, 1 }
  0xc1   : > { %v937_v29 = vrot.slane %v936_v23, 1  ;;  %v943_v17 = vrot.slane %v942_v11, 1  ;;  %v949_v30 = vrot.slane %v948_v13, 1  ;;  %v955_v5 = vrot.slane %v954_v8, 1 }
  0xc2   : > { %v926_v20 = vadd.f32 %v925_v56, %v924_v35  ;;  %v961_v24 = vrot.slane %v960_v62, 1  ;;  %v967_v26 = vrot.slane %v966_v16, 1  ;;  %v920_v28 = vadd.f32 %v919_v37, %v918_v27 }
  0xc3   : > { %v932_v54 = vadd.f32 %v931_v34, %v930_v52  ;;  %v938_v61 = vadd.f32 %v937_v29, %v936_v23  ;;  %v944_v4 = vadd.f32 %v943_v17, %v942_v11  ;;  %v950_v42 = vadd.f32 %v949_v30, %v948_v13  ;;  %v473_v23 = vld [vmem:[%s7189_s21 + $0xc0] sm:$0xff]   ;;  %v477_v30 = vld [vmem:[%s7189_s21 + $0xd0] sm:$0xff]  }
  0xc4   : > { %v956_v63 = vadd.f32 %v955_v5, %v954_v8  ;;  %v962_v31 = vadd.f32 %v961_v24, %v960_v62  ;;  %v1488_v7 = vmul.f32 %v7243_v39, %v878_v43  ;;  %v968_v32 = vadd.f32 %v967_v26, %v966_v16  ;;  %v475_v62 = vld [vmem:[%s7189_s21 + $0xc8] sm:$0xff]   ;;  %v479_v26 = vld [vmem:[%s7189_s21 + $0xd8] sm:$0xff]  }
  0xc5   : > { %v1489_v36 = vmul.f32 %v7243_v39, %v884_v58  ;;  %v1490_v49 = vmul.f32 %v7243_v39, %v890_v44  ;;  %v1491_v57 = vmul.f32 %v7243_v39, %v896_v2  ;;  %v1492_v51 = vmul.f32 %v7243_v39, %v902_v18 }
  0xc6   : > { %v1493_v48 = vmul.f32 %v7243_v39, %v908_v9  ;;  %v1494_v27 = vmul.f32 %v7243_v39, %v914_v40  ;;  %v1496_v37 = vmul.f32 %v7243_v39, %v926_v20  ;;  %v1495_v6 = vmul.f32 %v7243_v39, %v920_v28 }
  0xc7   : > { %v1497_v12 = vmul.f32 %v7243_v39, %v932_v54  ;;  %v1498_v43 = vmul.f32 %v7243_v39, %v938_v61  ;;  %v1499_v58 = vmul.f32 %v7243_v39, %v944_v4  ;;  %v1500_v44 = vmul.f32 %v7243_v39, %v950_v42  ;;  %v7561_v4 = vld [vmem:[%s7189_s21 + $0xe0] sm:$0xff]  }
  0xc8   : > { %v1501_v2 = vmul.f32 %v7243_v39, %v956_v63  ;;  %v1502_v18 = vmul.f32 %v7243_v39, %v962_v31  ;;  %v1616_v19 = vpack.c.bf16 %v1488_v7, %v1488_v7  ;;  %v1503_v9 = vmul.f32 %v7243_v39, %v968_v32  ;;  %v7566_v32 = vld [vmem:[%s7189_s21 + $0xe8] sm:$0xff]  }
  0xc9   : > { %v1617_v40 = vpack.c.bf16 %v1489_v36, %v1489_v36  ;;  %v1618_v21 = vpack.c.bf16 %v1490_v49, %v1490_v49  ;;  %v1619_v22 = vpack.c.bf16 %v1491_v57, %v1491_v57  ;;  %v1620_v59 = vpack.c.bf16 %v1492_v51, %v1492_v51 }
  0xca   : > { %v1621_v45 = vpack.c.bf16 %v1493_v48, %v1493_v48  ;;  %v1622_v55 = vpack.c.bf16 %v1494_v27, %v1494_v27  ;;  %v1624_v25 = vpack.c.bf16 %v1496_v37, %v1496_v37  ;;  %v1623_v38 = vpack.c.bf16 %v1495_v6, %v1495_v6  ;;  %v7571_v48 = vld [vmem:[%s7189_s21 + $0xf0] sm:$0xff]  }
  0xcb   : > { %v1625_v33 = vpack.c.bf16 %v1497_v12, %v1497_v12  ;;  %v1626_v15 = vpack.c.bf16 %v1498_v43, %v1498_v43  ;;  %v1627_v47 = vpack.c.bf16 %v1499_v58, %v1499_v58  ;;  %v1628_v1 = vpack.c.bf16 %v1500_v44, %v1500_v44  ;;  %v7576_v43 = vld [vmem:[%s7189_s21 + $0xf8] sm:$0xff]  }
  0xcc   : > { %v1629_v0 = vpack.c.bf16 %v1501_v2, %v1501_v2  ;;  %v1630_v50 = vpack.c.bf16 %v1502_v18, %v1502_v18  ;;  %v1888_v14 = vunpack.c.l.b16 %v1616_v19  ;;  %v1631_v60 = vpack.c.bf16 %v1503_v9, %v1503_v9 }
  0xcd   : > { %v1889_v41 = vunpack.c.l.b16 %v1617_v40  ;;  %v1890_v53 = vunpack.c.l.b16 %v1618_v21  ;;  %v1891_v35 = vunpack.c.l.b16 %v1619_v22  ;;  %v1892_v10 = vunpack.c.l.b16 %v1620_v59 }
  0xce   : > { %v1893_v46 = vunpack.c.l.b16 %v1621_v45  ;;  %v1894_v3 = vunpack.c.l.b16 %v1622_v55  ;;  %v1896_v52 = vunpack.c.l.b16 %v1624_v25  ;;  %v1895_v11 = vunpack.c.l.b16 %v1623_v38 }
  0xcf   : > { %v1897_v13 = vunpack.c.l.b16 %v1625_v33  ;;  %v1898_v56 = vunpack.c.l.b16 %v1626_v15  ;;  %v1899_v8 = vunpack.c.l.b16 %v1627_v47  ;;  %v1900_v16 = vunpack.c.l.b16 %v1628_v1 }
  0xd0   : > { %v1901_v34 = vunpack.c.l.b16 %v1629_v0  ;;  %v1902_v29 = vunpack.c.l.b16 %v1630_v50  ;;  %v2019_v17 = vsel %vm1984_vm1, %v1889_v41, %v1888_v14  ;;  %v1903_v20 = vunpack.c.l.b16 %v1631_v60 }
  0xd1   : > { %v2020_v5 = vsel %vm1986_vm2, %v1890_v53, %v2019_v17  ;;  %v2026_v24 = vsel %vm1984_vm1, %v1897_v13, %v1896_v52  ;;  %v601_v28 = vunpack.c.l.bf16 %v473_v23  ;;  %v602_v42 = vunpack.c.h.bf16 %v473_v23 }
  0xd2   : > { %v2021_v54 = vsel %vm1988_vm3, %v1891_v35, %v2020_v5  ;;  %v2027_v61 = vsel %vm1986_vm2, %v1898_v56, %v2026_v24  ;;  %v603_v63 = vunpack.c.l.bf16 %v475_v62  ;;  %v604_v36 = vunpack.c.h.bf16 %v475_v62 }
  0xd3   : > { %v2022_v31 = vsel %vm1990_vm4, %v1892_v10, %v2021_v54  ;;  %v2028_v7 = vsel %vm1988_vm3, %v1899_v8, %v2027_v61  ;;  %v605_v49 = vunpack.c.l.bf16 %v477_v30  ;;  %v606_v27 = vunpack.c.h.bf16 %v477_v30 }
  0xd4   : > { %v2023_v57 = vsel %vm1992_vm5, %v1893_v46, %v2022_v31  ;;  %v2029_v51 = vsel %vm1990_vm4, %v1900_v16, %v2028_v7  ;;  %v607_v37 = vunpack.c.l.bf16 %v479_v26  ;;  %v608_v58 = vunpack.c.h.bf16 %v479_v26 }
  0xd5   : > { %v2024_v6 = vsel %vm1994_vm6, %v1894_v3, %v2023_v57  ;;  %v2030_v12 = vsel %vm1992_vm5, %v1901_v34, %v2029_v51  ;;  %v609_v44 = vunpack.c.l.bf16 %v7561_v4  ;;  %v610_v19 = vunpack.c.h.bf16 %v7561_v4 }
  0xd6   : > { %v2025_v2 = vsel %vm1996_vm7, %v1895_v11, %v2024_v6  ;;  %v2031_v18 = vsel %vm1994_vm6, %v1902_v29, %v2030_v12  ;;  %v611_v9 = vunpack.c.l.bf16 %v7566_v32  ;;  %v612_v21 = vunpack.c.h.bf16 %v7566_v32  ;;  %v5288_v12 = vld [vmem:[%s7189_s21 + $0x88] sm:$0xff] }
  0xd7   : > { %v2032_v40 = vsel %vm1996_vm7, %v1903_v20, %v2031_v18  ;;  %v613_v22 = vunpack.c.l.bf16 %v7571_v48  ;;  %v614_v59 = vunpack.c.h.bf16 %v7571_v48  ;;  %v615_v55 = vunpack.c.l.bf16 %v7576_v43  ;;  %2773 = vmatmul.bf16.gmra.mxu1 %v5288_v12  ;;  %3422 = vmatmul.bf16.gmra.mxu2 %v5288_v12 }
  0xd8   : > { %v2105_v45 = vpack.c.b16 %v2032_v40, %v2025_v2  ;;  %v969_v25 = vrot.slane %v601_v28, 4  ;;  %v975_v38 = vrot.slane %v602_v42, 4  ;;  %v981_v33 = vrot.slane %v603_v63, 4  ;;  %4071 = vmatmul.bf16.gmra.mxu3 %v5288_v12 }
  0xd9   : > { %v987_v15 = vrot.slane %v604_v36, 4  ;;  %v993_v47 = vrot.slane %v605_v49, 4  ;;  %v999_v1 = vrot.slane %v606_v27, 4  ;;  %v1005_v14 = vrot.slane %v607_v37, 4 }
  0xda   : > { %2185 = vmatmul.bf16.gmra.mxu0 %v2105_v45  ;;  %v970_v0 = vadd.f32 %v969_v25, %v601_v28  ;;  %v976_v50 = vadd.f32 %v975_v38, %v602_v42  ;;  %v1011_v60 = vrot.slane %v608_v58, 4  ;;  %v982_v41 = vadd.f32 %v981_v33, %v603_v63 }
  0xdb   : > { %v988_v53 = vadd.f32 %v987_v15, %v604_v36  ;;  %v994_v35 = vadd.f32 %v993_v47, %v605_v49  ;;  %v1000_v10 = vadd.f32 %v999_v1, %v606_v27  ;;  %v1006_v52 = vadd.f32 %v1005_v14, %v607_v37 }
  0xdc   : > { %v971_v46 = vrot.slane %v970_v0, 2  ;;  %v977_v3 = vrot.slane %v976_v50, 2  ;;  %v1012_v23 = vadd.f32 %v1011_v60, %v608_v58  ;;  %v983_v11 = vrot.slane %v982_v41, 2 }
  0xdd   : > { %v989_v13 = vrot.slane %v988_v53, 2  ;;  %v995_v56 = vrot.slane %v994_v35, 2  ;;  %v1001_v8 = vrot.slane %v1000_v10, 2  ;;  %v1007_v34 = vrot.slane %v1006_v52, 2 }
  0xde   : > { %v972_v62 = vadd.f32 %v971_v46, %v970_v0  ;;  %v978_v16 = vadd.f32 %v977_v3, %v976_v50  ;;  %v1013_v29 = vrot.slane %v1012_v23, 2  ;;  %v984_v17 = vadd.f32 %v983_v11, %v982_v41 }
  0xdf   : > { %v990_v30 = vadd.f32 %v989_v13, %v988_v53  ;;  %v996_v20 = vadd.f32 %v995_v56, %v994_v35  ;;  %v1002_v5 = vadd.f32 %v1001_v8, %v1000_v10  ;;  %v1008_v28 = vadd.f32 %v1007_v34, %v1006_v52 }
  0xe0   : > { %v973_v24 = vrot.slane %v972_v62, 1  ;;  %v979_v26 = vrot.slane %v978_v16, 1  ;;  %v1014_v54 = vadd.f32 %v1013_v29, %v1012_v23  ;;  %v985_v61 = vrot.slane %v984_v17, 1 }
  0xe1   : > { %v991_v42 = vrot.slane %v990_v30, 1  ;;  %v997_v63 = vrot.slane %v996_v20, 1  ;;  %v1003_v31 = vrot.slane %v1002_v5, 1  ;;  %v616_v7 = vunpack.c.h.bf16 %v7576_v43 }
  0xe2   : > { %v974_v36 = vadd.f32 %v973_v24, %v972_v62  ;;  %v980_v49 = vadd.f32 %v979_v26, %v978_v16  ;;  %v1009_v57 = vrot.slane %v1008_v28, 1  ;;  %v986_v51 = vadd.f32 %v985_v61, %v984_v17 }
  0xe3   : > { %v992_v27 = vadd.f32 %v991_v42, %v990_v30  ;;  %v998_v37 = vadd.f32 %v997_v63, %v996_v20  ;;  %v1015_v6 = vrot.slane %v1014_v54, 1  ;;  %v1004_v58 = vadd.f32 %v1003_v31, %v1002_v5 }
  0xe4   : > { %v1010_v2 = vadd.f32 %v1009_v57, %v1008_v28  ;;  %v1017_v18 = vrot.slane %v609_v44, 4  ;;  %v1023_v40 = vrot.slane %v610_v19, 4  ;;  %v1029_v45 = vrot.slane %v611_v9, 4 }
  0xe5   : > { %v1035_v25 = vrot.slane %v612_v21, 4  ;;  %v1041_v38 = vrot.slane %v613_v22, 4  ;;  %v1047_v33 = vrot.slane %v614_v59, 4  ;;  %v1053_v1 = vrot.slane %v615_v55, 4 }
  0xe6   : > { %v1018_v15 = vadd.f32 %v1017_v18, %v609_v44  ;;  %v1024_v47 = vadd.f32 %v1023_v40, %v610_v19  ;;  %v1059_v0 = vrot.slane %v616_v7, 4  ;;  %v1030_v50 = vadd.f32 %v1029_v45, %v611_v9 }
  0xe7   : > { %v1036_v14 = vadd.f32 %v1035_v25, %v612_v21  ;;  %v1042_v60 = vadd.f32 %v1041_v38, %v613_v22  ;;  %v1048_v44 = vadd.f32 %v1047_v33, %v614_v59  ;;  %v1054_v19 = vadd.f32 %v1053_v1, %v615_v55 }
  0xe8   : > { %v1019_v41 = vrot.slane %v1018_v15, 2  ;;  %v1025_v4 = vrot.slane %v1024_v47, 2  ;;  %v1060_v53 = vadd.f32 %v1059_v0, %v616_v7  ;;  %v1031_v35 = vrot.slane %v1030_v50, 2 }
  0xe9   : > { %v1037_v10 = vrot.slane %v1036_v14, 2  ;;  %v1043_v46 = vrot.slane %v1042_v60, 2  ;;  %v1049_v3 = vrot.slane %v1048_v44, 2  ;;  %v1055_v32 = vrot.slane %v1054_v19, 2 }
  0xea   : > { %v1020_v9 = vadd.f32 %v1019_v41, %v1018_v15  ;;  %v1026_v52 = vadd.f32 %v1025_v4, %v1024_v47  ;;  %v1061_v21 = vrot.slane %v1060_v53, 2  ;;  %v1032_v23 = vadd.f32 %v1031_v35, %v1030_v50 }
  0xeb   : > { %v1038_v11 = vadd.f32 %v1037_v10, %v1036_v14  ;;  %v1044_v22 = vadd.f32 %v1043_v46, %v1042_v60  ;;  %v1050_v13 = vadd.f32 %v1049_v3, %v1048_v44  ;;  %v1056_v56 = vadd.f32 %v1055_v32, %v1054_v19 }
  0xec   : > { %v1021_v48 = vrot.slane %v1020_v9, 1  ;;  %v1027_v59 = vrot.slane %v1026_v52, 1  ;;  %v1062_v8 = vadd.f32 %v1061_v21, %v1060_v53  ;;  %v1033_v62 = vrot.slane %v1032_v23, 1 }
  0xed   : > { %v1039_v43 = vrot.slane %v1038_v11, 1  ;;  %v1045_v55 = vrot.slane %v1044_v22, 1  ;;  %v1051_v16 = vrot.slane %v1050_v13, 1  ;;  %v1057_v17 = vrot.slane %v1056_v56, 1 }
  0xee   : > { %v1022_v34 = vadd.f32 %v1021_v48, %v1020_v9  ;;  %v1028_v29 = vadd.f32 %v1027_v59, %v1026_v52  ;;  %v1063_v30 = vrot.slane %v1062_v8, 1  ;;  %v1016_v20 = vadd.f32 %v1015_v6, %v1014_v54 }
  0xef   : > { %v1034_v5 = vadd.f32 %v1033_v62, %v1032_v23  ;;  %v1040_v24 = vadd.f32 %v1039_v43, %v1038_v11  ;;  %v1046_v26 = vadd.f32 %v1045_v55, %v1044_v22  ;;  %v1052_v28 = vadd.f32 %v1051_v16, %v1050_v13  ;;  %v489_v11 = vld [vmem:[%s7189_s21 + $0x100] sm:$0xff]   ;;  %v493_v16 = vld [vmem:[%s7189_s21 + $0x110] sm:$0xff]  }
  0xf0   : > { %v1058_v61 = vadd.f32 %v1057_v17, %v1056_v56  ;;  %v1504_v42 = vmul.f32 %v7243_v39, %v974_v36  ;;  %v1505_v63 = vmul.f32 %v7243_v39, %v980_v49  ;;  %v1064_v31 = vadd.f32 %v1063_v30, %v1062_v8  ;;  %v491_v56 = vld [vmem:[%s7189_s21 + $0x108] sm:$0xff]   ;;  %v495_v30 = vld [vmem:[%s7189_s21 + $0x118] sm:$0xff]  }
  0xf1   : > { %v1506_v7 = vmul.f32 %v7243_v39, %v986_v51  ;;  %v1507_v57 = vmul.f32 %v7243_v39, %v992_v27  ;;  %v1508_v12 = vmul.f32 %v7243_v39, %v998_v37  ;;  %v1509_v18 = vmul.f32 %v7243_v39, %v1004_v58 }
  0xf2   : > { %v1510_v54 = vmul.f32 %v7243_v39, %v1010_v2  ;;  %v1512_v6 = vmul.f32 %v7243_v39, %v1022_v34  ;;  %v1513_v40 = vmul.f32 %v7243_v39, %v1028_v29  ;;  %v1511_v45 = vmul.f32 %v7243_v39, %v1016_v20 }
  0xf3   : > { %v1514_v36 = vmul.f32 %v7243_v39, %v1034_v5  ;;  %v1515_v49 = vmul.f32 %v7243_v39, %v1040_v24  ;;  %v1516_v51 = vmul.f32 %v7243_v39, %v1046_v26  ;;  %v1517_v27 = vmul.f32 %v7243_v39, %v1052_v28  ;;  %v7645_v26 = vld [vmem:[%s7189_s21 + $0x120] sm:$0xff]  }
  0xf4   : > { %v1518_v37 = vmul.f32 %v7243_v39, %v1058_v61  ;;  %v1632_v25 = vpack.c.bf16 %v1504_v42, %v1504_v42  ;;  %v1633_v58 = vpack.c.bf16 %v1505_v63, %v1505_v63  ;;  %v1519_v2 = vmul.f32 %v7243_v39, %v1064_v31  ;;  %v7650_v31 = vld [vmem:[%s7189_s21 + $0x128] sm:$0xff]  }
  0xf5   : > { %v1634_v38 = vpack.c.bf16 %v1506_v7, %v1506_v7  ;;  %v1635_v33 = vpack.c.bf16 %v1507_v57, %v1507_v57  ;;  %v1636_v15 = vpack.c.bf16 %v1508_v12, %v1508_v12  ;;  %v1637_v47 = vpack.c.bf16 %v1509_v18, %v1509_v18 }
  0xf6   : > { %v1638_v1 = vpack.c.bf16 %v1510_v54, %v1510_v54  ;;  %v1640_v0 = vpack.c.bf16 %v1512_v6, %v1512_v6  ;;  %v1641_v50 = vpack.c.bf16 %v1513_v40, %v1513_v40  ;;  %v1639_v14 = vpack.c.bf16 %v1511_v45, %v1511_v45  ;;  %v7655_v54 = vld [vmem:[%s7189_s21 + $0x130] sm:$0xff]  }
  0xf7   : > { %v1642_v60 = vpack.c.bf16 %v1514_v36, %v1514_v36  ;;  %v1643_v44 = vpack.c.bf16 %v1515_v49, %v1515_v49  ;;  %v1644_v41 = vpack.c.bf16 %v1516_v51, %v1516_v51  ;;  %v1645_v4 = vpack.c.bf16 %v1517_v27, %v1517_v27  ;;  %v7660_v49 = vld [vmem:[%s7189_s21 + $0x138] sm:$0xff]  }
  0xf8   : > { %v1646_v19 = vpack.c.bf16 %v1518_v37, %v1518_v37  ;;  %v1904_v53 = vunpack.c.l.b16 %v1632_v25  ;;  %v1905_v35 = vunpack.c.l.b16 %v1633_v58  ;;  %v1647_v10 = vpack.c.bf16 %v1519_v2, %v1519_v2 }
  0xf9   : > { %v1906_v46 = vunpack.c.l.b16 %v1634_v38  ;;  %v1907_v3 = vunpack.c.l.b16 %v1635_v33  ;;  %v1908_v9 = vunpack.c.l.b16 %v1636_v15  ;;  %v1909_v52 = vunpack.c.l.b16 %v1637_v47 }
  0xfa   : > { %v1910_v32 = vunpack.c.l.b16 %v1638_v1  ;;  %v1912_v21 = vunpack.c.l.b16 %v1640_v0  ;;  %v1913_v23 = vunpack.c.l.b16 %v1641_v50  ;;  %v1911_v22 = vunpack.c.l.b16 %v1639_v14 }
  0xfb   : > { %v1914_v13 = vunpack.c.l.b16 %v1642_v60  ;;  %v1915_v48 = vunpack.c.l.b16 %v1643_v44  ;;  %v1916_v59 = vunpack.c.l.b16 %v1644_v41  ;;  %v1917_v8 = vunpack.c.l.b16 %v1645_v4 }
  0xfc   : > { %v1918_v62 = vunpack.c.l.b16 %v1646_v19  ;;  %v2033_v43 = vsel %vm1984_vm1, %v1905_v35, %v1904_v53  ;;  %v2040_v55 = vsel %vm1984_vm1, %v1913_v23, %v1912_v21  ;;  %v1919_v34 = vunpack.c.l.b16 %v1647_v10 }
  0xfd   : > { %v2034_v29 = vsel %vm1986_vm2, %v1906_v46, %v2033_v43  ;;  %v2041_v17 = vsel %vm1986_vm2, %v1914_v13, %v2040_v55  ;;  %v617_v20 = vunpack.c.l.bf16 %v489_v11  ;;  %v618_v28 = vunpack.c.h.bf16 %v489_v11 }
  0xfe   : > { %v2035_v5 = vsel %vm1988_vm3, %v1907_v3, %v2034_v29  ;;  %v2042_v24 = vsel %vm1988_vm3, %v1915_v48, %v2041_v17  ;;  %v619_v61 = vunpack.c.l.bf16 %v491_v56  ;;  %v620_v7 = vunpack.c.h.bf16 %v491_v56 }
  0xff   : > { %v2036_v42 = vsel %vm1990_vm4, %v1908_v9, %v2035_v5  ;;  %v2043_v63 = vsel %vm1990_vm4, %v1916_v59, %v2042_v24  ;;  %v621_v57 = vunpack.c.l.bf16 %v493_v16  ;;  %v622_v6 = vunpack.c.h.bf16 %v493_v16 }
 0x100   : > { %v2037_v12 = vsel %vm1992_vm5, %v1909_v52, %v2036_v42  ;;  %v2044_v18 = vsel %vm1992_vm5, %v1917_v8, %v2043_v63  ;;  %v623_v40 = vunpack.c.l.bf16 %v495_v30  ;;  %v624_v51 = vunpack.c.h.bf16 %v495_v30 }
 0x101   : > { %v2038_v45 = vsel %vm1994_vm6, %v1910_v32, %v2037_v12  ;;  %v2045_v36 = vsel %vm1994_vm6, %v1918_v62, %v2044_v18  ;;  %v625_v27 = vunpack.c.l.bf16 %v7645_v26  ;;  %v626_v58 = vunpack.c.h.bf16 %v7645_v26 }
 0x102   : > { %v2039_v37 = vsel %vm1996_vm7, %v1911_v22, %v2038_v45  ;;  %v2046_v25 = vsel %vm1996_vm7, %v1919_v34, %v2045_v36  ;;  %v627_v2 = vunpack.c.l.bf16 %v7650_v31  ;;  %v628_v33 = vunpack.c.h.bf16 %v7650_v31  ;;  %v5289_v36 = vld [vmem:[%s7189_s21 + $0x90] sm:$0xff] }
 0x103   : > { %v2106_v38 = vpack.c.b16 %v2046_v25, %v2039_v37  ;;  %v629_v15 = vunpack.c.l.bf16 %v7655_v54  ;;  %v630_v47 = vunpack.c.h.bf16 %v7655_v54  ;;  %v631_v1 = vunpack.c.l.bf16 %v7660_v49  ;;  %2778 = vmatmul.bf16.gmra.mxu1 %v5289_v36  ;;  %3427 = vmatmul.bf16.gmra.mxu2 %v5289_v36 }
 0x104   : > { %v1065_v0 = vrot.slane %v617_v20, 4  ;;  %v1071_v50 = vrot.slane %v618_v28, 4  ;;  %v1077_v14 = vrot.slane %v619_v61, 4  ;;  %v1083_v60 = vrot.slane %v620_v7, 4  ;;  %4076 = vmatmul.bf16.gmra.mxu3 %v5289_v36 }
 0x105   : > { %2190 = vmatmul.bf16.gmra.mxu0 %v2106_v38  ;;  %v1089_v44 = vrot.slane %v621_v57, 4  ;;  %v1095_v41 = vrot.slane %v622_v6, 4  ;;  %v1101_v4 = vrot.slane %v623_v40, 4  ;;  %v1107_v10 = vrot.slane %v624_v51, 4 }
 0x106   : > { %v1066_v19 = vadd.f32 %v1065_v0, %v617_v20  ;;  %v1072_v53 = vadd.f32 %v1071_v50, %v618_v28  ;;  %v1078_v35 = vadd.f32 %v1077_v14, %v619_v61  ;;  %v1084_v46 = vadd.f32 %v1083_v60, %v620_v7 }
 0x107   : > { %v1090_v3 = vadd.f32 %v1089_v44, %v621_v57  ;;  %v1096_v9 = vadd.f32 %v1095_v41, %v622_v6  ;;  %v1102_v52 = vadd.f32 %v1101_v4, %v623_v40  ;;  %v1108_v11 = vadd.f32 %v1107_v10, %v624_v51 }
 0x108   : > { %v1067_v32 = vrot.slane %v1066_v19, 2  ;;  %v1073_v21 = vrot.slane %v1072_v53, 2  ;;  %v1079_v23 = vrot.slane %v1078_v35, 2  ;;  %v1085_v22 = vrot.slane %v1084_v46, 2 }
 0x109   : > { %v1091_v13 = vrot.slane %v1090_v3, 2  ;;  %v1097_v48 = vrot.slane %v1096_v9, 2  ;;  %v1103_v59 = vrot.slane %v1102_v52, 2  ;;  %v1109_v43 = vrot.slane %v1108_v11, 2 }
 0x10a   : > { %v1068_v56 = vadd.f32 %v1067_v32, %v1066_v19  ;;  %v1074_v8 = vadd.f32 %v1073_v21, %v1072_v53  ;;  %v1080_v62 = vadd.f32 %v1079_v23, %v1078_v35  ;;  %v1086_v55 = vadd.f32 %v1085_v22, %v1084_v46 }
 0x10b   : > { %v1092_v16 = vadd.f32 %v1091_v13, %v1090_v3  ;;  %v1098_v34 = vadd.f32 %v1097_v48, %v1096_v9  ;;  %v1104_v29 = vadd.f32 %v1103_v59, %v1102_v52  ;;  %v1110_v5 = vadd.f32 %v1109_v43, %v1108_v11 }
 0x10c   : > { %v1069_v17 = vrot.slane %v1068_v56, 1  ;;  %v1075_v30 = vrot.slane %v1074_v8, 1  ;;  %v1081_v20 = vrot.slane %v1080_v62, 1  ;;  %v1087_v24 = vrot.slane %v1086_v55, 1 }
 0x10d   : > { %v1093_v28 = vrot.slane %v1092_v16, 1  ;;  %v1099_v61 = vrot.slane %v1098_v34, 1  ;;  %v1105_v42 = vrot.slane %v1104_v29, 1  ;;  %v632_v63 = vunpack.c.h.bf16 %v7660_v49 }
 0x10e   : > { %v1070_v7 = vadd.f32 %v1069_v17, %v1068_v56  ;;  %v1076_v57 = vadd.f32 %v1075_v30, %v1074_v8  ;;  %v1082_v12 = vadd.f32 %v1081_v20, %v1080_v62  ;;  %v1088_v18 = vadd.f32 %v1087_v24, %v1086_v55 }
 0x10f   : > { %v1094_v6 = vadd.f32 %v1093_v28, %v1092_v16  ;;  %v1100_v40 = vadd.f32 %v1099_v61, %v1098_v34  ;;  %v1111_v45 = vrot.slane %v1110_v5, 1  ;;  %v1106_v51 = vadd.f32 %v1105_v42, %v1104_v29 }
 0x110   : > { %v1113_v37 = vrot.slane %v625_v27, 4  ;;  %v1119_v25 = vrot.slane %v626_v58, 4  ;;  %v1125_v38 = vrot.slane %v627_v2, 4  ;;  %v1131_v0 = vrot.slane %v628_v33, 4 }
 0x111   : > { %v1137_v50 = vrot.slane %v629_v15, 4  ;;  %v1143_v14 = vrot.slane %v630_v47, 4  ;;  %v1149_v60 = vrot.slane %v631_v1, 4  ;;  %v1155_v19 = vrot.slane %v632_v63, 4 }
 0x112   : > { %v1114_v44 = vadd.f32 %v1113_v37, %v625_v27  ;;  %v1120_v41 = vadd.f32 %v1119_v25, %v626_v58  ;;  %v1126_v4 = vadd.f32 %v1125_v38, %v627_v2  ;;  %v1132_v53 = vadd.f32 %v1131_v0, %v628_v33 }
 0x113   : > { %v1138_v35 = vadd.f32 %v1137_v50, %v629_v15  ;;  %v1144_v10 = vadd.f32 %v1143_v14, %v630_v47  ;;  %v1150_v27 = vadd.f32 %v1149_v60, %v631_v1  ;;  %v1156_v3 = vadd.f32 %v1155_v19, %v632_v63 }
 0x114   : > { %v1115_v46 = vrot.slane %v1114_v44, 2  ;;  %v1121_v26 = vrot.slane %v1120_v41, 2  ;;  %v1127_v58 = vrot.slane %v1126_v4, 2  ;;  %v1133_v9 = vrot.slane %v1132_v53, 2 }
 0x115   : > { %v1139_v2 = vrot.slane %v1138_v35, 2  ;;  %v1145_v52 = vrot.slane %v1144_v10, 2  ;;  %v1151_v32 = vrot.slane %v1150_v27, 2  ;;  %v1157_v23 = vrot.slane %v1156_v3, 2 }
 0x116   : > { %v1116_v21 = vadd.f32 %v1115_v46, %v1114_v44  ;;  %v1122_v31 = vadd.f32 %v1121_v26, %v1120_v41  ;;  %v1128_v33 = vadd.f32 %v1127_v58, %v1126_v4  ;;  %v1134_v11 = vadd.f32 %v1133_v9, %v1132_v53 }
 0x117   : > { %v1140_v15 = vadd.f32 %v1139_v2, %v1138_v35  ;;  %v1146_v22 = vadd.f32 %v1145_v52, %v1144_v10  ;;  %v1152_v54 = vadd.f32 %v1151_v32, %v1150_v27  ;;  %v1158_v1 = vadd.f32 %v1157_v23, %v1156_v3 }
 0x118   : > { %v1117_v47 = vrot.slane %v1116_v21, 1  ;;  %v1123_v13 = vrot.slane %v1122_v31, 1  ;;  %v1129_v49 = vrot.slane %v1128_v33, 1  ;;  %v1135_v48 = vrot.slane %v1134_v11, 1 }
 0x119   : > { %v1141_v59 = vrot.slane %v1140_v15, 1  ;;  %v1147_v56 = vrot.slane %v1146_v22, 1  ;;  %v1153_v8 = vrot.slane %v1152_v54, 1  ;;  %v1159_v16 = vrot.slane %v1158_v1, 1 }
 0x11a   : > { %v1118_v62 = vadd.f32 %v1117_v47, %v1116_v21  ;;  %v1124_v43 = vadd.f32 %v1123_v13, %v1122_v31  ;;  %v1130_v55 = vadd.f32 %v1129_v49, %v1128_v33  ;;  %v1112_v34 = vadd.f32 %v1111_v45, %v1110_v5  ;;  %v507_v49 = vld [vmem:[%s7189_s21 + $0x148] sm:$0xff]  }
 0x11b   : > { %v1136_v29 = vadd.f32 %v1135_v48, %v1134_v11  ;;  %v1142_v17 = vadd.f32 %v1141_v59, %v1140_v15  ;;  %v1148_v30 = vadd.f32 %v1147_v56, %v1146_v22  ;;  %v1154_v20 = vadd.f32 %v1153_v8, %v1152_v54  ;;  %v505_v15 = vld [vmem:[%s7189_s21 + $0x140] sm:$0xff]   ;;  %v509_v8 = vld [vmem:[%s7189_s21 + $0x150] sm:$0xff]  }
 0x11c   : > { %v1160_v24 = vadd.f32 %v1159_v16, %v1158_v1  ;;  %v1520_v28 = vmul.f32 %v7243_v39, %v1070_v7  ;;  %v1521_v61 = vmul.f32 %v7243_v39, %v1076_v57  ;;  %v1522_v42 = vmul.f32 %v7243_v39, %v1082_v12 }
 0x11d   : > { %v1523_v63 = vmul.f32 %v7243_v39, %v1088_v18  ;;  %v1524_v36 = vmul.f32 %v7243_v39, %v1094_v6  ;;  %v1525_v37 = vmul.f32 %v7243_v39, %v1100_v40  ;;  %v1526_v25 = vmul.f32 %v7243_v39, %v1106_v51 }
 0x11e   : > { %v1528_v5 = vmul.f32 %v7243_v39, %v1118_v62  ;;  %v1529_v45 = vmul.f32 %v7243_v39, %v1124_v43  ;;  %v1530_v38 = vmul.f32 %v7243_v39, %v1130_v55  ;;  %v1527_v7 = vmul.f32 %v7243_v39, %v1112_v34  ;;  %v511_v55 = vld [vmem:[%s7189_s21 + $0x158] sm:$0xff]  }
 0x11f   : > { %v1531_v57 = vmul.f32 %v7243_v39, %v1136_v29  ;;  %v1532_v12 = vmul.f32 %v7243_v39, %v1142_v17  ;;  %v1533_v18 = vmul.f32 %v7243_v39, %v1148_v30  ;;  %v1534_v6 = vmul.f32 %v7243_v39, %v1154_v20  ;;  %v7728_v30 = vld [vmem:[%s7189_s21 + $0x160] sm:$0xff]  }
 0x120   : > { %v1535_v40 = vmul.f32 %v7243_v39, %v1160_v24  ;;  %v1648_v0 = vpack.c.bf16 %v1520_v28, %v1520_v28  ;;  %v1649_v51 = vpack.c.bf16 %v1521_v61, %v1521_v61  ;;  %v1650_v50 = vpack.c.bf16 %v1522_v42, %v1522_v42  ;;  %v7733_v42 = vld [vmem:[%s7189_s21 + $0x168] sm:$0xff]  }
 0x121   : > { %v1651_v14 = vpack.c.bf16 %v1523_v63, %v1523_v63  ;;  %v1652_v60 = vpack.c.bf16 %v1524_v36, %v1524_v36  ;;  %v1653_v44 = vpack.c.bf16 %v1525_v37, %v1525_v37  ;;  %v1654_v41 = vpack.c.bf16 %v1526_v25, %v1526_v25 }
 0x122   : > { %v1656_v4 = vpack.c.bf16 %v1528_v5, %v1528_v5  ;;  %v1657_v19 = vpack.c.bf16 %v1529_v45, %v1529_v45  ;;  %v1658_v53 = vpack.c.bf16 %v1530_v38, %v1530_v38  ;;  %v1655_v35 = vpack.c.bf16 %v1527_v7, %v1527_v7  ;;  %v7738_v5 = vld [vmem:[%s7189_s21 + $0x170] sm:$0xff]   ;;  %v7741_v45 = vld [vmem:[%s7189_s21 + $0x178] sm:$0xff]  }
 0x123   : > { %v1659_v10 = vpack.c.bf16 %v1531_v57, %v1531_v57  ;;  %v1660_v27 = vpack.c.bf16 %v1532_v12, %v1532_v12  ;;  %v1661_v46 = vpack.c.bf16 %v1533_v18, %v1533_v18  ;;  %v1662_v26 = vpack.c.bf16 %v1534_v6, %v1534_v6 }
 0x124   : > { %v1663_v58 = vpack.c.bf16 %v1535_v40, %v1535_v40  ;;  %v1920_v3 = vunpack.c.l.b16 %v1648_v0  ;;  %v1921_v9 = vunpack.c.l.b16 %v1649_v51  ;;  %v1922_v2 = vunpack.c.l.b16 %v1650_v50 }
 0x125   : > { %v1923_v52 = vunpack.c.l.b16 %v1651_v14  ;;  %v1924_v32 = vunpack.c.l.b16 %v1652_v60  ;;  %v1925_v21 = vunpack.c.l.b16 %v1653_v44  ;;  %v1926_v31 = vunpack.c.l.b16 %v1654_v41 }
 0x126   : > { %v1928_v33 = vunpack.c.l.b16 %v1656_v4  ;;  %v1929_v23 = vunpack.c.l.b16 %v1657_v19  ;;  %v1930_v11 = vunpack.c.l.b16 %v1658_v53  ;;  %v1927_v22 = vunpack.c.l.b16 %v1655_v35 }
 0x127   : > { %v1931_v54 = vunpack.c.l.b16 %v1659_v10  ;;  %v1932_v47 = vunpack.c.l.b16 %v1660_v27  ;;  %v1933_v13 = vunpack.c.l.b16 %v1661_v46  ;;  %v1934_v1 = vunpack.c.l.b16 %v1662_v26 }
 0x128   : > { %v1935_v48 = vunpack.c.l.b16 %v1663_v58  ;;  %v2047_v59 = vsel %vm1984_vm1, %v1921_v9, %v1920_v3  ;;  %v2054_v56 = vsel %vm1984_vm1, %v1929_v23, %v1928_v33  ;;  %v633_v16 = vunpack.c.l.bf16 %v505_v15 }
 0x129   : > { %v2048_v62 = vsel %vm1986_vm2, %v1922_v2, %v2047_v59  ;;  %v2055_v43 = vsel %vm1986_vm2, %v1930_v11, %v2054_v56  ;;  %v634_v34 = vunpack.c.h.bf16 %v505_v15  ;;  %v635_v20 = vunpack.c.l.bf16 %v507_v49 }
 0x12a   : > { %v2049_v29 = vsel %vm1988_vm3, %v1923_v52, %v2048_v62  ;;  %v2056_v17 = vsel %vm1988_vm3, %v1931_v54, %v2055_v43  ;;  %v636_v24 = vunpack.c.h.bf16 %v507_v49  ;;  %v637_v63 = vunpack.c.l.bf16 %v509_v8 }
 0x12b   : > { %v2050_v28 = vsel %vm1990_vm4, %v1924_v32, %v2049_v29  ;;  %v2057_v61 = vsel %vm1990_vm4, %v1932_v47, %v2056_v17  ;;  %v638_v36 = vunpack.c.h.bf16 %v509_v8  ;;  %v639_v38 = vunpack.c.l.bf16 %v511_v55 }
 0x12c   : > { %v2051_v37 = vsel %vm1992_vm5, %v1925_v21, %v2050_v28  ;;  %v2058_v25 = vsel %vm1992_vm5, %v1933_v13, %v2057_v61  ;;  %v640_v7 = vunpack.c.h.bf16 %v511_v55  ;;  %v641_v18 = vunpack.c.l.bf16 %v7728_v30 }
 0x12d   : > { %v2052_v57 = vsel %vm1994_vm6, %v1926_v31, %v2051_v37  ;;  %v2059_v12 = vsel %vm1994_vm6, %v1934_v1, %v2058_v25  ;;  %v642_v6 = vunpack.c.h.bf16 %v7728_v30  ;;  %v643_v51 = vunpack.c.l.bf16 %v7733_v42 }
 0x12e   : > { %v2053_v40 = vsel %vm1996_vm7, %v1927_v22, %v2052_v57  ;;  %v2060_v0 = vsel %vm1996_vm7, %v1935_v48, %v2059_v12  ;;  %v644_v50 = vunpack.c.h.bf16 %v7733_v42  ;;  %v645_v60 = vunpack.c.l.bf16 %v7738_v5  ;;  %v5290_v12 = vld [vmem:[%s7189_s21 + $0x98] sm:$0xff] }
 0x12f   : > { %v2107_v14 = vpack.c.b16 %v2060_v0, %v2053_v40  ;;  %v646_v44 = vunpack.c.h.bf16 %v7738_v5  ;;  %v647_v41 = vunpack.c.l.bf16 %v7741_v45  ;;  %v1161_v4 = vrot.slane %v633_v16, 4  ;;  %2783 = vmatmul.bf16.gmra.mxu1 %v5290_v12  ;;  %3432 = vmatmul.bf16.gmra.mxu2 %v5290_v12 }
 0x130   : > { %v1167_v19 = vrot.slane %v634_v34, 4  ;;  %v1173_v53 = vrot.slane %v635_v20, 4  ;;  %v1179_v35 = vrot.slane %v636_v24, 4  ;;  %v1185_v10 = vrot.slane %v637_v63, 4  ;;  %4081 = vmatmul.bf16.gmra.mxu3 %v5290_v12 }
 0x131   : > { %2195 = vmatmul.bf16.gmra.mxu0 %v2107_v14  ;;  %v1191_v27 = vrot.slane %v638_v36, 4  ;;  %v1197_v46 = vrot.slane %v639_v38, 4  ;;  %v1203_v26 = vrot.slane %v640_v7, 4  ;;  %v1162_v58 = vadd.f32 %v1161_v4, %v633_v16 }
 0x132   : > { %v1168_v3 = vadd.f32 %v1167_v19, %v634_v34  ;;  %v1174_v9 = vadd.f32 %v1173_v53, %v635_v20  ;;  %v1180_v2 = vadd.f32 %v1179_v35, %v636_v24  ;;  %v1186_v52 = vadd.f32 %v1185_v10, %v637_v63 }
 0x133   : > { %v1192_v32 = vadd.f32 %v1191_v27, %v638_v36  ;;  %v1198_v21 = vadd.f32 %v1197_v46, %v639_v38  ;;  %v1204_v31 = vadd.f32 %v1203_v26, %v640_v7  ;;  %v1163_v33 = vrot.slane %v1162_v58, 2 }
 0x134   : > { %v1169_v23 = vrot.slane %v1168_v3, 2  ;;  %v1175_v11 = vrot.slane %v1174_v9, 2  ;;  %v1181_v15 = vrot.slane %v1180_v2, 2  ;;  %v1187_v22 = vrot.slane %v1186_v52, 2 }
 0x135   : > { %v1193_v54 = vrot.slane %v1192_v32, 2  ;;  %v1199_v47 = vrot.slane %v1198_v21, 2  ;;  %v1205_v13 = vrot.slane %v1204_v31, 2  ;;  %v1164_v49 = vadd.f32 %v1163_v33, %v1162_v58 }
 0x136   : > { %v1170_v1 = vadd.f32 %v1169_v23, %v1168_v3  ;;  %v1176_v48 = vadd.f32 %v1175_v11, %v1174_v9  ;;  %v1182_v59 = vadd.f32 %v1181_v15, %v1180_v2  ;;  %v1188_v56 = vadd.f32 %v1187_v22, %v1186_v52 }
 0x137   : > { %v1194_v8 = vadd.f32 %v1193_v54, %v1192_v32  ;;  %v1200_v62 = vadd.f32 %v1199_v47, %v1198_v21  ;;  %v7754_v43 = vadd.f32 %v1205_v13, %v1204_v31  ;;  %v1165_v55 = vrot.slane %v1164_v49, 1 }
 0x138   : > { %v1171_v16 = vrot.slane %v1170_v1, 1  ;;  %v1177_v34 = vrot.slane %v1176_v48, 1  ;;  %v1183_v29 = vrot.slane %v1182_v59, 1  ;;  %v648_v17 = vunpack.c.h.bf16 %v7741_v45 }
 0x139   : > { %v1189_v20 = vrot.slane %v1188_v56, 1  ;;  %v1195_v24 = vrot.slane %v1194_v8, 1  ;;  %v1201_v28 = vrot.slane %v1200_v62, 1  ;;  %v1166_v61 = vadd.f32 %v1165_v55, %v1164_v49 }
 0x13a   : > { %v1172_v63 = vadd.f32 %v1171_v16, %v1170_v1  ;;  %v1178_v36 = vadd.f32 %v1177_v34, %v1176_v48  ;;  %v1207_v37 = vrot.slane %v7754_v43, 1  ;;  %v1184_v25 = vadd.f32 %v1183_v29, %v1182_v59 }
 0x13b   : > { %v1190_v38 = vadd.f32 %v1189_v20, %v1188_v56  ;;  %v1196_v7 = vadd.f32 %v1195_v24, %v1194_v8  ;;  %v1202_v57 = vadd.f32 %v1201_v28, %v1200_v62  ;;  %v1209_v40 = vrot.slane %v641_v18, 4 }
 0x13c   : > { %v1215_v0 = vrot.slane %v642_v6, 4  ;;  %v1221_v14 = vrot.slane %v643_v51, 4  ;;  %v1227_v4 = vrot.slane %v644_v50, 4  ;;  %v1233_v19 = vrot.slane %v645_v60, 4 }
 0x13d   : > { %v1239_v53 = vrot.slane %v646_v44, 4  ;;  %v1245_v35 = vrot.slane %v647_v41, 4  ;;  %v1251_v10 = vrot.slane %v648_v17, 4  ;;  %v1210_v27 = vadd.f32 %v1209_v40, %v641_v18 }
 0x13e   : > { %v1216_v46 = vadd.f32 %v1215_v0, %v642_v6  ;;  %v1222_v26 = vadd.f32 %v1221_v14, %v643_v51  ;;  %v1228_v58 = vadd.f32 %v1227_v4, %v644_v50  ;;  %v1234_v3 = vadd.f32 %v1233_v19, %v645_v60 }
 0x13f   : > { %v1240_v9 = vadd.f32 %v1239_v53, %v646_v44  ;;  %v1246_v2 = vadd.f32 %v1245_v35, %v647_v41  ;;  %v1252_v18 = vadd.f32 %v1251_v10, %v648_v17  ;;  %v1211_v52 = vrot.slane %v1210_v27, 2 }
 0x140   : > { %v1217_v30 = vrot.slane %v1216_v46, 2  ;;  %v1223_v6 = vrot.slane %v1222_v26, 2  ;;  %v1229_v32 = vrot.slane %v1228_v58, 2  ;;  %v1235_v21 = vrot.slane %v1234_v3, 2 }
 0x141   : > { %v1241_v51 = vrot.slane %v1240_v9, 2  ;;  %v1247_v31 = vrot.slane %v1246_v2, 2  ;;  %v1253_v42 = vrot.slane %v1252_v18, 2  ;;  %v1212_v50 = vadd.f32 %v1211_v52, %v1210_v27 }
 0x142   : > { %v1218_v33 = vadd.f32 %v1217_v30, %v1216_v46  ;;  %v1224_v23 = vadd.f32 %v1223_v6, %v1222_v26  ;;  %v1230_v11 = vadd.f32 %v1229_v32, %v1228_v58  ;;  %v1236_v60 = vadd.f32 %v1235_v21, %v1234_v3 }
 0x143   : > { %v1242_v15 = vadd.f32 %v1241_v51, %v1240_v9  ;;  %v1248_v5 = vadd.f32 %v1247_v31, %v1246_v2  ;;  %v1254_v44 = vadd.f32 %v1253_v42, %v1252_v18  ;;  %v1213_v22 = vrot.slane %v1212_v50, 1 }
 0x144   : > { %v1219_v45 = vrot.slane %v1218_v33, 1  ;;  %v1225_v41 = vrot.slane %v1224_v23, 1  ;;  %v1231_v54 = vrot.slane %v1230_v11, 1  ;;  %v1237_v47 = vrot.slane %v1236_v60, 1 }
 0x145   : > { %v1243_v13 = vrot.slane %v1242_v15, 1  ;;  %v1249_v49 = vrot.slane %v1248_v5, 1  ;;  %v1255_v1 = vrot.slane %v1254_v44, 1  ;;  %v1214_v48 = vadd.f32 %v1213_v22, %v1212_v50 }
 0x146   : > { %v1220_v59 = vadd.f32 %v1219_v45, %v1218_v33  ;;  %v1226_v56 = vadd.f32 %v1225_v41, %v1224_v23  ;;  %v1232_v8 = vadd.f32 %v1231_v54, %v1230_v11  ;;  %v1208_v62 = vadd.f32 %v1207_v37, %v7754_v43  ;;  %v521_v33 = vld [vmem:[%s7189_s21 + $0x180] sm:$0xff]   ;;  %v525_v54 = vld [vmem:[%s7189_s21 + $0x190] sm:$0xff]  }
 0x147   : > { %v1238_v55 = vadd.f32 %v1237_v47, %v1236_v60  ;;  %v1244_v16 = vadd.f32 %v1243_v13, %v1242_v15  ;;  %v1250_v34 = vadd.f32 %v1249_v49, %v1248_v5  ;;  %v1256_v29 = vadd.f32 %v1255_v1, %v1254_v44  ;;  %v523_v5 = vld [vmem:[%s7189_s21 + $0x188] sm:$0xff]   ;;  %v527_v1 = vld [vmem:[%s7189_s21 + $0x198] sm:$0xff]  }
 0x148   : > { %v1536_v17 = vmul.f32 %v7243_v39, %v1166_v61  ;;  %v1537_v20 = vmul.f32 %v7243_v39, %v1172_v63  ;;  %v1538_v24 = vmul.f32 %v7243_v39, %v1178_v36  ;;  %v1539_v28 = vmul.f32 %v7243_v39, %v1184_v25 }
 0x149   : > { %v1540_v12 = vmul.f32 %v7243_v39, %v1190_v38  ;;  %v1541_v40 = vmul.f32 %v7243_v39, %v1196_v7  ;;  %v1542_v0 = vmul.f32 %v7243_v39, %v1202_v57  ;;  %v1544_v43 = vmul.f32 %v7243_v39, %v1214_v48 }
 0x14a   : > { %v1545_v37 = vmul.f32 %v7243_v39, %v1220_v59  ;;  %v1546_v14 = vmul.f32 %v7243_v39, %v1226_v56  ;;  %v1547_v61 = vmul.f32 %v7243_v39, %v1232_v8  ;;  %v1543_v63 = vmul.f32 %v7243_v39, %v1208_v62  ;;  %v7813_v8 = vld [vmem:[%s7189_s21 + $0x1a0] sm:$0xff]  }
 0x14b   : > { %v1548_v36 = vmul.f32 %v7243_v39, %v1238_v55  ;;  %v1549_v25 = vmul.f32 %v7243_v39, %v1244_v16  ;;  %v1550_v38 = vmul.f32 %v7243_v39, %v1250_v34  ;;  %v1551_v7 = vmul.f32 %v7243_v39, %v1256_v29  ;;  %v7818_v29 = vld [vmem:[%s7189_s21 + $0x1a8] sm:$0xff]  }
 0x14c   : > { %v1664_v4 = vpack.c.bf16 %v1536_v17, %v1536_v17  ;;  %v1665_v57 = vpack.c.bf16 %v1537_v20, %v1537_v20  ;;  %v1666_v19 = vpack.c.bf16 %v1538_v24, %v1538_v24  ;;  %v1667_v53 = vpack.c.bf16 %v1539_v28, %v1539_v28 }
 0x14d   : > { %v1668_v35 = vpack.c.bf16 %v1540_v12, %v1540_v12  ;;  %v1669_v10 = vpack.c.bf16 %v1541_v40, %v1541_v40  ;;  %v1670_v27 = vpack.c.bf16 %v1542_v0, %v1542_v0  ;;  %v1672_v46 = vpack.c.bf16 %v1544_v43, %v1544_v43  ;;  %v7823_v12 = vld [vmem:[%s7189_s21 + $0x1b0] sm:$0xff]  }
 0x14e   : > { %v1673_v26 = vpack.c.bf16 %v1545_v37, %v1545_v37  ;;  %v1674_v58 = vpack.c.bf16 %v1546_v14, %v1546_v14  ;;  %v1675_v3 = vpack.c.bf16 %v1547_v61, %v1547_v61  ;;  %v1671_v9 = vpack.c.bf16 %v1543_v63, %v1543_v63  ;;  %v7828_v14 = vld [vmem:[%s7189_s21 + $0x1b8] sm:$0xff]  }
 0x14f   : > { %v1676_v2 = vpack.c.bf16 %v1548_v36, %v1548_v36  ;;  %v1677_v18 = vpack.c.bf16 %v1549_v25, %v1549_v25  ;;  %v1678_v52 = vpack.c.bf16 %v1550_v38, %v1550_v38  ;;  %v1679_v30 = vpack.c.bf16 %v1551_v7, %v1551_v7 }
 0x150   : > { %v1936_v6 = vunpack.c.l.b16 %v1664_v4  ;;  %v1937_v32 = vunpack.c.l.b16 %v1665_v57  ;;  %v1938_v21 = vunpack.c.l.b16 %v1666_v19  ;;  %v1939_v51 = vunpack.c.l.b16 %v1667_v53 }
 0x151   : > { %v1940_v31 = vunpack.c.l.b16 %v1668_v35  ;;  %v1941_v42 = vunpack.c.l.b16 %v1669_v10  ;;  %v1942_v50 = vunpack.c.l.b16 %v1670_v27  ;;  %v1944_v23 = vunpack.c.l.b16 %v1672_v46 }
 0x152   : > { %v1945_v11 = vunpack.c.l.b16 %v1673_v26  ;;  %v1946_v60 = vunpack.c.l.b16 %v1674_v58  ;;  %v1947_v15 = vunpack.c.l.b16 %v1675_v3  ;;  %v1943_v44 = vunpack.c.l.b16 %v1671_v9 }
 0x153   : > { %v1948_v22 = vunpack.c.l.b16 %v1676_v2  ;;  %v1949_v45 = vunpack.c.l.b16 %v1677_v18  ;;  %v1950_v41 = vunpack.c.l.b16 %v1678_v52  ;;  %v1951_v47 = vunpack.c.l.b16 %v1679_v30 }
 0x154   : > { %v2061_v13 = vsel %vm1984_vm1, %v1937_v32, %v1936_v6  ;;  %v2068_v49 = vsel %vm1984_vm1, %v1945_v11, %v1944_v23  ;;  %v649_v48 = vunpack.c.l.bf16 %v521_v33  ;;  %v650_v62 = vunpack.c.h.bf16 %v521_v33 }
 0x155   : > { %v2062_v59 = vsel %vm1986_vm2, %v1938_v21, %v2061_v13  ;;  %v2069_v56 = vsel %vm1986_vm2, %v1946_v60, %v2068_v49  ;;  %v651_v55 = vunpack.c.l.bf16 %v523_v5  ;;  %v652_v17 = vunpack.c.h.bf16 %v523_v5 }
 0x156   : > { %v2063_v16 = vsel %vm1988_vm3, %v1939_v51, %v2062_v59  ;;  %v2070_v34 = vsel %vm1988_vm3, %v1947_v15, %v2069_v56  ;;  %v653_v20 = vunpack.c.l.bf16 %v525_v54  ;;  %v654_v40 = vunpack.c.h.bf16 %v525_v54 }
 0x157   : > { %v2064_v24 = vsel %vm1990_vm4, %v1940_v31, %v2063_v16  ;;  %v2071_v28 = vsel %vm1990_vm4, %v1948_v22, %v2070_v34  ;;  %v655_v0 = vunpack.c.l.bf16 %v527_v1  ;;  %v656_v61 = vunpack.c.h.bf16 %v527_v1 }
 0x158   : > { %v2065_v43 = vsel %vm1992_vm5, %v1941_v42, %v2064_v24  ;;  %v2072_v37 = vsel %vm1992_vm5, %v1949_v45, %v2071_v28  ;;  %v657_v63 = vunpack.c.l.bf16 %v7813_v8  ;;  %v658_v38 = vunpack.c.h.bf16 %v7813_v8 }
 0x159   : > { %v2066_v36 = vsel %vm1994_vm6, %v1942_v50, %v2065_v43  ;;  %v2073_v25 = vsel %vm1994_vm6, %v1950_v41, %v2072_v37  ;;  %v659_v7 = vunpack.c.l.bf16 %v7818_v29  ;;  %v660_v19 = vunpack.c.h.bf16 %v7818_v29 }
 0x15a   : > { %v2067_v4 = vsel %vm1996_vm7, %v1943_v44, %v2066_v36  ;;  %v2074_v57 = vsel %vm1996_vm7, %v1951_v47, %v2073_v25  ;;  %v661_v53 = vunpack.c.l.bf16 %v7823_v12  ;;  %v662_v10 = vunpack.c.h.bf16 %v7823_v12 }
 0x15b   : > { %v2108_v35 = vpack.c.b16 %v2074_v57, %v2067_v4  ;;  %v663_v27 = vunpack.c.l.bf16 %v7828_v14  ;;  %v1257_v46 = vrot.slane %v649_v48, 4  ;;  %v1263_v26 = vrot.slane %v650_v62, 4  ;;  %v5291_v4 = vld [vmem:[%s7189_s21 + $0xa0] sm:$0xff] }
 0x15c   : > { %v1269_v58 = vrot.slane %v651_v55, 4  ;;  %v1275_v3 = vrot.slane %v652_v17, 4  ;;  %v1281_v9 = vrot.slane %v653_v20, 4  ;;  %v1287_v18 = vrot.slane %v654_v40, 4  ;;  %2788 = vmatmul.bf16.gmra.mxu1 %v5291_v4  ;;  %3437 = vmatmul.bf16.gmra.mxu2 %v5291_v4 }
 0x15d   : > { %2200 = vmatmul.bf16.gmra.mxu0 %v2108_v35  ;;  %v1258_v2 = vadd.f32 %v1257_v46, %v649_v48  ;;  %v1293_v52 = vrot.slane %v655_v0, 4  ;;  %v1299_v30 = vrot.slane %v656_v61, 4  ;;  %v1264_v6 = vadd.f32 %v1263_v26, %v650_v62  ;;  %4086 = vmatmul.bf16.gmra.mxu3 %v5291_v4 }
 0x15e   : > { %v1270_v32 = vadd.f32 %v1269_v58, %v651_v55  ;;  %v1276_v21 = vadd.f32 %v1275_v3, %v652_v17  ;;  %v1282_v51 = vadd.f32 %v1281_v9, %v653_v20  ;;  %v1288_v42 = vadd.f32 %v1287_v18, %v654_v40 }
 0x15f   : > { %v1259_v31 = vrot.slane %v1258_v2, 2  ;;  %v1294_v50 = vadd.f32 %v1293_v52, %v655_v0  ;;  %v1300_v33 = vadd.f32 %v1299_v30, %v656_v61  ;;  %v1265_v23 = vrot.slane %v1264_v6, 2 }
 0x160   : > { %v1271_v11 = vrot.slane %v1270_v32, 2  ;;  %v1277_v60 = vrot.slane %v1276_v21, 2  ;;  %v1283_v15 = vrot.slane %v1282_v51, 2  ;;  %v1289_v44 = vrot.slane %v1288_v42, 2 }
 0x161   : > { %v1260_v5 = vadd.f32 %v1259_v31, %v1258_v2  ;;  %v1295_v22 = vrot.slane %v1294_v50, 2  ;;  %v1301_v45 = vrot.slane %v1300_v33, 2  ;;  %v1266_v41 = vadd.f32 %v1265_v23, %v1264_v6 }
 0x162   : > { %v1272_v54 = vadd.f32 %v1271_v11, %v1270_v32  ;;  %v1278_v47 = vadd.f32 %v1277_v60, %v1276_v21  ;;  %v1284_v13 = vadd.f32 %v1283_v15, %v1282_v51  ;;  %v1290_v1 = vadd.f32 %v1289_v44, %v1288_v42 }
 0x163   : > { %v1261_v49 = vrot.slane %v1260_v5, 1  ;;  %v1296_v48 = vadd.f32 %v1295_v22, %v1294_v50  ;;  %v1302_v59 = vadd.f32 %v1301_v45, %v1300_v33  ;;  %v1267_v56 = vrot.slane %v1266_v41, 1 }
 0x164   : > { %v1273_v62 = vrot.slane %v1272_v54, 1  ;;  %v1279_v55 = vrot.slane %v1278_v47, 1  ;;  %v1285_v16 = vrot.slane %v1284_v13, 1  ;;  %v664_v34 = vunpack.c.h.bf16 %v7828_v14 }
 0x165   : > { %v1262_v17 = vadd.f32 %v1261_v49, %v1260_v5  ;;  %v1291_v20 = vrot.slane %v1290_v1, 1  ;;  %v1297_v24 = vrot.slane %v1296_v48, 1  ;;  %v1268_v28 = vadd.f32 %v1267_v56, %v1266_v41 }
 0x166   : > { %v1274_v40 = vadd.f32 %v1273_v62, %v1272_v54  ;;  %v1280_v0 = vadd.f32 %v1279_v55, %v1278_v47  ;;  %v1303_v43 = vrot.slane %v1302_v59, 1  ;;  %v1286_v37 = vadd.f32 %v1285_v16, %v1284_v13 }
 0x167   : > { %v1292_v61 = vadd.f32 %v1291_v20, %v1290_v1  ;;  %v1298_v36 = vadd.f32 %v1297_v24, %v1296_v48  ;;  %v1305_v25 = vrot.slane %v657_v63, 4  ;;  %v1311_v57 = vrot.slane %v658_v38, 4 }
 0x168   : > { %v1317_v35 = vrot.slane %v659_v7, 4  ;;  %v1323_v46 = vrot.slane %v660_v19, 4  ;;  %v1329_v26 = vrot.slane %v661_v53, 4  ;;  %v1335_v3 = vrot.slane %v662_v10, 4 }
 0x169   : > { %v1306_v58 = vadd.f32 %v1305_v25, %v657_v63  ;;  %v1341_v9 = vrot.slane %v663_v27, 4  ;;  %v1347_v2 = vrot.slane %v664_v34, 4  ;;  %v1312_v18 = vadd.f32 %v1311_v57, %v658_v38 }
 0x16a   : > { %v1318_v52 = vadd.f32 %v1317_v35, %v659_v7  ;;  %v1324_v30 = vadd.f32 %v1323_v46, %v660_v19  ;;  %v1330_v63 = vadd.f32 %v1329_v26, %v661_v53  ;;  %v1336_v32 = vadd.f32 %v1335_v3, %v662_v10 }
 0x16b   : > { %v1307_v6 = vrot.slane %v1306_v58, 2  ;;  %v1342_v21 = vadd.f32 %v1341_v9, %v663_v27  ;;  %v1348_v51 = vadd.f32 %v1347_v2, %v664_v34  ;;  %v1313_v8 = vrot.slane %v1312_v18, 2 }
 0x16c   : > { %v1319_v38 = vrot.slane %v1318_v52, 2  ;;  %v1325_v31 = vrot.slane %v1324_v30, 2  ;;  %v1331_v42 = vrot.slane %v1330_v63, 2  ;;  %v1337_v50 = vrot.slane %v1336_v32, 2 }
 0x16d   : > { %v1308_v7 = vadd.f32 %v1307_v6, %v1306_v58  ;;  %v1343_v29 = vrot.slane %v1342_v21, 2  ;;  %v1349_v19 = vrot.slane %v1348_v51, 2  ;;  %v1314_v33 = vadd.f32 %v1313_v8, %v1312_v18 }
 0x16e   : > { %v1320_v23 = vadd.f32 %v1319_v38, %v1318_v52  ;;  %v1326_v53 = vadd.f32 %v1325_v31, %v1324_v30  ;;  %v1332_v11 = vadd.f32 %v1331_v42, %v1330_v63  ;;  %v1338_v15 = vadd.f32 %v1337_v50, %v1336_v32 }
 0x16f   : > { %v1309_v60 = vrot.slane %v1308_v7, 1  ;;  %v1344_v12 = vadd.f32 %v1343_v29, %v1342_v21  ;;  %v1350_v10 = vadd.f32 %v1349_v19, %v1348_v51  ;;  %v1315_v5 = vrot.slane %v1314_v33, 1 }
 0x170   : > { %v1321_v14 = vrot.slane %v1320_v23, 1  ;;  %v1327_v27 = vrot.slane %v1326_v53, 1  ;;  %v1333_v44 = vrot.slane %v1332_v11, 1  ;;  %v1339_v45 = vrot.slane %v1338_v15, 1 }
 0x171   : > { %v1310_v22 = vadd.f32 %v1309_v60, %v1308_v7  ;;  %v1345_v41 = vrot.slane %v1344_v12, 1  ;;  %v1351_v54 = vrot.slane %v1350_v10, 1  ;;  %v1304_v47 = vadd.f32 %v1303_v43, %v1302_v59 }
 0x172   : > { %v1316_v13 = vadd.f32 %v1315_v5, %v1314_v33  ;;  %v1322_v49 = vadd.f32 %v1321_v14, %v1320_v23  ;;  %v1328_v1 = vadd.f32 %v1327_v27, %v1326_v53  ;;  %v1334_v48 = vadd.f32 %v1333_v44, %v1332_v11  ;;  %v537_v23 = vld [vmem:[%s7189_s21 + $0x1c0] sm:$0xff]   ;;  %v541_v44 = vld [vmem:[%s7189_s21 + $0x1d0] sm:$0xff]  }
 0x173   : > { %v1340_v56 = vadd.f32 %v1339_v45, %v1338_v15  ;;  %v1346_v62 = vadd.f32 %v1345_v41, %v1344_v12  ;;  %v1552_v55 = vmul.f32 %v7243_v39, %v1262_v17  ;;  %v1352_v16 = vadd.f32 %v1351_v54, %v1350_v10  ;;  %v539_v12 = vld [vmem:[%s7189_s21 + $0x1c8] sm:$0xff]   ;;  %v543_v54 = vld [vmem:[%s7189_s21 + $0x1d8] sm:$0xff]  }
 0x174   : > { %v1553_v34 = vmul.f32 %v7243_v39, %v1268_v28  ;;  %v1554_v20 = vmul.f32 %v7243_v39, %v1274_v40  ;;  %v1555_v24 = vmul.f32 %v7243_v39, %v1280_v0  ;;  %v1556_v25 = vmul.f32 %v7243_v39, %v1286_v37 }
 0x175   : > { %v1557_v4 = vmul.f32 %v7243_v39, %v1292_v61  ;;  %v1558_v59 = vmul.f32 %v7243_v39, %v1298_v36  ;;  %v1560_v43 = vmul.f32 %v7243_v39, %v1310_v22  ;;  %v1559_v57 = vmul.f32 %v7243_v39, %v1304_v47 }
 0x176   : > { %v1561_v35 = vmul.f32 %v7243_v39, %v1316_v13  ;;  %v1562_v17 = vmul.f32 %v7243_v39, %v1322_v49  ;;  %v1563_v28 = vmul.f32 %v7243_v39, %v1328_v1  ;;  %v1564_v40 = vmul.f32 %v7243_v39, %v1334_v48  ;;  %v7897_v1 = vld [vmem:[%s7189_s21 + $0x1e0] sm:$0xff]  }
 0x177   : > { %v1565_v0 = vmul.f32 %v7243_v39, %v1340_v56  ;;  %v1566_v37 = vmul.f32 %v7243_v39, %v1346_v62  ;;  %v1680_v46 = vpack.c.bf16 %v1552_v55, %v1552_v55  ;;  %v1567_v61 = vmul.f32 %v7243_v39, %v1352_v16  ;;  %v7902_v16 = vld [vmem:[%s7189_s21 + $0x1e8] sm:$0xff]  }
 0x178   : > { %v1681_v36 = vpack.c.bf16 %v1553_v34, %v1553_v34  ;;  %v1682_v26 = vpack.c.bf16 %v1554_v20, %v1554_v20  ;;  %v1683_v58 = vpack.c.bf16 %v1555_v24, %v1555_v24  ;;  %v1684_v3 = vpack.c.bf16 %v1556_v25, %v1556_v25 }
 0x179   : > { %v1685_v9 = vpack.c.bf16 %v1557_v4, %v1557_v4  ;;  %v1686_v2 = vpack.c.bf16 %v1558_v59, %v1558_v59  ;;  %v1688_v18 = vpack.c.bf16 %v1560_v43, %v1560_v43  ;;  %v1687_v52 = vpack.c.bf16 %v1559_v57, %v1559_v57  ;;  %v7907_v4 = vld [vmem:[%s7189_s21 + $0x1f0] sm:$0xff]  }
 0x17a   : > { %v1689_v30 = vpack.c.bf16 %v1561_v35, %v1561_v35  ;;  %v1690_v63 = vpack.c.bf16 %v1562_v17, %v1562_v17  ;;  %v1691_v6 = vpack.c.bf16 %v1563_v28, %v1563_v28  ;;  %v1692_v32 = vpack.c.bf16 %v1564_v40, %v1564_v40  ;;  %v7912_v17 = vld [vmem:[%s7189_s21 + $0x1f8] sm:$0xff]  }
 0x17b   : > { %v1693_v21 = vpack.c.bf16 %v1565_v0, %v1565_v0  ;;  %v1694_v51 = vpack.c.bf16 %v1566_v37, %v1566_v37  ;;  %v1952_v8 = vunpack.c.l.b16 %v1680_v46  ;;  %v1695_v38 = vpack.c.bf16 %v1567_v61, %v1567_v61 }
 0x17c   : > { %v1953_v31 = vunpack.c.l.b16 %v1681_v36  ;;  %v1954_v42 = vunpack.c.l.b16 %v1682_v26  ;;  %v1955_v7 = vunpack.c.l.b16 %v1683_v58  ;;  %v1956_v50 = vunpack.c.l.b16 %v1684_v3 }
 0x17d   : > { %v1957_v29 = vunpack.c.l.b16 %v1685_v9  ;;  %v1958_v19 = vunpack.c.l.b16 %v1686_v2  ;;  %v1960_v33 = vunpack.c.l.b16 %v1688_v18  ;;  %v1959_v53 = vunpack.c.l.b16 %v1687_v52 }
 0x17e   : > { %v1961_v11 = vunpack.c.l.b16 %v1689_v30  ;;  %v1962_v60 = vunpack.c.l.b16 %v1690_v63  ;;  %v1963_v15 = vunpack.c.l.b16 %v1691_v6  ;;  %v1964_v10 = vunpack.c.l.b16 %v1692_v32 }
 0x17f   : > { %v1965_v5 = vunpack.c.l.b16 %v1693_v21  ;;  %v1966_v14 = vunpack.c.l.b16 %v1694_v51  ;;  %v2075_v27 = vsel %vm1984_vm1, %v1953_v31, %v1952_v8  ;;  %v1967_v22 = vunpack.c.l.b16 %v1695_v38 }
 0x180   : > { %v2076_v45 = vsel %vm1986_vm2, %v1954_v42, %v2075_v27  ;;  %v2082_v41 = vsel %vm1984_vm1, %v1961_v11, %v1960_v33  ;;  %v665_v47 = vunpack.c.l.bf16 %v537_v23  ;;  %v666_v48 = vunpack.c.h.bf16 %v537_v23 }
 0x181   : > { %v2077_v13 = vsel %vm1988_vm3, %v1955_v7, %v2076_v45  ;;  %v2083_v49 = vsel %vm1986_vm2, %v1962_v60, %v2082_v41  ;;  %v667_v56 = vunpack.c.l.bf16 %v539_v12  ;;  %v668_v34 = vunpack.c.h.bf16 %v539_v12 }
 0x182   : > { %v2078_v62 = vsel %vm1990_vm4, %v1956_v50, %v2077_v13  ;;  %v2084_v55 = vsel %vm1988_vm3, %v1963_v15, %v2083_v49  ;;  %v669_v20 = vunpack.c.l.bf16 %v541_v44  ;;  %v670_v59 = vunpack.c.h.bf16 %v541_v44 }
 0x183   : > { %v2079_v24 = vsel %vm1992_vm5, %v1957_v29, %v2078_v62  ;;  %v2085_v25 = vsel %vm1990_vm4, %v1964_v10, %v2084_v55  ;;  %v671_v43 = vunpack.c.l.bf16 %v543_v54  ;;  %v672_v28 = vunpack.c.h.bf16 %v543_v54 }
 0x184   : > { %v2080_v57 = vsel %vm1994_vm6, %v1958_v19, %v2079_v24  ;;  %v2086_v35 = vsel %vm1992_vm5, %v1965_v5, %v2085_v25  ;;  %v673_v40 = vunpack.c.l.bf16 %v7897_v1  ;;  %v674_v46 = vunpack.c.h.bf16 %v7897_v1 }
 0x185   : > { %v2081_v0 = vsel %vm1996_vm7, %v1959_v53, %v2080_v57  ;;  %v2087_v37 = vsel %vm1994_vm6, %v1966_v14, %v2086_v35  ;;  %v675_v61 = vunpack.c.l.bf16 %v7902_v16  ;;  %v676_v26 = vunpack.c.h.bf16 %v7902_v16  ;;  %v5292_v35 = vld [vmem:[%s7189_s21 + $0xa8] sm:$0xff] }
 0x186   : > { %v2088_v36 = vsel %vm1996_vm7, %v1967_v22, %v2087_v37  ;;  %v677_v58 = vunpack.c.l.bf16 %v7907_v4  ;;  %v678_v3 = vunpack.c.h.bf16 %v7907_v4  ;;  %v679_v2 = vunpack.c.l.bf16 %v7912_v17  ;;  %2793 = vmatmul.bf16.gmra.mxu1 %v5292_v35  ;;  %3442 = vmatmul.bf16.gmra.mxu2 %v5292_v35 }
 0x187   : > { %v2109_v9 = vpack.c.b16 %v2088_v36, %v2081_v0  ;;  %v1353_v18 = vrot.slane %v665_v47, 4  ;;  %v1359_v52 = vrot.slane %v666_v48, 4  ;;  %v1365_v30 = vrot.slane %v667_v56, 4  ;;  %4091 = vmatmul.bf16.gmra.mxu3 %v5292_v35 }
 0x188   : > { %v1371_v63 = vrot.slane %v668_v34, 4  ;;  %v1377_v6 = vrot.slane %v669_v20, 4  ;;  %v1383_v32 = vrot.slane %v670_v59, 4  ;;  %v1389_v8 = vrot.slane %v671_v43, 4 }
 0x189   : > { %2205 = vmatmul.bf16.gmra.mxu0 %v2109_v9  ;;  %v1354_v21 = vadd.f32 %v1353_v18, %v665_v47  ;;  %v1360_v51 = vadd.f32 %v1359_v52, %v666_v48  ;;  %v1395_v38 = vrot.slane %v672_v28, 4  ;;  %v1366_v31 = vadd.f32 %v1365_v30, %v667_v56 }
 0x18a   : > { %v1372_v42 = vadd.f32 %v1371_v63, %v668_v34  ;;  %v1378_v7 = vadd.f32 %v1377_v6, %v669_v20  ;;  %v1384_v50 = vadd.f32 %v1383_v32, %v670_v59  ;;  %v1390_v33 = vadd.f32 %v1389_v8, %v671_v43  ;;  %v2176_v63 = vpop.f32.mrf.mxu0 }
 0x18b   : > { %v1355_v29 = vrot.slane %v1354_v21, 2  ;;  %v1361_v19 = vrot.slane %v1360_v51, 2  ;;  %v1396_v23 = vadd.f32 %v1395_v38, %v672_v28  ;;  %v1367_v53 = vrot.slane %v1366_v31, 2  ;;  %2216 = vst [vmem:[%s7962_s16] sm:$0xff] %v2176_v63 }
 0x18c   : > { %v1373_v11 = vrot.slane %v1372_v42, 2  ;;  %v1379_v60 = vrot.slane %v1378_v7, 2  ;;  %v1385_v15 = vrot.slane %v1384_v50, 2  ;;  %v1391_v5 = vrot.slane %v1390_v33, 2 }
 0x18d   : > { %v1356_v12 = vadd.f32 %v1355_v29, %v1354_v21  ;;  %v1362_v10 = vadd.f32 %v1361_v19, %v1360_v51  ;;  %v1397_v14 = vrot.slane %v1396_v23, 2  ;;  %v1368_v27 = vadd.f32 %v1367_v53, %v1366_v31 }
 0x18e   : > { %v1374_v44 = vadd.f32 %v1373_v11, %v1372_v42  ;;  %v1380_v22 = vadd.f32 %v1379_v60, %v1378_v7  ;;  %v1386_v45 = vadd.f32 %v1385_v15, %v1384_v50  ;;  %v1392_v47 = vadd.f32 %v1391_v5, %v1390_v33 }
 0x18f   : > { %v1357_v41 = vrot.slane %v1356_v12, 1  ;;  %v1363_v54 = vrot.slane %v1362_v10, 1  ;;  %v7924_v13 = vadd.f32 %v1397_v14, %v1396_v23  ;;  %v1369_v49 = vrot.slane %v1368_v27, 1 }
 0x190   : > { %v1375_v48 = vrot.slane %v1374_v44, 1  ;;  %v1381_v56 = vrot.slane %v1380_v22, 1  ;;  %v1387_v62 = vrot.slane %v1386_v45, 1  ;;  %v680_v55 = vunpack.c.h.bf16 %v7912_v17 }
 0x191   : > { %v7928_v34 = vadd.f32 %v1357_v41, %v1356_v12  ;;  %v7930_v20 = vadd.f32 %v1363_v54, %v1362_v10  ;;  %v1393_v24 = vrot.slane %v1392_v47, 1  ;;  %v7932_v25 = vadd.f32 %v1369_v49, %v1368_v27  ;;  %v7975_v10 = vpop.f32.mrf.mxu1 }
 0x192   : > { %v7934_v59 = vadd.f32 %v1375_v48, %v1374_v44  ;;  %v7936_v43 = vadd.f32 %v1381_v56, %v1380_v22  ;;  %v1399_v57 = vrot.slane %v7924_v13, 1  ;;  %v7940_v28 = vadd.f32 %v1387_v62, %v1386_v45 }
 0x193   : > { %v7942_v0 = vadd.f32 %v1393_v24, %v1392_v47  ;;  %v1401_v37 = vrot.slane %v673_v40, 4  ;;  %v1407_v36 = vrot.slane %v674_v46, 4  ;;  %v1413_v9 = vrot.slane %v675_v61, 4 }
 0x194   : > { %v1419_v18 = vrot.slane %v676_v26, 4  ;;  %v1425_v52 = vrot.slane %v677_v58, 4  ;;  %v1431_v30 = vrot.slane %v678_v3, 4  ;;  %v1437_v21 = vrot.slane %v679_v2, 4 }
 0x195   : > { %v1402_v6 = vadd.f32 %v1401_v37, %v673_v40  ;;  %v1408_v32 = vadd.f32 %v1407_v36, %v674_v46  ;;  %v1443_v51 = vrot.slane %v680_v55, 4  ;;  %v1414_v8 = vadd.f32 %v1413_v9, %v675_v61 }
 0x196   : > { %v1420_v38 = vadd.f32 %v1419_v18, %v676_v26  ;;  %v1426_v40 = vadd.f32 %v1425_v52, %v677_v58  ;;  %v1432_v1 = vadd.f32 %v1431_v30, %v678_v3  ;;  %v1438_v42 = vadd.f32 %v1437_v21, %v679_v2  ;;  %v5293_v52 = vld [vmem:[%s7189_s21 + $0xb0] sm:$0xff] }
 0x197   : > { %v1403_v46 = vrot.slane %v1402_v6, 2  ;;  %v1409_v31 = vrot.slane %v1408_v32, 2  ;;  %v1444_v7 = vadd.f32 %v1443_v51, %v680_v55  ;;  %v1415_v50 = vrot.slane %v1414_v8, 2  ;;  %2798 = vmatmul.bf16.gmra.mxu1 %v5293_v52  ;;  %v3408_v51 = vpop.f32.mrf.mxu2  ;;  %3447 = vmatmul.bf16.gmra.mxu2 %v5293_v52 }
 0x198   : > { %v1421_v29 = vrot.slane %v1420_v38, 2  ;;  %v1427_v19 = vrot.slane %v1426_v40, 2  ;;  %v1433_v33 = vrot.slane %v1432_v1, 2  ;;  %v1439_v16 = vrot.slane %v1438_v42, 2  ;;  %4096 = vmatmul.bf16.gmra.mxu3 %v5293_v52 }
 0x199   : > { %v1404_v61 = vadd.f32 %v1403_v46, %v1402_v6  ;;  %v1410_v23 = vadd.f32 %v1409_v31, %v1408_v32  ;;  %v1445_v26 = vrot.slane %v1444_v7, 2  ;;  %v1416_v53 = vadd.f32 %v1415_v50, %v1414_v8  ;;  %v4057_v8 = vpop.f32.mrf.mxu3  ;;  %v2178_v31 = vpop.f32.mrf.mxu0 }
 0x19a   : > { %v1422_v11 = vadd.f32 %v1421_v29, %v1420_v38  ;;  %v1428_v58 = vadd.f32 %v1427_v19, %v1426_v40  ;;  %v1434_v60 = vadd.f32 %v1433_v33, %v1432_v1  ;;  %v1440_v15 = vadd.f32 %v1439_v16, %v1438_v42  ;;  %v2761_v42 = vpop.f32.mrf.mxu1  ;;  %2217 = vst [vmem:[%s7962_s16 + $0x8] sm:$0xff] %v2178_v31 }
 0x19b   : > { %v1405_v4 = vrot.slane %v1404_v61, 1  ;;  %v1411_v3 = vrot.slane %v1410_v23, 1  ;;  %v1446_v12 = vadd.f32 %v1445_v26, %v1444_v7  ;;  %v1417_v17 = vrot.slane %v1416_v53, 1 }
 0x19c   : > { %v1423_v2 = vrot.slane %v1422_v11, 1  ;;  %v1429_v5 = vrot.slane %v1428_v58, 1  ;;  %v1435_v14 = vrot.slane %v1434_v60, 1  ;;  %v1441_v22 = vrot.slane %v1440_v15, 1 }
 0x19d   : > { %v1406_v27 = vadd.f32 %v1405_v4, %v1404_v61  ;;  %v1412_v44 = vadd.f32 %v1411_v3, %v1410_v23  ;;  %v1447_v45 = vrot.slane %v1446_v12, 1  ;;  %v1400_v41 = vadd.f32 %v1399_v57, %v7924_v13 }
 0x19e   : > { %v1418_v54 = vadd.f32 %v1417_v17, %v1416_v53  ;;  %v1424_v47 = vadd.f32 %v1423_v2, %v1422_v11  ;;  %v1430_v49 = vadd.f32 %v1429_v5, %v1428_v58  ;;  %v1436_v48 = vadd.f32 %v1435_v14, %v1434_v60 }
 0x19f   : > { %v1442_v56 = vadd.f32 %v1441_v22, %v1440_v15  ;;  %v1568_v62 = vmul.f32 %v7243_v39, %v7928_v34  ;;  %v1569_v55 = vmul.f32 %v7243_v39, %v7930_v20  ;;  %v1448_v24 = vadd.f32 %v1447_v45, %v1446_v12 }
 0x1a0   : > { %v1570_v35 = vmul.f32 %v7243_v39, %v7932_v25  ;;  %v1571_v37 = vmul.f32 %v7243_v39, %v7934_v59  ;;  %v1572_v13 = vmul.f32 %v7243_v39, %v7936_v43  ;;  %v1573_v57 = vmul.f32 %v7243_v39, %v7940_v28 }
 0x1a1   : > { %v1574_v36 = vmul.f32 %v7243_v39, %v7942_v0  ;;  %v1576_v34 = vmul.f32 %v7243_v39, %v1406_v27  ;;  %v1577_v20 = vmul.f32 %v7243_v39, %v1412_v44  ;;  %v1575_v9 = vmul.f32 %v7243_v39, %v1400_v41 }
 0x1a2   : > { %v1578_v25 = vmul.f32 %v7243_v39, %v1418_v54  ;;  %v1579_v18 = vmul.f32 %v7243_v39, %v1424_v47  ;;  %v1580_v59 = vmul.f32 %v7243_v39, %v1430_v49  ;;  %v1581_v43 = vmul.f32 %v7243_v39, %v1436_v48  ;;  %v3410_v47 = vpop.f32.mrf.mxu2  ;;  %v4059_v49 = vpop.f32.mrf.mxu3 }
 0x1a3   : > { %v1582_v28 = vmul.f32 %v7243_v39, %v1442_v56  ;;  %v1696_v30 = vpack.c.bf16 %v1568_v62, %v1568_v62  ;;  %v1697_v63 = vpack.c.bf16 %v1569_v55, %v1569_v55  ;;  %v1583_v0 = vmul.f32 %v7243_v39, %v1448_v24  ;;  %v2181_v24 = vpop.f32.mrf.mxu0 }
 0x1a4   : > { %v1698_v6 = vpack.c.bf16 %v1570_v35, %v1570_v35  ;;  %v1699_v32 = vpack.c.bf16 %v1571_v37, %v1571_v37  ;;  %v1700_v21 = vpack.c.bf16 %v1572_v13, %v1572_v13  ;;  %v1701_v38 = vpack.c.bf16 %v1573_v57, %v1573_v57  ;;  %v2764_v35 = vpop.f32.mrf.mxu1  ;;  %2218 = vst [vmem:[%s7962_s16 + $0x10] sm:$0xff] %v2181_v24 }
 0x1a5   : > { %v1702_v40 = vpack.c.bf16 %v1574_v36, %v1574_v36  ;;  %v1704_v1 = vpack.c.bf16 %v1576_v34, %v1576_v34  ;;  %v1705_v46 = vpack.c.bf16 %v1577_v20, %v1577_v20  ;;  %v1703_v7 = vpack.c.bf16 %v1575_v9, %v1575_v9 }
 0x1a6   : > { %v1706_v50 = vpack.c.bf16 %v1578_v25, %v1578_v25  ;;  %v1707_v29 = vpack.c.bf16 %v1579_v18, %v1579_v18  ;;  %v1708_v19 = vpack.c.bf16 %v1580_v59, %v1580_v59  ;;  %v1709_v39 = vpack.c.bf16 %v1581_v43, %v1581_v43  ;;  %v5294_v18 = vld [vmem:[%s7189_s21 + $0xb8] sm:$0xff] }
 0x1a7   : > { %v1710_v33 = vpack.c.bf16 %v1582_v28, %v1582_v28  ;;  %v1968_v61 = vunpack.c.l.b16 %v1696_v30  ;;  %v1969_v23 = vunpack.c.l.b16 %v1697_v63  ;;  %v1711_v16 = vpack.c.bf16 %v1583_v0, %v1583_v0  ;;  %2803 = vmatmul.bf16.gmra.mxu1 %v5294_v18  ;;  %3452 = vmatmul.bf16.gmra.mxu2 %v5294_v18 }
 0x1a8   : > { %v1970_v26 = vunpack.c.l.b16 %v1698_v6  ;;  %v1971_v53 = vunpack.c.l.b16 %v1699_v32  ;;  %v1972_v11 = vunpack.c.l.b16 %v1700_v21  ;;  %v1973_v58 = vunpack.c.l.b16 %v1701_v38  ;;  %4101 = vmatmul.bf16.gmra.mxu3 %v5294_v18  ;;  %v5295_v38 = vld [vmem:[%s7189_s21 + $0xc0] sm:$0xff] }
 0x1a9   : > { %v1974_v60 = vunpack.c.l.b16 %v1702_v40  ;;  %v1976_v4 = vunpack.c.l.b16 %v1704_v1  ;;  %v1977_v3 = vunpack.c.l.b16 %v1705_v46  ;;  %v1975_v15 = vunpack.c.l.b16 %v1703_v7 }
 0x1aa   : > { %v1978_v12 = vunpack.c.l.b16 %v1706_v50  ;;  %v1979_v17 = vunpack.c.l.b16 %v1707_v29  ;;  %v1980_v2 = vunpack.c.l.b16 %v1708_v19  ;;  %v1981_v5 = vunpack.c.l.b16 %v1709_v39  ;;  %v3413_v59 = vpop.f32.mrf.mxu2  ;;  %v4062_v52 = vpop.f32.mrf.mxu3  ;;  %v6656_v50 = vld [vmem:[#allocation10 + $0x30] sm:$0xff] }
 0x1ab   : > { %v1982_v14 = vunpack.c.l.b16 %v1710_v33  ;;  %v2089_v27 = vsel %vm1984_vm1, %v1969_v23, %v1968_v61  ;;  %v2096_v44 = vsel %vm1984_vm1, %v1977_v3, %v1976_v4  ;;  %v1983_v22 = vunpack.c.l.b16 %v1711_v16  ;;  %v2183_v43 = vpop.f32.mrf.mxu0  ;;  %v6657_v16 = vld [vmem:[#allocation10 + $0x28] sm:$0xff] }
 0x1ac   : > { %v2090_v45 = vsel %vm1986_vm2, %v1970_v26, %v2089_v27  ;;  %v2097_v41 = vsel %vm1986_vm2, %v1978_v12, %v2096_v44  ;;  %v5444_v54 = vpack.c.bf16 %v2761_v42, %v7975_v10  ;;  %v5764_v62 = vpack.c.bf16 %v3410_v47, %v3408_v51  ;;  %v2766_v28 = vpop.f32.mrf.mxu1  ;;  %2219 = vst [vmem:[%s7962_s16 + $0x18] sm:$0xff] %v2183_v43  ;;  %v6655_v42 = vld [vmem:[#allocation10 + $0x38] sm:$0xff]  ;;  %v8047_v26 = vld [vmem:[%s7189_s21 + $0x8] sm:$0xff]  ;;  %v5297_v47 = vld [vmem:[%s7189_s21 + $0xd0] sm:$0xff] }
 0x1ad   : > { %v2091_v48 = vsel %vm1988_vm3, %v1971_v53, %v2090_v45  ;;  %v2098_v56 = vsel %vm1988_vm3, %v1979_v17, %v2097_v41  ;;  %v6084_v55 = vpack.c.bf16 %v4059_v49, %v4057_v8  ;;  %v5449_v30 = vpack.c.bf16 %v2766_v28, %v2764_v35  ;;  %v8037_v8 = vld [vmem:[%s7189_s21] sm:$0xff]  ;;  %v6660_v17 = vld [vmem:[#allocation10 + $0x10] sm:$0xff]  ;;  %v6661_v45 = vld [vmem:[#allocation10 + $0x8] sm:$0xff] }
 0x1ae   : > { %v2092_v37 = vsel %vm1990_vm4, %v1972_v11, %v2091_v48  ;;  %v2099_v13 = vsel %vm1990_vm4, %v1980_v2, %v2098_v56  ;;  %6344 = vst [vmem:[%s8013_s23 + $0x70] sm:$0xff] %v5444_v54   ;;  %v6658_v53 = vld [vmem:[#allocation10 + $0x20] sm:$0xff]  ;;  %v5296_v11 = vld [vmem:[%s7189_s21 + $0xc8] sm:$0xff]  ;;  %v8057_v41 = vld [vmem:[%s7189_s21 + $0x10] sm:$0xff] }
 0x1af   : > { %v2093_v10 = vsel %vm1992_vm5, %v1973_v58, %v2092_v37  ;;  %v2100_v57 = vsel %vm1992_vm5, %v1981_v5, %v2099_v13  ;;  %6407 = vst [vmem:[%s8019_s24 + $0x70] sm:$0xff] %v5764_v62   ;;  %v6662_v54 = vld [vmem:[#allocation10] sm:$0xff] }
 0x1b0   : > { %v2094_v36 = vsel %vm1994_vm6, %v1974_v60, %v2093_v10  ;;  %v2101_v34 = vsel %vm1994_vm6, %v1982_v14, %v2100_v57  ;;  %6470 = vst [vmem:[%s8025_s15 + $0x70] sm:$0xff] %v6084_v55  }
 0x1b1   : > { %v2095_v20 = vsel %vm1996_vm7, %v1975_v15, %v2094_v36  ;;  %v2102_v9 = vsel %vm1996_vm7, %v1983_v22, %v2101_v34  ;;  %6345 = vst [vmem:[%s8013_s23 + $0x78] sm:$0xff] %v5449_v30   ;;  %v6659_v15 = vld [vmem:[#allocation10 + $0x18] sm:$0xff] }
 0x1b2   : > { %v2110_v25 = vpack.c.b16 %v2102_v9, %v2095_v20  ;;  %v3415_v63 = vpop.f32.mrf.mxu2  ;;  %v4064_v0 = vpop.f32.mrf.mxu3  ;;  %v8067_v36 = vld [vmem:[%s7189_s21 + $0x18] sm:$0xff] }
 0x1b3   : > { %v5769_v6 = vpack.c.bf16 %v3415_v63, %v3413_v59  ;;  %v6089_v32 = vpack.c.bf16 %v4064_v0, %v4062_v52  ;;  %v2186_v21 = vpop.f32.mrf.mxu0  ;;  %v5298_v34 = vld [vmem:[%s7189_s21 + $0xd8] sm:$0xff]  ;;  %v8076_v0 = vld [vmem:[%s7189_s21 + $0x20] sm:$0xff] }
 0x1b4   : > { %2210 = vmatmul.bf16.gmra.mxu0 %v2110_v25  ;;  %v2769_v51 = vpop.f32.mrf.mxu1  ;;  %2220 = vst [vmem:[%s7962_s16 + $0x20] sm:$0xff] %v2186_v21 }
 0x1b5   : > { %6408 = vst [vmem:[%s8019_s24 + $0x78] sm:$0xff] %v5769_v6   ;;  %v5299_v6 = vld [vmem:[%s7189_s21 + $0xe0] sm:$0xff] }
 0x1b6   : > { %6471 = vst [vmem:[%s8025_s15 + $0x78] sm:$0xff] %v6089_v32  }
 0x1b7   : > { %2808 = vmatmul.bf16.gmra.mxu1 %v5295_v38  ;;  %3457 = vmatmul.bf16.gmra.mxu2 %v5295_v38 }
 0x1b8   : > { %4106 = vmatmul.bf16.gmra.mxu3 %v5295_v38 }
 0x1ba   : > { %v3418_v40 = vpop.f32.mrf.mxu2  ;;  %v4067_v1 = vpop.f32.mrf.mxu3 }
 0x1bb   : > { %v2188_v46 = vpop.f32.mrf.mxu0 }
 0x1bc   : > { %v2771_v31 = vpop.f32.mrf.mxu1  ;;  %2221 = vst [vmem:[%s7962_s16 + $0x28] sm:$0xff] %v2188_v46 }
 0x1bd   : > { %v5454_v7 = vpack.c.bf16 %v2771_v31, %v2769_v51 }
 0x1bf   : > { %6346 = vst [vmem:[%s8013_s23 + $0x80] sm:$0xff] %v5454_v7  }
 0x1c2   : > { %v3420_v29 = vpop.f32.mrf.mxu2  ;;  %v4069_v19 = vpop.f32.mrf.mxu3 }
 0x1c3   : > { %v5774_v39 = vpack.c.bf16 %v3420_v29, %v3418_v40  ;;  %v6094_v33 = vpack.c.bf16 %v4069_v19, %v4067_v1  ;;  %v2191_v61 = vpop.f32.mrf.mxu0  ;;  %v5300_v19 = vld [vmem:[%s7189_s21 + $0xe8] sm:$0xff] }
 0x1c4   : > { %2688 = vmatmul.bf16.vlgmr.msrb.gmra.mxu0 %v8037_v8  ;;  %v2774_v23 = vpop.f32.mrf.mxu1  ;;  %2222 = vst [vmem:[%s7962_s16 + $0x30] sm:$0xff] %v2191_v61 }
 0x1c5   : > { %3978 = vmatpush.bf16.msrb.mxu0 %v6655_v42  ;;  %6409 = vst [vmem:[%s8019_s24 + $0x80] sm:$0xff] %v5774_v39  }
 0x1c6   : > { %6472 = vst [vmem:[%s8025_s15 + $0x80] sm:$0xff] %v6094_v33  }
 0x1c7   : > { %2813 = vmatmul.bf16.gmra.mxu1 %v5296_v11  ;;  %3462 = vmatmul.bf16.gmra.mxu2 %v5296_v11 }
 0x1c8   : > { %4111 = vmatmul.bf16.gmra.mxu3 %v5296_v11 }
 0x1c9   : > { %3979 = vmatpush.bf16.msrb.mxu0 %v6656_v50  ;;  %v8085_v50 = vld [vmem:[%s7189_s21 + $0x28] sm:$0xff] }
 0x1ca   : > { %v3423_v58 = vpop.f32.mrf.mxu2  ;;  %v4072_v60 = vpop.f32.mrf.mxu3 }
 0x1cb   : > { %v2193_v4 = vpop.f32.mrf.mxu0 }
 0x1cc   : > { %v2776_v3 = vpop.f32.mrf.mxu1  ;;  %2223 = vst [vmem:[%s7962_s16 + $0x38] sm:$0xff] %v2193_v4 }
 0x1cd   : > { %3980 = vmatpush.bf16.msrb.mxu0 %v6657_v16  ;;  %v5459_v12 = vpack.c.bf16 %v2776_v3, %v2774_v23  ;;  %v5301_v3 = vld [vmem:[%s7189_s21 + $0xf0] sm:$0xff] }
 0x1cf   : > { %6347 = vst [vmem:[%s8013_s23 + $0x88] sm:$0xff] %v5459_v12  }
 0x1d1   : > { %3981 = vmatpush.bf16.msrb.mxu0 %v6658_v53  ;;  %v8093_v53 = vld [vmem:[%s7189_s21 + $0x30] sm:$0xff] }
 0x1d2   : > { %v3425_v2 = vpop.f32.mrf.mxu2  ;;  %v4074_v5 = vpop.f32.mrf.mxu3 }
 0x1d3   : > { %v5779_v14 = vpack.c.bf16 %v3425_v2, %v3423_v58  ;;  %v6099_v27 = vpack.c.bf16 %v4074_v5, %v4072_v60  ;;  %v2196_v44 = vpop.f32.mrf.mxu0  ;;  %v8101_v5 = vld [vmem:[%s7189_s21 + $0x38] sm:$0xff] }
 0x1d4   : > { %2693 = vmatmul.bf16.gmra.mxu0 %v8047_v26  ;;  %v2779_v22 = vpop.f32.mrf.mxu1  ;;  %2224 = vst [vmem:[%s7962_s16 + $0x40] sm:$0xff] %v2196_v44 }
 0x1d5   : > { %3982 = vmatpush.bf16.msrb.mxu0 %v6659_v15  ;;  %6410 = vst [vmem:[%s8019_s24 + $0x88] sm:$0xff] %v5779_v14  }
 0x1d6   : > { %6473 = vst [vmem:[%s8025_s15 + $0x88] sm:$0xff] %v6099_v27  }
 0x1d7   : > { %2818 = vmatmul.bf16.gmra.mxu1 %v5297_v47  ;;  %3467 = vmatmul.bf16.gmra.mxu2 %v5297_v47 }
 0x1d8   : > { %4116 = vmatmul.bf16.gmra.mxu3 %v5297_v47  ;;  %v5302_v47 = vld [vmem:[%s7189_s21 + $0xf8] sm:$0xff] }
 0x1d9   : > { %3983 = vmatpush.bf16.msrb.mxu0 %v6660_v17 }
 0x1da   : > { %v3428_v49 = vpop.f32.mrf.mxu2  ;;  %v4077_v48 = vpop.f32.mrf.mxu3 }
 0x1db   : > { %v2198_v56 = vpop.f32.mrf.mxu0 }
 0x1dc   : > { %v2781_v62 = vpop.f32.mrf.mxu1  ;;  %2225 = vst [vmem:[%s7962_s16 + $0x48] sm:$0xff] %v2198_v56 }
 0x1dd   : > { %3984 = vmatpush.bf16.msrb.mxu0 %v6661_v45  ;;  %v5464_v55 = vpack.c.bf16 %v2781_v62, %v2779_v22 }
 0x1df   : > { %6348 = vst [vmem:[%s8013_s23 + $0x90] sm:$0xff] %v5464_v55  }
 0x1e1   : > { %3985 = vmatpush.bf16.msrb.mxu0 %v6662_v54 }
 0x1e2   : > { %v3430_v24 = vpop.f32.mrf.mxu2  ;;  %v4079_v35 = vpop.f32.mrf.mxu3 }
 0x1e3   : > { %v5784_v37 = vpack.c.bf16 %v3430_v24, %v3428_v49  ;;  %v6104_v13 = vpack.c.bf16 %v4079_v35, %v4077_v48  ;;  %v2201_v10 = vpop.f32.mrf.mxu0  ;;  %v8111_v24 = vld [vmem:[%s7189_s21 + $0x40] sm:$0xff] }
 0x1e4   : > { %2698 = vmatmul.bf16.gmra.mxu0 %v8057_v41  ;;  %v2784_v57 = vpop.f32.mrf.mxu1  ;;  %2226 = vst [vmem:[%s7962_s16 + $0x50] sm:$0xff] %v2201_v10 }
 0x1e5   : > { %6411 = vst [vmem:[%s8019_s24 + $0x90] sm:$0xff] %v5784_v37  }
 0x1e6   : > { %6474 = vst [vmem:[%s8025_s15 + $0x90] sm:$0xff] %v6104_v13  }
 0x1e7   : > { %2823 = vmatmul.bf16.gmra.mxu1 %v5298_v34  ;;  %3472 = vmatmul.bf16.gmra.mxu2 %v5298_v34 }
 0x1e8   : > { %4121 = vmatmul.bf16.gmra.mxu3 %v5298_v34 }
 0x1ea   : > { %v3433_v20 = vpop.f32.mrf.mxu2  ;;  %v4082_v9 = vpop.f32.mrf.mxu3 }
 0x1eb   : > { %v2203_v25 = vpop.f32.mrf.mxu0 }
 0x1ec   : > { %v2786_v18 = vpop.f32.mrf.mxu1  ;;  %2227 = vst [vmem:[%s7962_s16 + $0x58] sm:$0xff] %v2203_v25 }
 0x1ed   : > { %v5469_v59 = vpack.c.bf16 %v2786_v18, %v2784_v57 }
 0x1ef   : > { %6349 = vst [vmem:[%s8013_s23 + $0x98] sm:$0xff] %v5469_v59  }
 0x1f2   : > { %v3435_v52 = vpop.f32.mrf.mxu2  ;;  %v4084_v43 = vpop.f32.mrf.mxu3 }
 0x1f3   : > { %v5789_v28 = vpack.c.bf16 %v3435_v52, %v3433_v20  ;;  %v6109_v30 = vpack.c.bf16 %v4084_v43, %v4082_v9  ;;  %v5303_v20 = vld [vmem:[%s7189_s21 + $0x100] sm:$0xff] }
 0x1f4   : > { %2703 = vmatmul.bf16.gmra.mxu0 %v8067_v36  ;;  %v2789_v63 = vpop.f32.mrf.mxu1 }
 0x1f5   : > { %6412 = vst [vmem:[%s8019_s24 + $0x98] sm:$0xff] %v5789_v28   ;;  %v8120_v28 = vld [vmem:[%s7189_s21 + $0x48] sm:$0xff] }
 0x1f6   : > { %6475 = vst [vmem:[%s8025_s15 + $0x98] sm:$0xff] %v6109_v30  }
 0x1f7   : > { %2828 = vmatmul.bf16.gmra.mxu1 %v5299_v6  ;;  %3477 = vmatmul.bf16.gmra.mxu2 %v5299_v6 }
 0x1f8   : > { %4126 = vmatmul.bf16.gmra.mxu3 %v5299_v6 }
 0x1fa   : > { %v3438_v32 = vpop.f32.mrf.mxu2  ;;  %v4087_v21 = vpop.f32.mrf.mxu3 }
 0x1fc   : > { %v2791_v51 = vpop.f32.mrf.mxu1 }
 0x1fd   : > { %v5474_v40 = vpack.c.bf16 %v2791_v51, %v2789_v63 }
 0x1ff   : > { %6350 = vst [vmem:[%s8013_s23 + $0xa0] sm:$0xff] %v5474_v40  }
 0x202   : > { %v3440_v1 = vpop.f32.mrf.mxu2  ;;  %v4089_v46 = vpop.f32.mrf.mxu3 }
 0x203   : > { %v5794_v31 = vpack.c.bf16 %v3440_v1, %v3438_v32  ;;  %v6114_v42 = vpack.c.bf16 %v4089_v46, %v4087_v21 }
 0x204   : > { %2708 = vmatmul.bf16.gmra.mxu0 %v8076_v0  ;;  %v2794_v29 = vpop.f32.mrf.mxu1 }
 0x205   : > { %6413 = vst [vmem:[%s8019_s24 + $0xa0] sm:$0xff] %v5794_v31  }
 0x206   : > { %v2206_v38 = vpop.f32.mrf.mxu0  ;;  %6476 = vst [vmem:[%s8025_s15 + $0xa0] sm:$0xff] %v6114_v42  }
 0x207   : > { %2228 = vst [vmem:[%s7962_s16 + $0x60] sm:$0xff] %v2206_v38  ;;  %2833 = vmatmul.bf16.gmra.mxu1 %v5300_v19  ;;  %3482 = vmatmul.bf16.gmra.mxu2 %v5300_v19  ;;  %v5304_v38 = vld [vmem:[%s7189_s21 + $0x108] sm:$0xff] }
 0x208   : > { %4131 = vmatmul.bf16.gmra.mxu3 %v5300_v19 }
 0x20a   : > { %v3443_v39 = vpop.f32.mrf.mxu2  ;;  %v4092_v33 = vpop.f32.mrf.mxu3 }
 0x20c   : > { %v2796_v61 = vpop.f32.mrf.mxu1 }
 0x20d   : > { %v5479_v23 = vpack.c.bf16 %v2796_v61, %v2794_v29  ;;  %v8129_v29 = vld [vmem:[%s7189_s21 + $0x50] sm:$0xff] }
 0x20e   : > { %v2208_v7 = vpop.f32.mrf.mxu0 }
 0x20f   : > { %2229 = vst [vmem:[%s7962_s16 + $0x68] sm:$0xff] %v2208_v7 }
 0x210   : > { %6351 = vst [vmem:[%s8013_s23 + $0xa8] sm:$0xff] %v5479_v23  }
 0x212   : > { %v3445_v16 = vpop.f32.mrf.mxu2  ;;  %v4094_v58 = vpop.f32.mrf.mxu3 }
 0x213   : > { %v5799_v11 = vpack.c.bf16 %v3445_v16, %v3443_v39  ;;  %v6119_v60 = vpack.c.bf16 %v4094_v58, %v4092_v33 }
 0x214   : > { %2713 = vmatmul.bf16.gmra.mxu0 %v8085_v50  ;;  %v2799_v4 = vpop.f32.mrf.mxu1 }
 0x215   : > { %6414 = vst [vmem:[%s8019_s24 + $0xa8] sm:$0xff] %v5799_v11   ;;  %v5305_v11 = vld [vmem:[%s7189_s21 + $0x110] sm:$0xff] }
 0x216   : > { %6477 = vst [vmem:[%s8025_s15 + $0xa8] sm:$0xff] %v6119_v60  }
 0x217   : > { %2838 = vmatmul.bf16.gmra.mxu1 %v5301_v3  ;;  %3487 = vmatmul.bf16.gmra.mxu2 %v5301_v3 }
 0x218   : > { %4136 = vmatmul.bf16.gmra.mxu3 %v5301_v3 }
 0x21a   : > { %v3448_v15 = vpop.f32.mrf.mxu2 }
 0x21b   : > { %v4097_v12 = vpop.f32.mrf.mxu3 }
 0x21c   : > { %v2801_v17 = vpop.f32.mrf.mxu1 }
 0x21d   : > { %v5484_v2 = vpack.c.bf16 %v2801_v17, %v2799_v4  ;;  %v8138_v17 = vld [vmem:[%s7189_s21 + $0x58] sm:$0xff] }
 0x21f   : > { %6352 = vst [vmem:[%s8013_s23 + $0xb0] sm:$0xff] %v5484_v2  }
 0x222   : > { %v3450_v14 = vpop.f32.mrf.mxu2 }
 0x223   : > { %v5804_v44 = vpack.c.bf16 %v3450_v14, %v3448_v15  ;;  %v4099_v22 = vpop.f32.mrf.mxu3 }
 0x224   : > { %2718 = vmatmul.bf16.gmra.mxu0 %v8093_v53  ;;  %v6124_v45 = vpack.c.bf16 %v4099_v22, %v4097_v12  ;;  %v2804_v54 = vpop.f32.mrf.mxu1 }
 0x225   : > { %6415 = vst [vmem:[%s8019_s24 + $0xb0] sm:$0xff] %v5804_v44  }
 0x226   : > { %6478 = vst [vmem:[%s8025_s15 + $0xb0] sm:$0xff] %v6124_v45  }
 0x227   : > { %2843 = vmatmul.bf16.gmra.mxu1 %v5302_v47  ;;  %3492 = vmatmul.bf16.gmra.mxu2 %v5302_v47 }
 0x228   : > { %4141 = vmatmul.bf16.gmra.mxu3 %v5302_v47 }
 0x22a   : > { %v3453_v49 = vpop.f32.mrf.mxu2 }
 0x22b   : > { %v4102_v56 = vpop.f32.mrf.mxu3 }
 0x22c   : > { %v2806_v62 = vpop.f32.mrf.mxu1 }
 0x22d   : > { %v5489_v55 = vpack.c.bf16 %v2806_v62, %v2804_v54  ;;  %v5306_v54 = vld [vmem:[%s7189_s21 + $0x118] sm:$0xff] }
 0x22f   : > { %6353 = vst [vmem:[%s8013_s23 + $0xb8] sm:$0xff] %v5489_v55  }
 0x231   : > { %v2211_v27 = vpop.f32.mrf.mxu0 }
 0x232   : > { %2230 = vst [vmem:[%s7962_s16 + $0x70] sm:$0xff] %v2211_v27  ;;  %v3455_v35 = vpop.f32.mrf.mxu2 }
 0x233   : > { %v5809_v13 = vpack.c.bf16 %v3455_v35, %v3453_v49  ;;  %v4104_v10 = vpop.f32.mrf.mxu3  ;;  %v8147_v35 = vld [vmem:[%s7189_s21 + $0x60] sm:$0xff] }
 0x234   : > { %2723 = vmatmul.bf16.gmra.mxu0 %v8101_v5  ;;  %v6129_v57 = vpack.c.bf16 %v4104_v10, %v4102_v56  ;;  %v2809_v34 = vpop.f32.mrf.mxu1 }
 0x235   : > { %6416 = vst [vmem:[%s8019_s24 + $0xb8] sm:$0xff] %v5809_v13  }
 0x236   : > { %6479 = vst [vmem:[%s8025_s15 + $0xb8] sm:$0xff] %v6129_v57  }
 0x237   : > { %2848 = vmatmul.bf16.gmra.mxu1 %v5303_v20  ;;  %3497 = vmatmul.bf16.gmra.mxu2 %v5303_v20 }
 0x238   : > { %4146 = vmatmul.bf16.gmra.mxu3 %v5303_v20 }
 0x239   : > { %v2213_v48 = vpop.f32.mrf.mxu0 }
 0x23a   : > { %2231 = vst [vmem:[%s7962_s16 + $0x78] sm:$0xff] %v2213_v48  ;;  %v3458_v9 = vpop.f32.mrf.mxu2 }
 0x23b   : > { %v4107_v18 = vpop.f32.mrf.mxu3 }
 0x23c   : > { %v2811_v52 = vpop.f32.mrf.mxu1 }
 0x23d   : > { %v5494_v43 = vpack.c.bf16 %v2811_v52, %v2809_v34  ;;  %v5307_v34 = vld [vmem:[%s7189_s21 + $0x120] sm:$0xff] }
 0x23f   : > { %6354 = vst [vmem:[%s8013_s23 + $0xc0] sm:$0xff] %v5494_v43  }
 0x241   : > { %v2689_v37 = vpop.f32.mrf.mxu0 }
 0x242   : > { %v3460_v30 = vpop.f32.mrf.mxu2 }
 0x243   : > { %v5814_v6 = vpack.c.bf16 %v3460_v30, %v3458_v9  ;;  %v4109_v32 = vpop.f32.mrf.mxu3 }
 0x244   : > { %2728 = vmatmul.bf16.gmra.mxu0 %v8111_v24  ;;  %v6134_v21 = vpack.c.bf16 %v4109_v32, %v4107_v18  ;;  %v2814_v51 = vpop.f32.mrf.mxu1 }
 0x245   : > { %6417 = vst [vmem:[%s8019_s24 + $0xc0] sm:$0xff] %v5814_v6  }
 0x246   : > { %6480 = vst [vmem:[%s8025_s15 + $0xc0] sm:$0xff] %v6134_v21  }
 0x247   : > { %2853 = vmatmul.bf16.gmra.mxu1 %v5304_v38  ;;  %3502 = vmatmul.bf16.gmra.mxu2 %v5304_v38 }
 0x248   : > { %4151 = vmatmul.bf16.gmra.mxu3 %v5304_v38  ;;  %v5308_v38 = vld [vmem:[%s7189_s21 + $0x128] sm:$0xff] }
 0x249   : > { %v2691_v25 = vpop.f32.mrf.mxu0 }
 0x24a   : > { %v5374_v59 = vpack.c.bf16 %v2691_v25, %v2689_v37  ;;  %v3463_v40 = vpop.f32.mrf.mxu2 }
 0x24b   : > { %v4112_v46 = vpop.f32.mrf.mxu3 }
 0x24c   : > { %5375 = vst [vmem:[%s8013_s23] sm:$0xff] %v5374_v59   ;;  %v2816_v42 = vpop.f32.mrf.mxu1 }
 0x24d   : > { %v5499_v7 = vpack.c.bf16 %v2816_v42, %v2814_v51 }
 0x24f   : > { %6355 = vst [vmem:[%s8013_s23 + $0xc8] sm:$0xff] %v5499_v7  }
 0x251   : > { %v2694_v63 = vpop.f32.mrf.mxu0 }
 0x252   : > { %v3465_v19 = vpop.f32.mrf.mxu2 }
 0x253   : > { %v5819_v33 = vpack.c.bf16 %v3465_v19, %v3463_v40  ;;  %v4114_v61 = vpop.f32.mrf.mxu3 }
 0x254   : > { %2733 = vmatmul.bf16.gmra.mxu0 %v8120_v28  ;;  %v6139_v23 = vpack.c.bf16 %v4114_v61, %v4112_v46  ;;  %v2819_v16 = vpop.f32.mrf.mxu1 }
 0x255   : > { %6418 = vst [vmem:[%s8019_s24 + $0xc8] sm:$0xff] %v5819_v33  }
 0x256   : > { %6481 = vst [vmem:[%s8025_s15 + $0xc8] sm:$0xff] %v6139_v23  }
 0x257   : > { %2858 = vmatmul.bf16.gmra.mxu1 %v5305_v11  ;;  %3507 = vmatmul.bf16.gmra.mxu2 %v5305_v11 }
 0x258   : > { %4156 = vmatmul.bf16.gmra.mxu3 %v5305_v11  ;;  %v5309_v11 = vld [vmem:[%s7189_s21 + $0x130] sm:$0xff] }
 0x259   : > { %v2696_v1 = vpop.f32.mrf.mxu0 }
 0x25a   : > { %v5379_v31 = vpack.c.bf16 %v2696_v1, %v2694_v63  ;;  %v3468_v58 = vpop.f32.mrf.mxu2  ;;  %v8156_v63 = vld [vmem:[%s7189_s21 + $0x68] sm:$0xff] }
 0x25b   : > { %v4117_v4 = vpop.f32.mrf.mxu3 }
 0x25c   : > { %6331 = vst [vmem:[%s8013_s23 + $0x8] sm:$0xff] %v5379_v31   ;;  %v2821_v15 = vpop.f32.mrf.mxu1 }
 0x25d   : > { %v5504_v12 = vpack.c.bf16 %v2821_v15, %v2819_v16 }
 0x25f   : > { %6356 = vst [vmem:[%s8013_s23 + $0xd0] sm:$0xff] %v5504_v12  }
 0x261   : > { %v2699_v39 = vpop.f32.mrf.mxu0 }
 0x262   : > { %v3470_v2 = vpop.f32.mrf.mxu2 }
 0x263   : > { %v5824_v27 = vpack.c.bf16 %v3470_v2, %v3468_v58  ;;  %v4119_v44 = vpop.f32.mrf.mxu3 }
 0x264   : > { %2738 = vmatmul.bf16.gmra.mxu0 %v8129_v29  ;;  %v6144_v22 = vpack.c.bf16 %v4119_v44, %v4117_v4  ;;  %v2824_v45 = vpop.f32.mrf.mxu1 }
 0x265   : > { %6419 = vst [vmem:[%s8019_s24 + $0xd0] sm:$0xff] %v5824_v27  }
 0x266   : > { %6482 = vst [vmem:[%s8025_s15 + $0xd0] sm:$0xff] %v6144_v22  }
 0x267   : > { %2863 = vmatmul.bf16.gmra.mxu1 %v5306_v54  ;;  %3512 = vmatmul.bf16.gmra.mxu2 %v5306_v54 }
 0x268   : > { %4161 = vmatmul.bf16.gmra.mxu3 %v5306_v54 }
 0x269   : > { %v2701_v60 = vpop.f32.mrf.mxu0 }
 0x26a   : > { %v5384_v3 = vpack.c.bf16 %v2701_v60, %v2699_v39  ;;  %v3473_v47 = vpop.f32.mrf.mxu2 }
 0x26b   : > { %v4122_v48 = vpop.f32.mrf.mxu3 }
 0x26c   : > { %6332 = vst [vmem:[%s8013_s23 + $0x10] sm:$0xff] %v5384_v3   ;;  %v2826_v62 = vpop.f32.mrf.mxu1 }
 0x26d   : > { %v5509_v55 = vpack.c.bf16 %v2826_v62, %v2824_v45 }
 0x26f   : > { %6357 = vst [vmem:[%s8013_s23 + $0xd8] sm:$0xff] %v5509_v55  }
 0x271   : > { %v2704_v14 = vpop.f32.mrf.mxu0 }
 0x272   : > { %v3475_v37 = vpop.f32.mrf.mxu2 }
 0x273   : > { %v5829_v10 = vpack.c.bf16 %v3475_v37, %v3473_v47  ;;  %v4124_v57 = vpop.f32.mrf.mxu3 }
 0x274   : > { %2743 = vmatmul.bf16.gmra.mxu0 %v8138_v17  ;;  %v6149_v20 = vpack.c.bf16 %v4124_v57, %v4122_v48  ;;  %v2829_v9 = vpop.f32.mrf.mxu1 }
 0x275   : > { %6420 = vst [vmem:[%s8019_s24 + $0xd8] sm:$0xff] %v5829_v10  }
 0x276   : > { %6483 = vst [vmem:[%s8025_s15 + $0xd8] sm:$0xff] %v6149_v20  }
 0x277   : > { %2868 = vmatmul.bf16.gmra.mxu1 %v5307_v34  ;;  %3517 = vmatmul.bf16.gmra.mxu2 %v5307_v34 }
 0x278   : > { %4166 = vmatmul.bf16.gmra.mxu3 %v5307_v34 }
 0x279   : > { %v2706_v49 = vpop.f32.mrf.mxu0 }
 0x27a   : > { %v5389_v56 = vpack.c.bf16 %v2706_v49, %v2704_v14  ;;  %v3478_v25 = vpop.f32.mrf.mxu2 }
 0x27b   : > { %v4127_v59 = vpop.f32.mrf.mxu3 }
 0x27c   : > { %6333 = vst [vmem:[%s8013_s23 + $0x18] sm:$0xff] %v5389_v56   ;;  %v2831_v43 = vpop.f32.mrf.mxu1 }
 0x27d   : > { %v5514_v30 = vpack.c.bf16 %v2831_v43, %v2829_v9 }
 0x27f   : > { %6358 = vst [vmem:[%s8013_s23 + $0xe0] sm:$0xff] %v5514_v30  }
 0x281   : > { %v2709_v13 = vpop.f32.mrf.mxu0 }
 0x282   : > { %v3480_v6 = vpop.f32.mrf.mxu2 }
 0x283   : > { %v5834_v21 = vpack.c.bf16 %v3480_v6, %v3478_v25  ;;  %v4129_v51 = vpop.f32.mrf.mxu3 }
 0x284   : > { %2748 = vmatmul.bf16.gmra.mxu0 %v8147_v35  ;;  %v6154_v40 = vpack.c.bf16 %v4129_v51, %v4127_v59  ;;  %v2834_v1 = vpop.f32.mrf.mxu1 }
 0x285   : > { %6421 = vst [vmem:[%s8019_s24 + $0xe0] sm:$0xff] %v5834_v21  }
 0x286   : > { %6484 = vst [vmem:[%s8025_s15 + $0xe0] sm:$0xff] %v6154_v40  }
 0x287   : > { %2873 = vmatmul.bf16.gmra.mxu1 %v5308_v38  ;;  %3522 = vmatmul.bf16.gmra.mxu2 %v5308_v38 }
 0x288   : > { %4171 = vmatmul.bf16.gmra.mxu3 %v5308_v38 }
 0x289   : > { %v2711_v18 = vpop.f32.mrf.mxu0 }
 0x28a   : > { %v5394_v52 = vpack.c.bf16 %v2711_v18, %v2709_v13  ;;  %v3483_v46 = vpop.f32.mrf.mxu2 }
 0x28b   : > { %v4132_v42 = vpop.f32.mrf.mxu3 }
 0x28c   : > { %6334 = vst [vmem:[%s8013_s23 + $0x20] sm:$0xff] %v5394_v52   ;;  %v2836_v19 = vpop.f32.mrf.mxu1 }
 0x28d   : > { %v5519_v39 = vpack.c.bf16 %v2836_v19, %v2834_v1 }
 0x28f   : > { %6359 = vst [vmem:[%s8013_s23 + $0xe8] sm:$0xff] %v5519_v39  }
 0x291   : > { %v2714_v32 = vpop.f32.mrf.mxu0 }
 0x292   : > { %v3485_v33 = vpop.f32.mrf.mxu2 }
 0x293   : > { %v5839_v23 = vpack.c.bf16 %v3485_v33, %v3483_v46  ;;  %v4134_v16 = vpop.f32.mrf.mxu3 }
 0x294   : > { %2753 = vmatmul.bf16.gmra.mxu0 %v8156_v63  ;;  %v6159_v58 = vpack.c.bf16 %v4134_v16, %v4132_v42  ;;  %v2839_v60 = vpop.f32.mrf.mxu1 }
 0x295   : > { %6422 = vst [vmem:[%s8019_s24 + $0xe8] sm:$0xff] %v5839_v23  }
 0x296   : > { %6485 = vst [vmem:[%s8025_s15 + $0xe8] sm:$0xff] %v6159_v58  }
 0x297   : > { %2878 = vmatmul.bf16.gmra.mxu1 %v5309_v11  ;;  %3527 = vmatmul.bf16.gmra.mxu2 %v5309_v11 }
 0x298   : > { %4176 = vmatmul.bf16.gmra.mxu3 %v5309_v11 }
 0x299   : > { %v2716_v31 = vpop.f32.mrf.mxu0 }
 0x29a   : > { %v5399_v7 = vpack.c.bf16 %v2716_v31, %v2714_v32  ;;  %v3488_v4 = vpop.f32.mrf.mxu2 }
 0x29b   : > { %v4137_v15 = vpop.f32.mrf.mxu3 }
 0x29c   : > { %6335 = vst [vmem:[%s8013_s23 + $0x28] sm:$0xff] %v5399_v7   ;;  %v2841_v2 = vpop.f32.mrf.mxu1 }
 0x29d   : > { %v5524_v14 = vpack.c.bf16 %v2841_v2, %v2839_v60 }
 0x29f   : > { %6360 = vst [vmem:[%s8013_s23 + $0xf0] sm:$0xff] %v5524_v14  }
 0x2a1   : > { %v2719_v61 = vpop.f32.mrf.mxu0 }
 0x2a2   : > { %v3490_v27 = vpop.f32.mrf.mxu2 }
 0x2a3   : > { %v5844_v22 = vpack.c.bf16 %v3490_v27, %v3488_v4  ;;  %v4139_v45 = vpop.f32.mrf.mxu3 }
 0x2a4   : > { %3337 = vmatmul.bf16.vlgmr.msra.gmra.mxu0 %v8037_v8  ;;  %v5310_v8 = vld [vmem:[%s7189_s21 + $0x138] sm:$0xff]  ;;  %v6164_v54 = vpack.c.bf16 %v4139_v45, %v4137_v15  ;;  %v2844_v47 = vpop.f32.mrf.mxu1 }
 0x2a5   : > { %6423 = vst [vmem:[%s8019_s24 + $0xf0] sm:$0xff] %v5844_v22  }
 0x2a6   : > { %6486 = vst [vmem:[%s8025_s15 + $0xf0] sm:$0xff] %v6164_v54  }
 0x2a7   : > { %2883 = vmatmul.bf16.gmra.mxu1 %v5310_v8  ;;  %3532 = vmatmul.bf16.gmra.mxu2 %v5310_v8 }
 0x2a8   : > { %4181 = vmatmul.bf16.gmra.mxu3 %v5310_v8 }
 0x2a9   : > { %v2721_v3 = vpop.f32.mrf.mxu0 }
 0x2aa   : > { %v5404_v12 = vpack.c.bf16 %v2721_v3, %v2719_v61  ;;  %v3493_v49 = vpop.f32.mrf.mxu2 }
 0x2ab   : > { %v4142_v56 = vpop.f32.mrf.mxu3 }
 0x2ac   : > { %6336 = vst [vmem:[%s8013_s23 + $0x30] sm:$0xff] %v5404_v12   ;;  %v2846_v55 = vpop.f32.mrf.mxu1 }
 0x2ad   : > { %v5529_v37 = vpack.c.bf16 %v2846_v55, %v2844_v47 }
 0x2af   : > { %6361 = vst [vmem:[%s8013_s23 + $0xf8] sm:$0xff] %v5529_v37  }
 0x2b1   : > { %v2724_v44 = vpop.f32.mrf.mxu0 }
 0x2b2   : > { %v3495_v13 = vpop.f32.mrf.mxu2 }
 0x2b3   : > { %v5849_v57 = vpack.c.bf16 %v3495_v13, %v3493_v49  ;;  %v4144_v34 = vpop.f32.mrf.mxu3 }
 0x2b4   : > { %3342 = vmatmul.bf16.gmra.mxu0 %v8047_v26  ;;  %v5311_v26 = vld [vmem:[%s7189_s21 + $0x140] sm:$0xff]  ;;  %v6169_v20 = vpack.c.bf16 %v4144_v34, %v4142_v56  ;;  %v2849_v9 = vpop.f32.mrf.mxu1 }
 0x2b5   : > { %6424 = vst [vmem:[%s8019_s24 + $0xf8] sm:$0xff] %v5849_v57  }
 0x2b6   : > { %6487 = vst [vmem:[%s8025_s15 + $0xf8] sm:$0xff] %v6169_v20  }
 0x2b7   : > { %2888 = vmatmul.bf16.gmra.mxu1 %v5311_v26  ;;  %3537 = vmatmul.bf16.gmra.mxu2 %v5311_v26 }
 0x2b8   : > { %4186 = vmatmul.bf16.gmra.mxu3 %v5311_v26 }
 0x2b9   : > { %v2726_v48 = vpop.f32.mrf.mxu0 }
 0x2ba   : > { %v5409_v62 = vpack.c.bf16 %v2726_v48, %v2724_v44  ;;  %v3498_v25 = vpop.f32.mrf.mxu2 }
 0x2bb   : > { %v4147_v59 = vpop.f32.mrf.mxu3 }
 0x2bc   : > { %6337 = vst [vmem:[%s8013_s23 + $0x38] sm:$0xff] %v5409_v62   ;;  %v2851_v43 = vpop.f32.mrf.mxu1 }
 0x2bd   : > { %v5534_v30 = vpack.c.bf16 %v2851_v43, %v2849_v9 }
 0x2bf   : > { %6362 = vst [vmem:[%s8013_s23 + $0x100] sm:$0xff] %v5534_v30  }
 0x2c1   : > { %v2729_v10 = vpop.f32.mrf.mxu0 }
 0x2c2   : > { %v3500_v6 = vpop.f32.mrf.mxu2 }
 0x2c3   : > { %v5854_v21 = vpack.c.bf16 %v3500_v6, %v3498_v25  ;;  %v4149_v51 = vpop.f32.mrf.mxu3 }
 0x2c4   : > { %3347 = vmatmul.bf16.gmra.mxu0 %v8057_v41  ;;  %v5312_v41 = vld [vmem:[%s7189_s21 + $0x148] sm:$0xff]  ;;  %v6174_v38 = vpack.c.bf16 %v4149_v51, %v4147_v59  ;;  %v2854_v40 = vpop.f32.mrf.mxu1 }
 0x2c5   : > { %6425 = vst [vmem:[%s8019_s24 + $0x100] sm:$0xff] %v5854_v21  }
 0x2c6   : > { %6488 = vst [vmem:[%s8025_s15 + $0x100] sm:$0xff] %v6174_v38  }
 0x2c7   : > { %2893 = vmatmul.bf16.gmra.mxu1 %v5312_v41  ;;  %3542 = vmatmul.bf16.gmra.mxu2 %v5312_v41 }
 0x2c8   : > { %4191 = vmatmul.bf16.gmra.mxu3 %v5312_v41 }
 0x2c9   : > { %v2731_v18 = vpop.f32.mrf.mxu0 }
 0x2ca   : > { %v5414_v52 = vpack.c.bf16 %v2731_v18, %v2729_v10  ;;  %v3503_v1 = vpop.f32.mrf.mxu2 }
 0x2cb   : > { %v4152_v31 = vpop.f32.mrf.mxu3 }
 0x2cc   : > { %6338 = vst [vmem:[%s8013_s23 + $0x40] sm:$0xff] %v5414_v52   ;;  %v2856_v7 = vpop.f32.mrf.mxu1 }
 0x2cd   : > { %v5539_v19 = vpack.c.bf16 %v2856_v7, %v2854_v40 }
 0x2cf   : > { %6363 = vst [vmem:[%s8013_s23 + $0x108] sm:$0xff] %v5539_v19  }
 0x2d1   : > { %v2734_v32 = vpop.f32.mrf.mxu0 }
 0x2d2   : > { %v3505_v39 = vpop.f32.mrf.mxu2 }
 0x2d3   : > { %v5859_v61 = vpack.c.bf16 %v3505_v39, %v3503_v1  ;;  %v4154_v23 = vpop.f32.mrf.mxu3 }
 0x2d4   : > { %3352 = vmatmul.bf16.gmra.mxu0 %v8067_v36  ;;  %v5313_v36 = vld [vmem:[%s7189_s21 + $0x150] sm:$0xff]  ;;  %v6179_v16 = vpack.c.bf16 %v4154_v23, %v4152_v31  ;;  %v2859_v11 = vpop.f32.mrf.mxu1 }
 0x2d5   : > { %6426 = vst [vmem:[%s8019_s24 + $0x108] sm:$0xff] %v5859_v61  }
 0x2d6   : > { %6489 = vst [vmem:[%s8025_s15 + $0x108] sm:$0xff] %v6179_v16  }
 0x2d7   : > { %2898 = vmatmul.bf16.gmra.mxu1 %v5313_v36  ;;  %3547 = vmatmul.bf16.gmra.mxu2 %v5313_v36 }
 0x2d8   : > { %4196 = vmatmul.bf16.gmra.mxu3 %v5313_v36 }
 0x2d9   : > { %v2736_v46 = vpop.f32.mrf.mxu0 }
 0x2da   : > { %v5419_v42 = vpack.c.bf16 %v2736_v46, %v2734_v32  ;;  %v3508_v58 = vpop.f32.mrf.mxu2 }
 0x2db   : > { %v4157_v4 = vpop.f32.mrf.mxu3 }
 0x2dc   : > { %6339 = vst [vmem:[%s8013_s23 + $0x48] sm:$0xff] %v5419_v42   ;;  %v2861_v15 = vpop.f32.mrf.mxu1 }
 0x2dd   : > { %v5544_v12 = vpack.c.bf16 %v2861_v15, %v2859_v11 }
 0x2df   : > { %6364 = vst [vmem:[%s8013_s23 + $0x110] sm:$0xff] %v5544_v12  }
 0x2e1   : > { %v2739_v33 = vpop.f32.mrf.mxu0 }
 0x2e2   : > { %v3510_v2 = vpop.f32.mrf.mxu2 }
 0x2e3   : > { %v5864_v27 = vpack.c.bf16 %v3510_v2, %v3508_v58  ;;  %v4159_v44 = vpop.f32.mrf.mxu3 }
 0x2e4   : > { %3357 = vmatmul.bf16.gmra.mxu0 %v8076_v0  ;;  %v5314_v0 = vld [vmem:[%s7189_s21 + $0x158] sm:$0xff]  ;;  %v6184_v22 = vpack.c.bf16 %v4159_v44, %v4157_v4  ;;  %v2864_v45 = vpop.f32.mrf.mxu1 }
 0x2e5   : > { %6427 = vst [vmem:[%s8019_s24 + $0x110] sm:$0xff] %v5864_v27  }
 0x2e6   : > { %6490 = vst [vmem:[%s8025_s15 + $0x110] sm:$0xff] %v6184_v22  }
 0x2e7   : > { %2903 = vmatmul.bf16.gmra.mxu1 %v5314_v0  ;;  %3552 = vmatmul.bf16.gmra.mxu2 %v5314_v0 }
 0x2e8   : > { %4201 = vmatmul.bf16.gmra.mxu3 %v5314_v0 }
 0x2e9   : > { %v2741_v60 = vpop.f32.mrf.mxu0 }
 0x2ea   : > { %v5424_v3 = vpack.c.bf16 %v2741_v60, %v2739_v33  ;;  %v3513_v8 = vpop.f32.mrf.mxu2 }
 0x2eb   : > { %v4162_v47 = vpop.f32.mrf.mxu3 }
 0x2ec   : > { %6340 = vst [vmem:[%s8013_s23 + $0x50] sm:$0xff] %v5424_v3   ;;  %v2866_v48 = vpop.f32.mrf.mxu1 }
 0x2ed   : > { %v5549_v56 = vpack.c.bf16 %v2866_v48, %v2864_v45 }
 0x2ef   : > { %6365 = vst [vmem:[%s8013_s23 + $0x118] sm:$0xff] %v5549_v56  }
 0x2f1   : > { %v2744_v14 = vpop.f32.mrf.mxu0 }
 0x2f2   : > { %v3515_v62 = vpop.f32.mrf.mxu2 }
 0x2f3   : > { %v5869_v37 = vpack.c.bf16 %v3515_v62, %v3513_v8  ;;  %v4164_v13 = vpop.f32.mrf.mxu3 }
 0x2f4   : > { %3362 = vmatmul.bf16.gmra.mxu0 %v8085_v50  ;;  %v5315_v50 = vld [vmem:[%s7189_s21 + $0x160] sm:$0xff]  ;;  %v6189_v10 = vpack.c.bf16 %v4164_v13, %v4162_v47  ;;  %v2869_v57 = vpop.f32.mrf.mxu1 }
 0x2f5   : > { %6428 = vst [vmem:[%s8019_s24 + $0x118] sm:$0xff] %v5869_v37  }
 0x2f6   : > { %6491 = vst [vmem:[%s8025_s15 + $0x118] sm:$0xff] %v6189_v10  }
 0x2f7   : > { %2908 = vmatmul.bf16.gmra.mxu1 %v5315_v50  ;;  %3557 = vmatmul.bf16.gmra.mxu2 %v5315_v50 }
 0x2f8   : > { %4206 = vmatmul.bf16.gmra.mxu3 %v5315_v50 }
 0x2f9   : > { %v2746_v54 = vpop.f32.mrf.mxu0 }
 0x2fa   : > { %v5429_v49 = vpack.c.bf16 %v2746_v54, %v2744_v14  ;;  %v3518_v34 = vpop.f32.mrf.mxu2 }
 0x2fb   : > { %v4167_v20 = vpop.f32.mrf.mxu3 }
 0x2fc   : > { %6341 = vst [vmem:[%s8013_s23 + $0x58] sm:$0xff] %v5429_v49   ;;  %v2871_v25 = vpop.f32.mrf.mxu1 }
 0x2fd   : > { %v5554_v18 = vpack.c.bf16 %v2871_v25, %v2869_v57 }
 0x2ff   : > { %6366 = vst [vmem:[%s8013_s23 + $0x120] sm:$0xff] %v5554_v18  }
 0x301   : > { %v2749_v55 = vpop.f32.mrf.mxu0 }
 0x302   : > { %v3520_v59 = vpop.f32.mrf.mxu2 }
 0x303   : > { %v5874_v43 = vpack.c.bf16 %v3520_v59, %v3518_v34  ;;  %v4169_v30 = vpop.f32.mrf.mxu3 }
 0x304   : > { %3367 = vmatmul.bf16.gmra.mxu0 %v8093_v53  ;;  %v5316_v53 = vld [vmem:[%s7189_s21 + $0x168] sm:$0xff]  ;;  %v6194_v6 = vpack.c.bf16 %v4169_v30, %v4167_v20  ;;  %v2874_v32 = vpop.f32.mrf.mxu1 }
 0x305   : > { %6429 = vst [vmem:[%s8019_s24 + $0x120] sm:$0xff] %v5874_v43  }
 0x306   : > { %6492 = vst [vmem:[%s8025_s15 + $0x120] sm:$0xff] %v6194_v6  }
 0x307   : > { %2913 = vmatmul.bf16.gmra.mxu1 %v5316_v53  ;;  %3562 = vmatmul.bf16.gmra.mxu2 %v5316_v53 }
 0x308   : > { %4211 = vmatmul.bf16.gmra.mxu3 %v5316_v53 }
 0x309   : > { %v2751_v26 = vpop.f32.mrf.mxu0 }
 0x30a   : > { %v5434_v9 = vpack.c.bf16 %v2751_v26, %v2749_v55  ;;  %v3523_v21 = vpop.f32.mrf.mxu2 }
 0x30b   : > { %v4172_v41 = vpop.f32.mrf.mxu3 }
 0x30c   : > { %6342 = vst [vmem:[%s8013_s23 + $0x60] sm:$0xff] %v5434_v9   ;;  %v2876_v40 = vpop.f32.mrf.mxu1 }
 0x30d   : > { %v5559_v1 = vpack.c.bf16 %v2876_v40, %v2874_v32 }
 0x30f   : > { %6367 = vst [vmem:[%s8013_s23 + $0x128] sm:$0xff] %v5559_v1  }
 0x311   : > { %v2754_v52 = vpop.f32.mrf.mxu0 }
 0x312   : > { %v3525_v46 = vpop.f32.mrf.mxu2 }
 0x313   : > { %v5879_v42 = vpack.c.bf16 %v3525_v46, %v3523_v21  ;;  %v4174_v7 = vpop.f32.mrf.mxu3 }
 0x314   : > { %3372 = vmatmul.bf16.gmra.mxu0 %v8101_v5  ;;  %v5317_v5 = vld [vmem:[%s7189_s21 + $0x170] sm:$0xff]  ;;  %v6199_v19 = vpack.c.bf16 %v4174_v7, %v4172_v41  ;;  %v2879_v39 = vpop.f32.mrf.mxu1 }
 0x315   : > { %6430 = vst [vmem:[%s8019_s24 + $0x128] sm:$0xff] %v5879_v42  }
 0x316   : > { %6493 = vst [vmem:[%s8025_s15 + $0x128] sm:$0xff] %v6199_v19  }
 0x317   : > { %2918 = vmatmul.bf16.gmra.mxu1 %v5317_v5  ;;  %3567 = vmatmul.bf16.gmra.mxu2 %v5317_v5 }
 0x318   : > { %4216 = vmatmul.bf16.gmra.mxu3 %v5317_v5 }
 0x319   : > { %v2756_v51 = vpop.f32.mrf.mxu0 }
 0x31a   : > { %v5439_v38 = vpack.c.bf16 %v2756_v51, %v2754_v52  ;;  %v3528_v33 = vpop.f32.mrf.mxu2 }
 0x31b   : > { %v4177_v23 = vpop.f32.mrf.mxu3 }
 0x31c   : > { %6343 = vst [vmem:[%s8013_s23 + $0x68] sm:$0xff] %v5439_v38   ;;  %v2881_v16 = vpop.f32.mrf.mxu1 }
 0x31d   : > { %v5564_v11 = vpack.c.bf16 %v2881_v16, %v2879_v39 }
 0x31f   : > { %6368 = vst [vmem:[%s8013_s23 + $0x130] sm:$0xff] %v5564_v11  }
 0x321   : > { %v3338_v31 = vpop.f32.mrf.mxu0 }
 0x322   : > { %v3530_v58 = vpop.f32.mrf.mxu2 }
 0x323   : > { %v5884_v4 = vpack.c.bf16 %v3530_v58, %v3528_v33  ;;  %v4179_v3 = vpop.f32.mrf.mxu3 }
 0x324   : > { %3377 = vmatmul.bf16.gmra.mxu0 %v8111_v24  ;;  %v5318_v24 = vld [vmem:[%s7189_s21 + $0x178] sm:$0xff]  ;;  %v6204_v15 = vpack.c.bf16 %v4179_v3, %v4177_v23  ;;  %v2884_v12 = vpop.f32.mrf.mxu1 }
 0x325   : > { %6431 = vst [vmem:[%s8019_s24 + $0x130] sm:$0xff] %v5884_v4  }
 0x326   : > { %6494 = vst [vmem:[%s8025_s15 + $0x130] sm:$0xff] %v6204_v15   ;;  %v5323_v15 = vld [vmem:[%s7189_s21 + $0x1a0] sm:$0xff] }
 0x327   : > { %2923 = vmatmul.bf16.gmra.mxu1 %v5318_v24  ;;  %3572 = vmatmul.bf16.gmra.mxu2 %v5318_v24 }
 0x328   : > { %4221 = vmatmul.bf16.gmra.mxu3 %v5318_v24 }
 0x329   : > { %v3340_v61 = vpop.f32.mrf.mxu0 }
 0x32a   : > { %v5694_v36 = vpack.c.bf16 %v3340_v61, %v3338_v31  ;;  %v3533_v2 = vpop.f32.mrf.mxu2 }
 0x32b   : > { %v4182_v27 = vpop.f32.mrf.mxu3 }
 0x32c   : > { %5695 = vst [vmem:[%s8019_s24] sm:$0xff] %v5694_v36   ;;  %v2886_v0 = vpop.f32.mrf.mxu1 }
 0x32d   : > { %v5569_v22 = vpack.c.bf16 %v2886_v0, %v2884_v12 }
 0x32f   : > { %6369 = vst [vmem:[%s8013_s23 + $0x138] sm:$0xff] %v5569_v22  }
 0x331   : > { %v3343_v60 = vpop.f32.mrf.mxu0 }
 0x332   : > { %v3535_v45 = vpop.f32.mrf.mxu2 }
 0x333   : > { %v5889_v54 = vpack.c.bf16 %v3535_v45, %v3533_v2  ;;  %v4184_v47 = vpop.f32.mrf.mxu3 }
 0x334   : > { %3382 = vmatmul.bf16.gmra.mxu0 %v8120_v28  ;;  %v5319_v28 = vld [vmem:[%s7189_s21 + $0x180] sm:$0xff]  ;;  %v6209_v49 = vpack.c.bf16 %v4184_v47, %v4182_v27  ;;  %v2889_v48 = vpop.f32.mrf.mxu1 }
 0x335   : > { %6432 = vst [vmem:[%s8019_s24 + $0x138] sm:$0xff] %v5889_v54  }
 0x336   : > { %6495 = vst [vmem:[%s8025_s15 + $0x138] sm:$0xff] %v6209_v49  }
 0x337   : > { %2928 = vmatmul.bf16.gmra.mxu1 %v5319_v28  ;;  %3577 = vmatmul.bf16.gmra.mxu2 %v5319_v28 }
 0x338   : > { %4226 = vmatmul.bf16.gmra.mxu3 %v5319_v28 }
 0x339   : > { %v3345_v14 = vpop.f32.mrf.mxu0 }
 0x33a   : > { %v5699_v44 = vpack.c.bf16 %v3345_v14, %v3343_v60  ;;  %v3538_v56 = vpop.f32.mrf.mxu2  ;;  %v6663_v14 = vld [vmem:[%s7189_s21] sm:$0xff] }
 0x33b   : > { %v4187_v55 = vpop.f32.mrf.mxu3 }
 0x33c   : > { %6394 = vst [vmem:[%s8019_s24 + $0x8] sm:$0xff] %v5699_v44   ;;  %v2891_v13 = vpop.f32.mrf.mxu1 }
 0x33d   : > { %v5574_v50 = vpack.c.bf16 %v2891_v13, %v2889_v48  ;;  %v5324_v48 = vld [vmem:[%s7189_s21 + $0x1a8] sm:$0xff] }
 0x33f   : > { %6370 = vst [vmem:[%s8013_s23 + $0x140] sm:$0xff] %v5574_v50  }
 0x341   : > { %v3348_v8 = vpop.f32.mrf.mxu0 }
 0x342   : > { %v3540_v10 = vpop.f32.mrf.mxu2 }
 0x343   : > { %v5894_v34 = vpack.c.bf16 %v3540_v10, %v3538_v56  ;;  %v4189_v26 = vpop.f32.mrf.mxu3 }
 0x344   : > { %3387 = vmatmul.bf16.gmra.mxu0 %v8129_v29  ;;  %v5320_v29 = vld [vmem:[%s7189_s21 + $0x188] sm:$0xff]  ;;  %v6214_v20 = vpack.c.bf16 %v4189_v26, %v4187_v55  ;;  %v2894_v9 = vpop.f32.mrf.mxu1 }
 0x345   : > { %6433 = vst [vmem:[%s8019_s24 + $0x140] sm:$0xff] %v5894_v34   ;;  %v6664_v55 = vld [vmem:[%s7189_s21 + $0x8] sm:$0xff] }
 0x346   : > { %6496 = vst [vmem:[%s8025_s15 + $0x140] sm:$0xff] %v6214_v20  }
 0x347   : > { %2933 = vmatmul.bf16.gmra.mxu1 %v5320_v29  ;;  %3582 = vmatmul.bf16.gmra.mxu2 %v5320_v29 }
 0x348   : > { %4231 = vmatmul.bf16.gmra.mxu3 %v5320_v29 }
 0x349   : > { %v3350_v62 = vpop.f32.mrf.mxu0 }
 0x34a   : > { %v5704_v37 = vpack.c.bf16 %v3350_v62, %v3348_v8  ;;  %v3543_v25 = vpop.f32.mrf.mxu2 }
 0x34b   : > { %v4192_v59 = vpop.f32.mrf.mxu3 }
 0x34c   : > { %6395 = vst [vmem:[%s8019_s24 + $0x10] sm:$0xff] %v5704_v37   ;;  %v2896_v43 = vpop.f32.mrf.mxu1 }
 0x34d   : > { %v5579_v30 = vpack.c.bf16 %v2896_v43, %v2894_v9 }
 0x34f   : > { %6371 = vst [vmem:[%s8013_s23 + $0x148] sm:$0xff] %v5579_v30  }
 0x351   : > { %v3353_v57 = vpop.f32.mrf.mxu0 }
 0x352   : > { %v3545_v53 = vpop.f32.mrf.mxu2 }
 0x353   : > { %v5899_v32 = vpack.c.bf16 %v3545_v53, %v3543_v25  ;;  %v4194_v21 = vpop.f32.mrf.mxu3  ;;  %v5325_v25 = vld [vmem:[%s7189_s21 + $0x1b0] sm:$0xff] }
 0x354   : > { %3392 = vmatmul.bf16.gmra.mxu0 %v8138_v17  ;;  %v5321_v17 = vld [vmem:[%s7189_s21 + $0x190] sm:$0xff]  ;;  %v6219_v51 = vpack.c.bf16 %v4194_v21, %v4192_v59  ;;  %v2899_v41 = vpop.f32.mrf.mxu1 }
 0x355   : > { %6434 = vst [vmem:[%s8019_s24 + $0x148] sm:$0xff] %v5899_v32  }
 0x356   : > { %6497 = vst [vmem:[%s8025_s15 + $0x148] sm:$0xff] %v6219_v51  }
 0x357   : > { %2938 = vmatmul.bf16.gmra.mxu1 %v5321_v17  ;;  %3587 = vmatmul.bf16.gmra.mxu2 %v5321_v17 }
 0x358   : > { %4236 = vmatmul.bf16.gmra.mxu3 %v5321_v17 }
 0x359   : > { %v3355_v18 = vpop.f32.mrf.mxu0 }
 0x35a   : > { %v5709_v52 = vpack.c.bf16 %v3355_v18, %v3353_v57  ;;  %v3548_v38 = vpop.f32.mrf.mxu2 }
 0x35b   : > { %v4197_v1 = vpop.f32.mrf.mxu3 }
 0x35c   : > { %6396 = vst [vmem:[%s8019_s24 + $0x18] sm:$0xff] %v5709_v52   ;;  %v2901_v31 = vpop.f32.mrf.mxu1  ;;  %v6665_v52 = vld [vmem:[%s7189_s21 + $0x10] sm:$0xff] }
 0x35d   : > { %v5584_v42 = vpack.c.bf16 %v2901_v31, %v2899_v41  ;;  %v6666_v31 = vld [vmem:[%s7189_s21 + $0x18] sm:$0xff] }
 0x35f   : > { %6372 = vst [vmem:[%s8013_s23 + $0x150] sm:$0xff] %v5584_v42  }
 0x361   : > { %v3358_v6 = vpop.f32.mrf.mxu0 }
 0x362   : > { %v3550_v7 = vpop.f32.mrf.mxu2 }
 0x363   : > { %v5904_v19 = vpack.c.bf16 %v3550_v7, %v3548_v38  ;;  %v4199_v39 = vpop.f32.mrf.mxu3 }
 0x364   : > { %3397 = vmatmul.bf16.gmra.mxu0 %v8147_v35  ;;  %v5322_v35 = vld [vmem:[%s7189_s21 + $0x198] sm:$0xff]  ;;  %v6224_v33 = vpack.c.bf16 %v4199_v39, %v4197_v1  ;;  %v2904_v61 = vpop.f32.mrf.mxu1 }
 0x365   : > { %6435 = vst [vmem:[%s8019_s24 + $0x150] sm:$0xff] %v5904_v19  }
 0x366   : > { %6498 = vst [vmem:[%s8025_s15 + $0x150] sm:$0xff] %v6224_v33  }
 0x367   : > { %2943 = vmatmul.bf16.gmra.mxu1 %v5322_v35  ;;  %3592 = vmatmul.bf16.gmra.mxu2 %v5322_v35 }
 0x368   : > { %4241 = vmatmul.bf16.gmra.mxu3 %v5322_v35 }
 0x369   : > { %v3360_v40 = vpop.f32.mrf.mxu0 }
 0x36a   : > { %v5714_v46 = vpack.c.bf16 %v3360_v40, %v3358_v6  ;;  %v3553_v23 = vpop.f32.mrf.mxu2  ;;  %v5326_v40 = vld [vmem:[%s7189_s21 + $0x1b8] sm:$0xff] }
 0x36b   : > { %v4202_v16 = vpop.f32.mrf.mxu3 }
 0x36c   : > { %6397 = vst [vmem:[%s8019_s24 + $0x20] sm:$0xff] %v5714_v46   ;;  %v2906_v58 = vpop.f32.mrf.mxu1 }
 0x36d   : > { %v5589_v60 = vpack.c.bf16 %v2906_v58, %v2904_v61 }
 0x36f   : > { %6373 = vst [vmem:[%s8013_s23 + $0x158] sm:$0xff] %v5589_v60   ;;  %v6667_v60 = vld [vmem:[%s7189_s21 + $0x20] sm:$0xff] }
 0x371   : > { %v3363_v5 = vpop.f32.mrf.mxu0 }
 0x372   : > { %v3555_v4 = vpop.f32.mrf.mxu2 }
 0x373   : > { %v5909_v24 = vpack.c.bf16 %v3555_v4, %v3553_v23 }
 0x374   : > { %3402 = vmatmul.bf16.gmra.mxu0 %v8156_v63  ;;  %v4204_v63 = vpop.f32.mrf.mxu3  ;;  %v2909_v2 = vpop.f32.mrf.mxu1 }
 0x375   : > { %v6229_v12 = vpack.c.bf16 %v4204_v63, %v4202_v16  ;;  %6436 = vst [vmem:[%s8019_s24 + $0x158] sm:$0xff] %v5909_v24   ;;  %v5327_v16 = vld [vmem:[%s7189_s21 + $0x1c0] sm:$0xff] }
 0x377   : > { %6499 = vst [vmem:[%s8025_s15 + $0x158] sm:$0xff] %v6229_v12   ;;  %2948 = vmatmul.bf16.gmra.mxu1 %v5323_v15  ;;  %3597 = vmatmul.bf16.gmra.mxu2 %v5323_v15 }
 0x378   : > { %4246 = vmatmul.bf16.gmra.mxu3 %v5323_v15 }
 0x379   : > { %v3365_v36 = vpop.f32.mrf.mxu0 }
 0x37a   : > { %v5719_v11 = vpack.c.bf16 %v3365_v36, %v3363_v5  ;;  %v3558_v27 = vpop.f32.mrf.mxu2 }
 0x37c   : > { %6398 = vst [vmem:[%s8019_s24 + $0x28] sm:$0xff] %v5719_v11   ;;  %v4207_v0 = vpop.f32.mrf.mxu3  ;;  %v2911_v45 = vpop.f32.mrf.mxu1 }
 0x37d   : > { %v5594_v8 = vpack.c.bf16 %v2911_v45, %v2909_v2 }
 0x37f   : > { %6374 = vst [vmem:[%s8013_s23 + $0x160] sm:$0xff] %v5594_v8   ;;  %v6668_v8 = vld [vmem:[%s7189_s21 + $0x28] sm:$0xff] }
 0x381   : > { %v3368_v3 = vpop.f32.mrf.mxu0 }
 0x382   : > { %v3560_v54 = vpop.f32.mrf.mxu2 }
 0x383   : > { %v5914_v28 = vpack.c.bf16 %v3560_v54, %v3558_v27 }
 0x384   : > { %3986 = vmatmul.bf16.vlgmr.msrb.gmra.mxu0 %v6663_v14  ;;  %v4209_v49 = vpop.f32.mrf.mxu3  ;;  %v2914_v62 = vpop.f32.mrf.mxu1 }
 0x385   : > { %v6234_v56 = vpack.c.bf16 %v4209_v49, %v4207_v0  ;;  %6437 = vst [vmem:[%s8019_s24 + $0x160] sm:$0xff] %v5914_v28   ;;  %v5328_v0 = vld [vmem:[%s7189_s21 + $0x1c8] sm:$0xff] }
 0x387   : > { %6500 = vst [vmem:[%s8025_s15 + $0x160] sm:$0xff] %v6234_v56   ;;  %2953 = vmatmul.bf16.gmra.mxu1 %v5324_v48  ;;  %3602 = vmatmul.bf16.gmra.mxu2 %v5324_v48 }
 0x388   : > { %4251 = vmatmul.bf16.gmra.mxu3 %v5324_v48 }
 0x389   : > { %v3370_v44 = vpop.f32.mrf.mxu0 }
 0x38a   : > { %v5724_v22 = vpack.c.bf16 %v3370_v44, %v3368_v3  ;;  %v3563_v37 = vpop.f32.mrf.mxu2 }
 0x38c   : > { %6399 = vst [vmem:[%s8019_s24 + $0x30] sm:$0xff] %v5724_v22   ;;  %v4212_v50 = vpop.f32.mrf.mxu3  ;;  %v2916_v57 = vpop.f32.mrf.mxu1 }
 0x38d   : > { %v5599_v34 = vpack.c.bf16 %v2916_v57, %v2914_v62 }
 0x38f   : > { %6375 = vst [vmem:[%s8013_s23 + $0x168] sm:$0xff] %v5599_v34   ;;  %v6669_v34 = vld [vmem:[%s7189_s21 + $0x30] sm:$0xff] }
 0x391   : > { %v3373_v47 = vpop.f32.mrf.mxu0 }
 0x392   : > { %v3565_v26 = vpop.f32.mrf.mxu2 }
 0x393   : > { %v5919_v20 = vpack.c.bf16 %v3565_v26, %v3563_v37 }
 0x394   : > { %3991 = vmatmul.bf16.gmra.mxu0 %v6664_v55  ;;  %v4214_v9 = vpop.f32.mrf.mxu3  ;;  %v2919_v59 = vpop.f32.mrf.mxu1 }
 0x395   : > { %v6239_v18 = vpack.c.bf16 %v4214_v9, %v4212_v50  ;;  %6438 = vst [vmem:[%s8019_s24 + $0x168] sm:$0xff] %v5919_v20   ;;  %v5329_v50 = vld [vmem:[%s7189_s21 + $0x1d0] sm:$0xff] }
 0x397   : > { %6501 = vst [vmem:[%s8025_s15 + $0x168] sm:$0xff] %v6239_v18   ;;  %2958 = vmatmul.bf16.gmra.mxu1 %v5325_v25  ;;  %3607 = vmatmul.bf16.gmra.mxu2 %v5325_v25 }
 0x398   : > { %4256 = vmatmul.bf16.gmra.mxu3 %v5325_v25 }
 0x399   : > { %v3375_v13 = vpop.f32.mrf.mxu0 }
 0x39a   : > { %v5729_v10 = vpack.c.bf16 %v3375_v13, %v3373_v47  ;;  %v3568_v43 = vpop.f32.mrf.mxu2 }
 0x39c   : > { %6400 = vst [vmem:[%s8019_s24 + $0x38] sm:$0xff] %v5729_v10   ;;  %v4217_v53 = vpop.f32.mrf.mxu3  ;;  %v2921_v32 = vpop.f32.mrf.mxu1 }
 0x39d   : > { %v5604_v21 = vpack.c.bf16 %v2921_v32, %v2919_v59 }
 0x39f   : > { %6376 = vst [vmem:[%s8013_s23 + $0x170] sm:$0xff] %v5604_v21   ;;  %v6670_v21 = vld [vmem:[%s7189_s21 + $0x38] sm:$0xff] }
 0x3a1   : > { %v3378_v29 = vpop.f32.mrf.mxu0 }
 0x3a2   : > { %v3570_v17 = vpop.f32.mrf.mxu2 }
 0x3a3   : > { %v5924_v41 = vpack.c.bf16 %v3570_v17, %v3568_v43 }
 0x3a4   : > { %3996 = vmatmul.bf16.gmra.mxu0 %v6665_v52  ;;  %v4219_v38 = vpop.f32.mrf.mxu3  ;;  %v2924_v46 = vpop.f32.mrf.mxu1 }
 0x3a5   : > { %v6244_v1 = vpack.c.bf16 %v4219_v38, %v4217_v53  ;;  %6439 = vst [vmem:[%s8019_s24 + $0x170] sm:$0xff] %v5924_v41   ;;  %v5330_v53 = vld [vmem:[%s7189_s21 + $0x1d8] sm:$0xff] }
 0x3a7   : > { %6502 = vst [vmem:[%s8025_s15 + $0x170] sm:$0xff] %v6244_v1   ;;  %2963 = vmatmul.bf16.gmra.mxu1 %v5326_v40  ;;  %3612 = vmatmul.bf16.gmra.mxu2 %v5326_v40 }
 0x3a8   : > { %4261 = vmatmul.bf16.gmra.mxu3 %v5326_v40 }
 0x3a9   : > { %v3380_v30 = vpop.f32.mrf.mxu0 }
 0x3aa   : > { %v5734_v6 = vpack.c.bf16 %v3380_v30, %v3378_v29  ;;  %v3573_v42 = vpop.f32.mrf.mxu2 }
 0x3ac   : > { %6401 = vst [vmem:[%s8019_s24 + $0x40] sm:$0xff] %v5734_v6   ;;  %v4222_v5 = vpop.f32.mrf.mxu3  ;;  %v2926_v39 = vpop.f32.mrf.mxu1 }
 0x3ad   : > { %v5609_v35 = vpack.c.bf16 %v2926_v39, %v2924_v46 }
 0x3af   : > { %6377 = vst [vmem:[%s8013_s23 + $0x178] sm:$0xff] %v5609_v35   ;;  %v6671_v35 = vld [vmem:[%s7189_s21 + $0x40] sm:$0xff] }
 0x3b1   : > { %v3383_v51 = vpop.f32.mrf.mxu0 }
 0x3b2   : > { %v3575_v33 = vpop.f32.mrf.mxu2 }
 0x3b3   : > { %v5929_v23 = vpack.c.bf16 %v3575_v33, %v3573_v42 }
 0x3b4   : > { %4001 = vmatmul.bf16.gmra.mxu0 %v6666_v31  ;;  %v4224_v36 = vpop.f32.mrf.mxu3  ;;  %v2929_v58 = vpop.f32.mrf.mxu1 }
 0x3b5   : > { %v6249_v11 = vpack.c.bf16 %v4224_v36, %v4222_v5  ;;  %6440 = vst [vmem:[%s8019_s24 + $0x178] sm:$0xff] %v5929_v23   ;;  %v5331_v5 = vld [vmem:[%s7189_s21 + $0x1e0] sm:$0xff] }
 0x3b7   : > { %6503 = vst [vmem:[%s8025_s15 + $0x178] sm:$0xff] %v6249_v11   ;;  %2968 = vmatmul.bf16.gmra.mxu1 %v5327_v16  ;;  %3617 = vmatmul.bf16.gmra.mxu2 %v5327_v16 }
 0x3b8   : > { %4266 = vmatmul.bf16.gmra.mxu3 %v5327_v16 }
 0x3b9   : > { %v3385_v7 = vpop.f32.mrf.mxu0 }
 0x3ba   : > { %v5739_v19 = vpack.c.bf16 %v3385_v7, %v3383_v51  ;;  %v3578_v4 = vpop.f32.mrf.mxu2 }
 0x3bc   : > { %6402 = vst [vmem:[%s8019_s24 + $0x48] sm:$0xff] %v5739_v19   ;;  %v4227_v24 = vpop.f32.mrf.mxu3  ;;  %v2931_v15 = vpop.f32.mrf.mxu1 }
 0x3bd   : > { %v5614_v12 = vpack.c.bf16 %v2931_v15, %v2929_v58 }
 0x3bf   : > { %6378 = vst [vmem:[%s8013_s23 + $0x180] sm:$0xff] %v5614_v12   ;;  %v6672_v12 = vld [vmem:[%s7189_s21 + $0x48] sm:$0xff] }
 0x3c1   : > { %v3388_v61 = vpop.f32.mrf.mxu0 }
 0x3c2   : > { %v3580_v2 = vpop.f32.mrf.mxu2 }
 0x3c3   : > { %v5934_v27 = vpack.c.bf16 %v3580_v2, %v3578_v4 }
 0x3c4   : > { %4006 = vmatmul.bf16.gmra.mxu0 %v6667_v60  ;;  %v4229_v44 = vpop.f32.mrf.mxu3  ;;  %v2934_v45 = vpop.f32.mrf.mxu1 }
 0x3c5   : > { %v6254_v22 = vpack.c.bf16 %v4229_v44, %v4227_v24  ;;  %6441 = vst [vmem:[%s8019_s24 + $0x180] sm:$0xff] %v5934_v27   ;;  %v5332_v24 = vld [vmem:[%s7189_s21 + $0x1e8] sm:$0xff] }
 0x3c7   : > { %6504 = vst [vmem:[%s8025_s15 + $0x180] sm:$0xff] %v6254_v22   ;;  %2973 = vmatmul.bf16.gmra.mxu1 %v5328_v0  ;;  %3622 = vmatmul.bf16.gmra.mxu2 %v5328_v0 }
 0x3c8   : > { %4271 = vmatmul.bf16.gmra.mxu3 %v5328_v0 }
 0x3c9   : > { %v3390_v3 = vpop.f32.mrf.mxu0 }
 0x3ca   : > { %v5744_v63 = vpack.c.bf16 %v3390_v3, %v3388_v61  ;;  %v3583_v54 = vpop.f32.mrf.mxu2 }
 0x3cc   : > { %6403 = vst [vmem:[%s8019_s24 + $0x50] sm:$0xff] %v5744_v63   ;;  %v4232_v28 = vpop.f32.mrf.mxu3  ;;  %v2936_v48 = vpop.f32.mrf.mxu1 }
 0x3cd   : > { %v5619_v56 = vpack.c.bf16 %v2936_v48, %v2934_v45 }
 0x3cf   : > { %6379 = vst [vmem:[%s8013_s23 + $0x188] sm:$0xff] %v5619_v56   ;;  %v6673_v56 = vld [vmem:[%s7189_s21 + $0x50] sm:$0xff] }
 0x3d1   : > { %v3393_v14 = vpop.f32.mrf.mxu0 }
 0x3d2   : > { %v3585_v62 = vpop.f32.mrf.mxu2 }
 0x3d3   : > { %v5939_v37 = vpack.c.bf16 %v3585_v62, %v3583_v54 }
 0x3d4   : > { %4011 = vmatmul.bf16.gmra.mxu0 %v6668_v8  ;;  %v4234_v13 = vpop.f32.mrf.mxu3  ;;  %v2939_v57 = vpop.f32.mrf.mxu1 }
 0x3d5   : > { %v6259_v10 = vpack.c.bf16 %v4234_v13, %v4232_v28  ;;  %6442 = vst [vmem:[%s8019_s24 + $0x188] sm:$0xff] %v5939_v37   ;;  %v5333_v28 = vld [vmem:[%s7189_s21 + $0x1f0] sm:$0xff] }
 0x3d7   : > { %6505 = vst [vmem:[%s8025_s15 + $0x188] sm:$0xff] %v6259_v10   ;;  %2978 = vmatmul.bf16.gmra.mxu1 %v5329_v50  ;;  %3627 = vmatmul.bf16.gmra.mxu2 %v5329_v50 }
 0x3d8   : > { %4276 = vmatmul.bf16.gmra.mxu3 %v5329_v50 }
 0x3d9   : > { %v3395_v47 = vpop.f32.mrf.mxu0 }
 0x3da   : > { %v5749_v49 = vpack.c.bf16 %v3395_v47, %v3393_v14  ;;  %v3588_v26 = vpop.f32.mrf.mxu2 }
 0x3dc   : > { %6404 = vst [vmem:[%s8019_s24 + $0x58] sm:$0xff] %v5749_v49   ;;  %v4237_v20 = vpop.f32.mrf.mxu3  ;;  %v2941_v25 = vpop.f32.mrf.mxu1 }
 0x3dd   : > { %v5624_v18 = vpack.c.bf16 %v2941_v25, %v2939_v57 }
 0x3df   : > { %6380 = vst [vmem:[%s8013_s23 + $0x190] sm:$0xff] %v5624_v18   ;;  %v6674_v18 = vld [vmem:[%s7189_s21 + $0x58] sm:$0xff] }
 0x3e1   : > { %v3398_v55 = vpop.f32.mrf.mxu0 }
 0x3e2   : > { %v3590_v59 = vpop.f32.mrf.mxu2 }
 0x3e3   : > { %v5944_v43 = vpack.c.bf16 %v3590_v59, %v3588_v26 }
 0x3e4   : > { %4016 = vmatmul.bf16.gmra.mxu0 %v6669_v34  ;;  %v4239_v30 = vpop.f32.mrf.mxu3  ;;  %v2944_v32 = vpop.f32.mrf.mxu1 }
 0x3e5   : > { %v6264_v6 = vpack.c.bf16 %v4239_v30, %v4237_v20  ;;  %6443 = vst [vmem:[%s8019_s24 + $0x190] sm:$0xff] %v5944_v43   ;;  %v5334_v20 = vld [vmem:[%s7189_s21 + $0x1f8] sm:$0xff] }
 0x3e7   : > { %6506 = vst [vmem:[%s8025_s15 + $0x190] sm:$0xff] %v6264_v6   ;;  %2983 = vmatmul.bf16.gmra.mxu1 %v5330_v53  ;;  %3632 = vmatmul.bf16.gmra.mxu2 %v5330_v53 }
 0x3e8   : > { %4281 = vmatmul.bf16.gmra.mxu3 %v5330_v53 }
 0x3e9   : > { %v3400_v29 = vpop.f32.mrf.mxu0 }
 0x3ea   : > { %v5754_v9 = vpack.c.bf16 %v3400_v29, %v3398_v55  ;;  %v3593_v17 = vpop.f32.mrf.mxu2 }
 0x3ec   : > { %6405 = vst [vmem:[%s8019_s24 + $0x60] sm:$0xff] %v5754_v9   ;;  %v4242_v41 = vpop.f32.mrf.mxu3  ;;  %v2946_v40 = vpop.f32.mrf.mxu1 }
 0x3ed   : > { %v5629_v1 = vpack.c.bf16 %v2946_v40, %v2944_v32  ;;  %v6675_v40 = vld [vmem:[%s7189_s21 + $0x60] sm:$0xff] }
 0x3ef   : > { %6381 = vst [vmem:[%s8013_s23 + $0x198] sm:$0xff] %v5629_v1  }
 0x3f1   : > { %v3403_v52 = vpop.f32.mrf.mxu0 }
 0x3f2   : > { %v3595_v46 = vpop.f32.mrf.mxu2 }
 0x3f3   : > { %v5949_v42 = vpack.c.bf16 %v3595_v46, %v3593_v17 }
 0x3f4   : > { %4021 = vmatmul.bf16.gmra.mxu0 %v6670_v21  ;;  %v4244_v7 = vpop.f32.mrf.mxu3  ;;  %v2949_v39 = vpop.f32.mrf.mxu1 }
 0x3f5   : > { %v6269_v19 = vpack.c.bf16 %v4244_v7, %v4242_v41  ;;  %6444 = vst [vmem:[%s8019_s24 + $0x198] sm:$0xff] %v5949_v42  }
 0x3f7   : > { %6507 = vst [vmem:[%s8025_s15 + $0x198] sm:$0xff] %v6269_v19   ;;  %2988 = vmatmul.bf16.gmra.mxu1 %v5331_v5  ;;  %3637 = vmatmul.bf16.gmra.mxu2 %v5331_v5 }
 0x3f8   : > { %4286 = vmatmul.bf16.gmra.mxu3 %v5331_v5 }
 0x3f9   : > { %v3405_v51 = vpop.f32.mrf.mxu0 }
 0x3fa   : > { %v5759_v38 = vpack.c.bf16 %v3405_v51, %v3403_v52  ;;  %v3598_v33 = vpop.f32.mrf.mxu2 }
 0x3fc   : > { %6406 = vst [vmem:[%s8019_s24 + $0x68] sm:$0xff] %v5759_v38   ;;  %v4247_v23 = vpop.f32.mrf.mxu3  ;;  %v2951_v16 = vpop.f32.mrf.mxu1 }
 0x3fd   : > { %v5634_v11 = vpack.c.bf16 %v2951_v16, %v2949_v39 }
 0x3ff   : > { %6382 = vst [vmem:[%s8013_s23 + $0x1a0] sm:$0xff] %v5634_v11  }
 0x401   : > { %v3987_v31 = vpop.f32.mrf.mxu0 }
 0x402   : > { %v3600_v58 = vpop.f32.mrf.mxu2 }
 0x403   : > { %v5954_v4 = vpack.c.bf16 %v3600_v58, %v3598_v33 }
 0x404   : > { %4026 = vmatmul.bf16.gmra.mxu0 %v6671_v35  ;;  %v4249_v3 = vpop.f32.mrf.mxu3  ;;  %v2954_v15 = vpop.f32.mrf.mxu1 }
 0x405   : > { %v6274_v63 = vpack.c.bf16 %v4249_v3, %v4247_v23  ;;  %6445 = vst [vmem:[%s8019_s24 + $0x1a0] sm:$0xff] %v5954_v4  }
 0x407   : > { %6508 = vst [vmem:[%s8025_s15 + $0x1a0] sm:$0xff] %v6274_v63   ;;  %2993 = vmatmul.bf16.gmra.mxu1 %v5332_v24  ;;  %3642 = vmatmul.bf16.gmra.mxu2 %v5332_v24 }
 0x408   : > { %4291 = vmatmul.bf16.gmra.mxu3 %v5332_v24 }
 0x409   : > { %v3989_v61 = vpop.f32.mrf.mxu0 }
 0x40a   : > { %v6014_v36 = vpack.c.bf16 %v3989_v61, %v3987_v31  ;;  %v3603_v2 = vpop.f32.mrf.mxu2 }
 0x40c   : > { %6015 = vst [vmem:[%s8025_s15] sm:$0xff] %v6014_v36   ;;  %v4252_v27 = vpop.f32.mrf.mxu3  ;;  %v2956_v0 = vpop.f32.mrf.mxu1  ;;  %v6676_v36 = vld [vmem:[%s7189_s21 + $0x68] sm:$0xff]  ;;  %s6843_s21 = scalar_lea.hbm %s6842_s2, 128 }
 0x40d   : > { %v5639_v22 = vpack.c.bf16 %v2956_v0, %v2954_v15  ;;  %p6844_p1 = scmp.ne.s32.totalorder %s6842_s2, %s6843_s21  ;;  %p6849_p2 = scmp.lt.s32.totalorder %s6847_s3, %s6843_s21 }
 0x40f   : > { %6383 = vst [vmem:[%s8013_s23 + $0x1a8] sm:$0xff] %v5639_v22   ;;  %p6845_p4 = pnand %p6844_p1, %p7149_p3  ;;  %p6850_p9 = por %p6849_p2, %p6848_p11 }
 0x411   : > { %v3992_v60 = vpop.f32.mrf.mxu0  ;;  %p6846_p8 = pneg %p6845_p4 }
 0x412   : > { %v3605_v45 = vpop.f32.mrf.mxu2 }
 0x413   : > { %v5959_v54 = vpack.c.bf16 %v3605_v45, %v3603_v2  ;;  %p6851_p10 = pnand %p6850_p9, %p6846_p8 }
 0x414   : > { %4031 = vmatmul.bf16.gmra.mxu0 %v6672_v12  ;;  %v4254_v47 = vpop.f32.mrf.mxu3  ;;  %v2959_v48 = vpop.f32.mrf.mxu1 }
 0x415   : > { %v6279_v49 = vpack.c.bf16 %v4254_v47, %v4252_v27  ;;  %6446 = vst [vmem:[%s8019_s24 + $0x1a8] sm:$0xff] %v5959_v54  }
 0x417   : > { %6509 = vst [vmem:[%s8025_s15 + $0x1a8] sm:$0xff] %v6279_v49   ;;  %2998 = vmatmul.bf16.gmra.mxu1 %v5333_v28  ;;  %3647 = vmatmul.bf16.gmra.mxu2 %v5333_v28 }
 0x418   : > { %4296 = vmatmul.bf16.gmra.mxu3 %v5333_v28 }
 0x419   : > { %v3994_v14 = vpop.f32.mrf.mxu0 }
 0x41a   : > { %v6019_v44 = vpack.c.bf16 %v3994_v14, %v3992_v60  ;;  %v3608_v62 = vpop.f32.mrf.mxu2 }
 0x41c   : > { %6457 = vst [vmem:[%s8025_s15 + $0x8] sm:$0xff] %v6019_v44   ;;  %v4257_v37 = vpop.f32.mrf.mxu3  ;;  %v2961_v50 = vpop.f32.mrf.mxu1 }
 0x41d   : > { %v5644_v10 = vpack.c.bf16 %v2961_v50, %v2959_v48 }
 0x41f   : > { %6384 = vst [vmem:[%s8013_s23 + $0x1b0] sm:$0xff] %v5644_v10  }
 0x421   : > { %v3997_v8 = vpop.f32.mrf.mxu0 }
 0x422   : > { %v3610_v57 = vpop.f32.mrf.mxu2 }
 0x423   : > { %v5964_v26 = vpack.c.bf16 %v3610_v57, %v3608_v62 }
 0x424   : > { %4036 = vmatmul.bf16.gmra.mxu0 %v6673_v56  ;;  %v4259_v29 = vpop.f32.mrf.mxu3  ;;  %v2964_v25 = vpop.f32.mrf.mxu1 }
 0x425   : > { %v6284_v9 = vpack.c.bf16 %v4259_v29, %v4257_v37  ;;  %6447 = vst [vmem:[%s8019_s24 + $0x1b0] sm:$0xff] %v5964_v26  }
 0x427   : > { %6510 = vst [vmem:[%s8025_s15 + $0x1b0] sm:$0xff] %v6284_v9   ;;  %3003 = vmatmul.bf16.gmra.mxu1 %v5334_v20  ;;  %3652 = vmatmul.bf16.gmra.mxu2 %v5334_v20 }
 0x428   : > { %4301 = vmatmul.bf16.gmra.mxu3 %v5334_v20 }
 0x429   : > { %v3999_v55 = vpop.f32.mrf.mxu0 }
 0x42a   : > { %v6024_v13 = vpack.c.bf16 %v3999_v55, %v3997_v8  ;;  %v3613_v59 = vpop.f32.mrf.mxu2 }
 0x42c   : > { %6458 = vst [vmem:[%s8025_s15 + $0x10] sm:$0xff] %v6024_v13   ;;  %v4262_v43 = vpop.f32.mrf.mxu3  ;;  %v2966_v53 = vpop.f32.mrf.mxu1 }
 0x42d   : > { %v5649_v6 = vpack.c.bf16 %v2966_v53, %v2964_v25 }
 0x42f   : > { %6385 = vst [vmem:[%s8013_s23 + $0x1b8] sm:$0xff] %v5649_v6  }
 0x431   : > { %v4002_v34 = vpop.f32.mrf.mxu0 }
 0x432   : > { %v3615_v32 = vpop.f32.mrf.mxu2 }
 0x433   : > { %v5969_v17 = vpack.c.bf16 %v3615_v32, %v3613_v59 }
 0x434   : > { %4041 = vmatmul.bf16.gmra.mxu0 %v6674_v18  ;;  %v4264_v51 = vpop.f32.mrf.mxu3  ;;  %v2969_v38 = vpop.f32.mrf.mxu1 }
 0x435   : > { %v6289_v41 = vpack.c.bf16 %v4264_v51, %v4262_v43  ;;  %6448 = vst [vmem:[%s8019_s24 + $0x1b8] sm:$0xff] %v5969_v17  }
 0x437   : > { %6511 = vst [vmem:[%s8025_s15 + $0x1b8] sm:$0xff] %v6289_v41  }
 0x439   : > { %v4004_v52 = vpop.f32.mrf.mxu0 }
 0x43a   : > { %v6029_v30 = vpack.c.bf16 %v4004_v52, %v4002_v34  ;;  %v3618_v1 = vpop.f32.mrf.mxu2 }
 0x43c   : > { %6459 = vst [vmem:[%s8025_s15 + $0x18] sm:$0xff] %v6029_v30   ;;  %v4267_v31 = vpop.f32.mrf.mxu3  ;;  %v2971_v7 = vpop.f32.mrf.mxu1 }
 0x43d   : > { %v5654_v5 = vpack.c.bf16 %v2971_v7, %v2969_v38 }
 0x43f   : > { %6386 = vst [vmem:[%s8013_s23 + $0x1c0] sm:$0xff] %v5654_v5  }
 0x441   : > { %v4007_v21 = vpop.f32.mrf.mxu0 }
 0x442   : > { %v3620_v19 = vpop.f32.mrf.mxu2 }
 0x443   : > { %v5974_v35 = vpack.c.bf16 %v3620_v19, %v3618_v1 }
 0x444   : > { %4046 = vmatmul.bf16.gmra.mxu0 %v6675_v40  ;;  %v4269_v33 = vpop.f32.mrf.mxu3  ;;  %v2974_v23 = vpop.f32.mrf.mxu1 }
 0x445   : > { %v6294_v61 = vpack.c.bf16 %v4269_v33, %v4267_v31  ;;  %6449 = vst [vmem:[%s8019_s24 + $0x1c0] sm:$0xff] %v5974_v35  }
 0x447   : > { %6512 = vst [vmem:[%s8025_s15 + $0x1c0] sm:$0xff] %v6294_v61  }
 0x449   : > { %v4009_v46 = vpop.f32.mrf.mxu0 }
 0x44a   : > { %v6034_v42 = vpack.c.bf16 %v4009_v46, %v4007_v21  ;;  %v3623_v16 = vpop.f32.mrf.mxu2 }
 0x44c   : > { %6460 = vst [vmem:[%s8025_s15 + $0x20] sm:$0xff] %v6034_v42   ;;  %v4272_v58 = vpop.f32.mrf.mxu3  ;;  %v2976_v4 = vpop.f32.mrf.mxu1 }
 0x44d   : > { %v5659_v3 = vpack.c.bf16 %v2976_v4, %v2974_v23 }
 0x44f   : > { %6387 = vst [vmem:[%s8013_s23 + $0x1c8] sm:$0xff] %v5659_v3  }
 0x451   : > { %v4012_v39 = vpop.f32.mrf.mxu0 }
 0x452   : > { %v3625_v24 = vpop.f32.mrf.mxu2 }
 0x453   : > { %v5979_v15 = vpack.c.bf16 %v3625_v24, %v3623_v16 }
 0x454   : > { %4051 = vmatmul.bf16.gmra.mxu0 %v6676_v36  ;;  %v4274_v12 = vpop.f32.mrf.mxu3  ;;  %v2979_v14 = vpop.f32.mrf.mxu1 }
 0x455   : > { %v6299_v2 = vpack.c.bf16 %v4274_v12, %v4272_v58  ;;  %6450 = vst [vmem:[%s8019_s24 + $0x1c8] sm:$0xff] %v5979_v15  }
 0x457   : > { %6513 = vst [vmem:[%s8025_s15 + $0x1c8] sm:$0xff] %v6299_v2  }
 0x459   : > { %v4014_v11 = vpop.f32.mrf.mxu0 }
 0x45a   : > { %v6039_v60 = vpack.c.bf16 %v4014_v11, %v4012_v39 }
 0x45c   : > { %6461 = vst [vmem:[%s8025_s15 + $0x28] sm:$0xff] %v6039_v60  }
 0x461   : > { %v4017_v63 = vpop.f32.mrf.mxu0 }
 0x462   : > { %6854 = shalt.err (!%p6851_p10)
}
 0x463   : > { %s7002_s16 = smov 128   ;;  %s7003_s14 = smov 8   ;;  %v3628_v27 = vpop.f32.mrf.mxu2  ;;  %v4277_v0 = vpop.f32.mrf.mxu3 }
 0x464   : > { %6562 = dma.vmem_to_hbm [thread:$0]  (%p7149_p3), %s4592_s19, 2048, %s4594_s22, %s4564_s1, %s7002_s16, %s7002_s16, %s7003_s14   ;;  %v2981_v45 = vpop.f32.mrf.mxu1 }
 0x465   : > { %v5664_v8 = vpack.c.bf16 %v2981_v45, %v2979_v14  ;;  %s8367_s0 = sshll.u32 %s7072_s9, 9  ;;  %s4568_s13 = sand.u32 1, %s7072_s9  }
 0x466   : > { %s4607_s25 = scalar_lea.hbm %s8466_s6, %s8367_s0  ;;  %s4608_s19 = sshll.u32 %s8013_s23, 4  ;;  %s4609_s19 = int_to_ptr.vmem [resolvable:$true] %s4608_s19 }
 0x467   : > { %6388 = vst [vmem:[%s8013_s23 + $0x1d0] sm:$0xff] %v5664_v8   ;;  %s8377_s22 = sshll.u32 %s4607_s25, 4  ;;  %s4624_s21 = scalar_lea.hbm %s8467_s7, %s8367_s0  ;;  %s4611_s22 = int_to_ptr.hbm [resolvable:$true] %s8377_s22 }
 0x468   : > { %s8386_s9 = scalar_lea.sflag [#allocation13], %s4568_s13  ;;  %s6869_s11 = sshra.s32 %s4611_s22, 4  ;;  %s6870_s11 = int_to_ptr.hbm [resolvable:$true] %s6869_s11 }
 0x469   : > { %v4019_v44 = vpop.f32.mrf.mxu0  ;;  %s6871_s10 = scalar_lea.hbm %s6870_s11, 512  ;;  %s6875_s3 = scalar_lea.hbm %s8466_s6, 1024 }
 0x46a   : > { %v6044_v22 = vpack.c.bf16 %v4019_v44, %v4017_v63  ;;  %p6872_p12 = scmp.ne.s32.totalorder %s6870_s11, %s6871_s10  ;;  %p6876_p5 = scmp.lt.s32.totalorder %s6870_s11, %s8466_s6 }
 0x46b   : > { %v3630_v54 = vpop.f32.mrf.mxu2  ;;  %v4279_v49 = vpop.f32.mrf.mxu3  ;;  %p6877_p7 = scmp.lt.s32.totalorder %s6875_s3, %s6871_s10 }
 0x46c   : > { %6462 = vst [vmem:[%s8025_s15 + $0x30] sm:$0xff] %v6044_v22   ;;  %v5984_v28 = vpack.c.bf16 %v3630_v54, %v3628_v27  ;;  %v6304_v48 = vpack.c.bf16 %v4279_v49, %v4277_v0  ;;  %v2984_v56 = vpop.f32.mrf.mxu1  ;;  %p6873_p13 = pnand %p6872_p12, %p7149_p3 }
 0x46d   : > { %p6878_p1 = por %p6877_p7, %p6876_p5 }
 0x46e   : > { %6451 = vst [vmem:[%s8019_s24 + $0x1d0] sm:$0xff] %v5984_v28   ;;  %p6874_p0 = pneg %p6873_p13 }
 0x46f   : > { %6514 = vst [vmem:[%s8025_s15 + $0x1d0] sm:$0xff] %v6304_v48  }
 0x470   : > { %p6879_p4 = pnand %p6878_p1, %p6874_p0 }
 0x471   : > { %v4022_v47 = vpop.f32.mrf.mxu0 }
 0x473   : > { %v3633_v62 = vpop.f32.mrf.mxu2  ;;  %v4282_v37 = vpop.f32.mrf.mxu3 }
 0x474   : > { %v2986_v50 = vpop.f32.mrf.mxu1 }
 0x475   : > { %v5669_v10 = vpack.c.bf16 %v2986_v50, %v2984_v56 }
 0x477   : > { %6389 = vst [vmem:[%s8013_s23 + $0x1d8] sm:$0xff] %v5669_v10  }
 0x479   : > { %v4024_v55 = vpop.f32.mrf.mxu0 }
 0x47a   : > { %v6049_v13 = vpack.c.bf16 %v4024_v55, %v4022_v47 }
 0x47b   : > { %v3635_v57 = vpop.f32.mrf.mxu2  ;;  %v4284_v29 = vpop.f32.mrf.mxu3 }
 0x47c   : > { %6463 = vst [vmem:[%s8025_s15 + $0x38] sm:$0xff] %v6049_v13   ;;  %v5989_v26 = vpack.c.bf16 %v3635_v57, %v3633_v62  ;;  %v6309_v20 = vpack.c.bf16 %v4284_v29, %v4282_v37  ;;  %v2989_v9 = vpop.f32.mrf.mxu1 }
 0x47e   : > { %6452 = vst [vmem:[%s8019_s24 + $0x1d8] sm:$0xff] %v5989_v26  }
 0x47f   : > { %6515 = vst [vmem:[%s8025_s15 + $0x1d8] sm:$0xff] %v6309_v20  }
 0x481   : > { %v4027_v34 = vpop.f32.mrf.mxu0 }
 0x483   : > { %v3638_v25 = vpop.f32.mrf.mxu2  ;;  %v4287_v59 = vpop.f32.mrf.mxu3 }
 0x484   : > { %v2991_v43 = vpop.f32.mrf.mxu1 }
 0x485   : > { %v5674_v30 = vpack.c.bf16 %v2991_v43, %v2989_v9 }
 0x487   : > { %6390 = vst [vmem:[%s8013_s23 + $0x1e0] sm:$0xff] %v5674_v30  }
 0x489   : > { %v4029_v18 = vpop.f32.mrf.mxu0 }
 0x48a   : > { %v6054_v52 = vpack.c.bf16 %v4029_v18, %v4027_v34 }
 0x48b   : > { %v3640_v53 = vpop.f32.mrf.mxu2  ;;  %v4289_v21 = vpop.f32.mrf.mxu3 }
 0x48c   : > { %6464 = vst [vmem:[%s8025_s15 + $0x40] sm:$0xff] %v6054_v52   ;;  %v5994_v32 = vpack.c.bf16 %v3640_v53, %v3638_v25  ;;  %v6314_v17 = vpack.c.bf16 %v4289_v21, %v4287_v59  ;;  %v2994_v51 = vpop.f32.mrf.mxu1 }
 0x48e   : > { %6453 = vst [vmem:[%s8019_s24 + $0x1e0] sm:$0xff] %v5994_v32  }
 0x48f   : > { %6516 = vst [vmem:[%s8025_s15 + $0x1e0] sm:$0xff] %v6314_v17  }
 0x491   : > { %v4032_v6 = vpop.f32.mrf.mxu0 }
 0x493   : > { %v3643_v41 = vpop.f32.mrf.mxu2  ;;  %v4292_v40 = vpop.f32.mrf.mxu3 }
 0x494   : > { %v2996_v46 = vpop.f32.mrf.mxu1 }
 0x495   : > { %v5679_v31 = vpack.c.bf16 %v2996_v46, %v2994_v51 }
 0x497   : > { %6391 = vst [vmem:[%s8013_s23 + $0x1e8] sm:$0xff] %v5679_v31  }
 0x499   : > { %v4034_v38 = vpop.f32.mrf.mxu0 }
 0x49a   : > { %v6059_v1 = vpack.c.bf16 %v4034_v38, %v4032_v6 }
 0x49b   : > { %v3645_v42 = vpop.f32.mrf.mxu2  ;;  %v4294_v19 = vpop.f32.mrf.mxu3 }
 0x49c   : > { %6465 = vst [vmem:[%s8025_s15 + $0x48] sm:$0xff] %v6059_v1   ;;  %v5999_v5 = vpack.c.bf16 %v3645_v42, %v3643_v41  ;;  %v6319_v39 = vpack.c.bf16 %v4294_v19, %v4292_v40  ;;  %v2999_v35 = vpop.f32.mrf.mxu1 }
 0x49e   : > { %6454 = vst [vmem:[%s8019_s24 + $0x1e8] sm:$0xff] %v5999_v5  }
 0x49f   : > { %6517 = vst [vmem:[%s8025_s15 + $0x1e8] sm:$0xff] %v6319_v39  }
 0x4a1   : > { %v4037_v7 = vpop.f32.mrf.mxu0 }
 0x4a3   : > { %v3648_v33 = vpop.f32.mrf.mxu2  ;;  %v4297_v23 = vpop.f32.mrf.mxu3 }
 0x4a4   : > { %v3001_v16 = vpop.f32.mrf.mxu1 }
 0x4a5   : > { %v5684_v11 = vpack.c.bf16 %v3001_v16, %v2999_v35 }
 0x4a7   : > { %6392 = vst [vmem:[%s8013_s23 + $0x1f0] sm:$0xff] %v5684_v11  }
 0x4a9   : > { %v4039_v61 = vpop.f32.mrf.mxu0 }
 0x4aa   : > { %v6064_v36 = vpack.c.bf16 %v4039_v61, %v4037_v7 }
 0x4ab   : > { %v3650_v58 = vpop.f32.mrf.mxu2  ;;  %v4299_v3 = vpop.f32.mrf.mxu3 }
 0x4ac   : > { %6466 = vst [vmem:[%s8025_s15 + $0x50] sm:$0xff] %v6064_v36   ;;  %v6004_v4 = vpack.c.bf16 %v3650_v58, %v3648_v33  ;;  %v6324_v24 = vpack.c.bf16 %v4299_v3, %v4297_v23  ;;  %v3004_v63 = vpop.f32.mrf.mxu1 }
 0x4ae   : > { %6455 = vst [vmem:[%s8019_s24 + $0x1f0] sm:$0xff] %v6004_v4  }
 0x4af   : > { %6518 = vst [vmem:[%s8025_s15 + $0x1f0] sm:$0xff] %v6324_v24  }
 0x4b1   : > { %v4042_v60 = vpop.f32.mrf.mxu0 }
 0x4b3   : > { %v3653_v15 = vpop.f32.mrf.mxu2  ;;  %v4302_v2 = vpop.f32.mrf.mxu3 }
 0x4b4   : > { %v3006_v27 = vpop.f32.mrf.mxu1 }
 0x4b5   : > { %v5689_v44 = vpack.c.bf16 %v3006_v27, %v3004_v63 }
 0x4b7   : > { %6393 = vst [vmem:[%s8013_s23 + $0x1f8] sm:$0xff] %v5689_v44  }
 0x4b9   : > { %v4044_v12 = vpop.f32.mrf.mxu0 }
 0x4ba   : > { %v6069_v14 = vpack.c.bf16 %v4044_v12, %v4042_v60 }
 0x4bc   : > { %6467 = vst [vmem:[%s8025_s15 + $0x58] sm:$0xff] %v6069_v14  }
 0x4bd   : > { %6882 = shalt.err (!%p6879_p4)
}
 0x4be   : > { %s7004_s23 = smov 64   ;;  %s7005_s13 = smov 4   ;;  %v3655_v0 = vpop.f32.mrf.mxu2  ;;  %v4304_v8 = vpop.f32.mrf.mxu3 }
 0x4bf   : > { %6563 = dma.vmem_to_hbm [thread:$0]  (%p7149_p3), %s4609_s19, 8192, %s4611_s22, %s8386_s9, %s7004_s23, %s7004_s23, %s7005_s13   ;;  %v6009_v45 = vpack.c.bf16 %v3655_v0, %v3653_v15  ;;  %v6329_v54 = vpack.c.bf16 %v4304_v8, %v4302_v2 }
 0x4c0   : > { %s4627_s1 = sshll.u32 %s4624_s21, 4  ;;  %s4625_s2 = sshll.u32 %s8019_s24, 4  ;;  %s4628_s1 = int_to_ptr.hbm [resolvable:$true] %s4627_s1  ;;  %s4626_s2 = int_to_ptr.vmem [resolvable:$true] %s4625_s2 }
 0x4c1   : > { %v4047_v22 = vpop.f32.mrf.mxu0  ;;  %6456 = vst [vmem:[%s8019_s24 + $0x1f8] sm:$0xff] %v6009_v45   ;;  %s6897_s11 = sshra.s32 %s4628_s1, 4  ;;  %s6903_s21 = scalar_lea.hbm %s8467_s7, 1024  ;;  %s6898_s11 = int_to_ptr.hbm [resolvable:$true] %s6897_s11 }
 0x4c2   : > { %6519 = vst [vmem:[%s8025_s15 + $0x1f8] sm:$0xff] %v6329_v54   ;;  %s6899_s10 = scalar_lea.hbm %s6898_s11, 512  ;;  %p6904_p9 = scmp.lt.s32.totalorder %s6898_s11, %s8467_s7 }
 0x4c3   : > { %p6900_p8 = scmp.ne.s32.totalorder %s6898_s11, %s6899_s10  ;;  %p6905_p10 = scmp.lt.s32.totalorder %s6903_s21, %s6899_s10 }
 0x4c5   : > { %p6901_p11 = pnand %p6900_p8, %p7149_p3  ;;  %p6906_p12 = por %p6905_p10, %p6904_p9 }
 0x4c7   : > { %p6902_p2 = pneg %p6901_p11 }
 0x4c9   : > { %p6907_p13 = pnand %p6906_p12, %p6902_p2 }
 0x4cb   : > { %6910 = shalt.err (!%p6907_p13)
}
 0x4cc   : > { %6564 = dma.vmem_to_hbm [thread:$0]  (%p7149_p3), %s4626_s2, 8192, %s4628_s1, %s8386_s9, %s7004_s23, %s7004_s23, %s7005_s13   ;;  %v4049_v47 = vpop.f32.mrf.mxu0 }
 0x4cd   : > { %v6074_v28 = vpack.c.bf16 %v4049_v47, %v4047_v22  ;;  %s4641_s4 = scalar_lea.hbm %s8468_s8, %s8367_s0  ;;  %s4642_s25 = sshll.u32 %s8025_s15, 4  ;;  %s4643_s25 = int_to_ptr.vmem [resolvable:$true] %s4642_s25 }
 0x4ce   : > { %s4644_s11 = sshll.u32 %s4641_s4, 4  ;;  %s4579_s10 = scalar_lea.sflag [#allocation16], %s7182_s20  ;;  %s4645_s11 = int_to_ptr.hbm [resolvable:$true] %s4644_s11 }
 0x4cf   : > { %6468 = vst [vmem:[%s8025_s15 + $0x60] sm:$0xff] %v6074_v28   ;;  %s6925_s19 = sshra.s32 %s4645_s11, 4  ;;  %s6931_s22 = scalar_lea.hbm %s8468_s8, 1024  ;;  %s6926_s19 = int_to_ptr.hbm [resolvable:$true] %s6925_s19 }
 0x4d0   : > { %s6927_s9 = scalar_lea.hbm %s6926_s19, 512  ;;  %p6932_p1 = scmp.lt.s32.totalorder %s6926_s19, %s8468_s8 }
 0x4d1   : > { %p6928_p0 = scmp.ne.s32.totalorder %s6926_s19, %s6927_s9  ;;  %p6933_p4 = scmp.lt.s32.totalorder %s6931_s22, %s6927_s9 }
 0x4d3   : > { %p6929_p5 = pnand %p6928_p0, %p7149_p3  ;;  %p6934_p8 = por %p6933_p4, %p6932_p1 }
 0x4d4   : > { %v4052_v49 = vpop.f32.mrf.mxu0 }
 0x4d5   : > { %p6930_p7 = pneg %p6929_p5 }
 0x4d7   : > { %p6935_p11 = pnand %p6934_p8, %p6930_p7 }
 0x4dc   : > { %v4054_v48 = vpop.f32.mrf.mxu0 }
 0x4dd   : > { %v6079_v56 = vpack.c.bf16 %v4054_v48, %v4052_v49 }
 0x4df   : > { %6469 = vst [vmem:[%s8025_s15 + $0x68] sm:$0xff] %v6079_v56  }
 0x4e0   : > { %6938 = shalt.err (!%p6935_p11)
}
 0x4e1   : > { %6565 = dma.vmem_to_hbm [thread:$0]  (%p7149_p3), %s4643_s25, 8192, %s4645_s11, %s4579_s10, %s7004_s23, %s7004_s23, %s7005_s13  }
 0x4e2 PF: > { %s4659_s20 = sand.u32 1, %s6981_s27   ;;  %p8490_p2 = scmp.ge.s32.totalorder %s6993_s30, 2 }
 0x4e3   : > { %s4660_s15 = scalar_lea.sflag [#allocation4], %s4659_s20 }
 0x4e4   : > { %p6588_p9 = pnand %p8490_p2, %p7088_p6 }
 0x4e6   : > { %p6589_p10 = pneg %p6588_p9 }
 0x4e8   : > { %6968 = dma.done.wait (%p6589_p10), %s4660_s15, 2048  }
 0x4e9   : > { %6970 = vsyncadd (%p6589_p10), %s4660_s15, 4294965248  ;;  %s8491_s16 = sadd.s32 4294967294, %s6993_s30  }
 0x4ea   : > { %s4669_s14 = sand.u32 1, %s8491_s16  }
 0x4eb   : > { %s4670_s17 = scalar_lea.sflag [#allocation13], %s4669_s14 }
 0x4ec   : > { %6972 = dma.done.wait (%p6589_p10), %s4670_s17, 16384  }
 0x4ed   : > { %6974 = vsyncadd (%p6589_p10), %s4670_s17, 4294950912  ;;  %s4690_s24 = scalar_lea.sflag [#allocation16], %s4659_s20 }
 0x4ee   : > { %6976 = dma.done.wait (%p6589_p10), %s4690_s24, 8192  }
 0x4ef   : > { %6978 = vsyncadd (%p6589_p10), %s4690_s24, 4294959104  ;;  %p30_p3 = scmp.ge.s32.totalorder %s7139_s26, 4   ;;  %s8492_s27 = smov %s6985_s28 }
 0x4f0   : > { %s8493_s28 = smov %s6989_s29  ;;  %s8494_s29 = smov %s7155_s18 }
 0x4f1   : > { %s8495_s30 = smov %s7139_s26  ;;  %32 = sbr.rel (!%p30_p3) target bundleno = 17 (0x11), region = 150 }
 0x4f6   :  { %4696 = vsyncpa [#allocation3], 1 }
 0x4f7   :  { %4698 = vsyncpa [#allocation3 + $0x1], 1 }
 0x4f8   :  { %4699 = vsyncpa [#allocation6], 1 }
 0x4f9   :  { %4700 = vsyncpa [#allocation9], 1 }
 0x4fa   :  { %4701 = vsyncpa [#allocation4], 1 }
 0x4fb   :  { %4703 = vsyncpa [#allocation4 + $0x1], 1 }
 0x4fc   :  { %4704 = vsyncpa [#allocation13], 1 }
 0x4fd   :  { %4706 = vsyncpa [#allocation13 + $0x1], 1 }
 0x4fe   :  { %4707 = vsyncpa [#allocation16], 1 }
 0x4ff   :  { %4709 = vsyncpa [#allocation16 + $0x1], 1 }

</bundles_post_ra>
